<compile_context>
chip_gen: v7x
topology: tpu7x:2x2x1
jax: 0.10.0
libtpu: 0.0.40
codegen_flags: <defaults>
</compile_context>

<pallas_src>
import math

import jax
import jax.numpy as jnp
from jax.experimental import pallas as pl
from jax.experimental.pallas import tpu as pltpu

BN_EPS = 1e-5
STATS_LANES = 128  # lane-dense stats slab: lane0=NL, lane1=KLD, lane2=loss, rest 0


def _softplus(x):
    # numerically-stable softplus, matches torch.nn.Softplus (beta=1)
    return jnp.maximum(x, 0.0) + jnp.log1p(jnp.exp(-jnp.abs(x)))


def _softmax_rows(x):
    m = jnp.max(x, axis=-1, keepdims=True)
    e = jnp.exp(x - m)
    return e * pl.reciprocal(jnp.sum(e, axis=-1, keepdims=True), approx=True)


def prodlda_kernel(
    x_ref,
    w1_ref, b1_ref, w2_ref, b2_ref,
    wh_ref, bh_ref,            # fused [mean | logvar] head (bf16), BN folded
    wd_ref, bd_ref,            # decoder (bf16), BN folded
    prior_ref,                 # rows: [prior_mean, 1/prior_var, prior_logvar]
    mu_ref,                    # (TB, K)  posterior mean
    recon_ref,                 # (TB, V)  bf16
    stats_ref,                 # (TB, 128) lanes [NL, KLD, loss, 0, ...]
):
    x = x_ref[...]                                  # bf16 (TB, V); no f32 copy kept live

    # encoder MLP: Linear -> Softplus -> Linear -> Softplus (dropout is identity in eval)
    h1 = _softplus(
        jnp.dot(x, w1_ref[...], preferred_element_type=jnp.float32) + b1_ref[...]
    )
    h2 = _softplus(
        jnp.dot(h1.astype(jnp.bfloat16), w2_ref[...],
                preferred_element_type=jnp.float32) + b2_ref[...]
    )

    # fused mean/logvar heads (eval BatchNorm already folded into wh/bh): (TB, 2K)
    ml = jnp.dot(h2.astype(jnp.bfloat16), wh_ref[...],
                 preferred_element_type=jnp.float32) + bh_ref[...]
    K = prior_ref.shape[1]
    mu = ml[:, :K]
    lv = ml[:, K:]
    var = jnp.exp(lv)

    # inference path: p = softmax(posterior_mean)
    p = _softmax_rows(mu)

    # prodLDA decoder with folded eval-BN: dec = p @ wd' + bd'
    dec = (
        jnp.dot(p.astype(wd_ref.dtype), wd_ref[...],
                preferred_element_type=jnp.float32)
        + bd_ref[...]
    )

    # recon = softmax(dec); NL via log-softmax (reuses max and denominator, B logs not B*V)
    dmax = jnp.max(dec, axis=-1, keepdims=True)
    de = jnp.exp(dec - dmax)
    dsum = jnp.sum(de, axis=-1, keepdims=True)
    recon = de * pl.reciprocal(dsum, approx=True)
    log_recon = (dec - dmax) - jnp.log(dsum)        # == log(softmax(dec))
    NL = -jnp.sum(x.astype(jnp.float32) * log_recon, axis=1, keepdims=True)   # (TB, 1)

    # KLD against the Laplace-approx Dirichlet prior (1/prior_var precomputed host-side)
    prior_mean = prior_ref[0:1, :]
    inv_prior_var = prior_ref[1:2, :]
    prior_logvar = prior_ref[2:3, :]
    diff = mu - prior_mean
    KLD = 0.5 * (
        jnp.sum(var * inv_prior_var + diff * diff * inv_prior_var + prior_logvar - lv,
                axis=1, keepdims=True)
        - float(K)
    )                                                                # (TB, 1)
    loss = NL + KLD

    # lane-dense stores
    mu_ref[...] = mu
    recon_ref[...] = recon.astype(recon_ref.dtype)
    lane = jax.lax.broadcasted_iota(jnp.int32, stats_ref.shape, 1)
    stats_ref[...] = (
        jnp.where(lane == 0, NL, 0.0)
        + jnp.where(lane == 1, KLD, 0.0)
        + jnp.where(lane == 2, loss, 0.0)
    )


def prodlda_forward(x, kparams, *, batch_tile=None, single_buffer_weights=True):
    B, V = x.shape
    K = kparams["prior"].shape[1]
    H = kparams["w1"].shape[1]

    if batch_tile is None:
        # Biggest tile up to 256, but keep >= 2 grid steps so the ("parallel",) batch axis
        # can shard across v7x's two TensorCores (on v5e/v6e the bigger tile just wins).
        TB = min(B, 256)
        if B // TB < 2 and B % 2 == 0 and (B // 2) % 8 == 0:
            TB = B // 2
    else:
        TB = batch_tile
    assert B % TB == 0, "batch must divide the batch tile"
    grid = (B // TB,)

    def _resident(arr):
        # Constant index_map keeps weights VMEM-resident across the grid; single-buffer
        # them (never re-fetched, so double-buffering only doubles their VMEM footprint).
        if single_buffer_weights:
            return pl.BlockSpec(arr.shape, lambda i: (0, 0),
                                pipeline_mode=pl.Buffered(1))
        return pl.BlockSpec(arr.shape, lambda i: (0, 0))

    in_specs = [
        pl.BlockSpec((TB, V), lambda i: (i, 0)),              # x
        _resident(kparams["w1"]), _resident(kparams["b1"]),
        _resident(kparams["w2"]), _resident(kparams["b2"]),
        _resident(kparams["whead"]), _resident(kparams["bhead"]),
        _resident(kparams["wd"]), _resident(kparams["bd"]),
        _resident(kparams["prior"]),
    ]
    out_specs = (
        pl.BlockSpec((TB, K), lambda i: (i, 0)),              # mu
        pl.BlockSpec((TB, V), lambda i: (i, 0)),              # recon (bf16)
        pl.BlockSpec((TB, STATS_LANES), lambda i: (i, 0)),    # per-example stats
    )
    out_shape = (
        jax.ShapeDtypeStruct((B, K), jnp.float32),
        jax.ShapeDtypeStruct((B, V), jnp.bfloat16),
        jax.ShapeDtypeStruct((B, STATS_LANES), jnp.float32),
    )

    param_order = ("w1", "b1", "w2", "b2", "whead", "bhead", "wd", "bd", "prior")
    param_arrays = [kparams[k] for k in param_order]

    # advisory cost estimate so XLA can schedule surrounding ops around the call
    flops = 2 * B * (V * H + H * H + H * 2 * K + K * V)
    transcendentals = B * (4 * H + 2 * K + V + 4)
    bytes_accessed = int(
        x.size * x.dtype.itemsize
        + sum(int(a.size) * a.dtype.itemsize for a in param_arrays)
        + B * K * 4 + B * V * 2 + B * STATS_LANES * 4
    )

    mu, recon, stats = pl.pallas_call(
        prodlda_kernel,
        grid=grid,
        in_specs=in_specs,
        out_specs=out_specs,
        out_shape=out_shape,
        compiler_params=pltpu.CompilerParams(
            dimension_semantics=("parallel",),
            vmem_limit_bytes=32 * 1024 * 1024,
        ),
        cost_estimate=pl.CostEstimate(
            flops=flops,
            transcendentals=transcendentals,
            bytes_accessed=bytes_accessed,
        ),
    )(x, *param_arrays)

    posterior_mean = mu
    p = jax.nn.softmax(mu, axis=1)          # exact, cheap host-side recompute from mu
    NL = stats[:, 0]
    KLD = stats[:, 1]
    loss = stats[:, 2]
    return posterior_mean, p, recon, loss.mean(), NL.mean(), KLD.mean()


# ---------------- parameter prep (host-side, one-time) ----------------
def _fold_bn(w, b, bn):
    """Fold eval-mode BatchNorm1d into the preceding Linear (w is (in, out))."""
    gamma, beta, rmean, rvar = bn[0:1], bn[1:2], bn[2:3], bn[3:4]
    scale = gamma * jax.lax.rsqrt(rvar + BN_EPS)                   # (1, F)
    return w.astype(jnp.float32) * scale, (b - rmean) * scale + beta


def prepare_kernel_params(raw):
    wm_f, bm_f = _fold_bn(raw["wm"], raw["bm"], raw["mbn"])
    wl_f, bl_f = _fold_bn(raw["wl"], raw["bl"], raw["lbn"])
    wd_f, bd_f = _fold_bn(raw["wd"], raw["bd"], raw["dbn"])
    prior = jnp.concatenate(
        [raw["prior_mean"], 1.0 / raw["prior_var"], jnp.log(raw["prior_var"])], axis=0
    ).astype(jnp.float32)                                           # (3, K)
    return dict(
        w1=raw["w1"],                                               # bf16 (V, H)
        b1=raw["b1"],
        w2=raw["w2"],                                               # bf16 (H, H)
        b2=raw["b2"],
        whead=jnp.concatenate([wm_f, wl_f], axis=1).astype(jnp.bfloat16),  # (H, 2K) bf16
        bhead=jnp.concatenate([bm_f, bl_f], axis=1),                # (1, 2K) f32
        wd=wd_f.astype(jnp.bfloat16),                               # (K, V) bf16
        bd=bd_f,                                                    # (1, V) f32
        prior=prior,
    )


def init_raw_params(key, net_arch):
    V = net_arch["num_input"]
    H = net_arch["n_hidden"]
    K = net_arch["num_topic"]
    keys = jax.random.split(key, 6)

    def linear(k, fan_in, fan_out):
        bound = 1.0 / math.sqrt(fan_in)
        kw, kb = jax.random.split(k)
        w = jax.random.uniform(kw, (fan_in, fan_out), jnp.float32, -bound, bound)
        b = jax.random.uniform(kb, (1, fan_out), jnp.float32, -bound, bound)
        return w, b

    w1, b1 = linear(keys[0], V, H)
    w2, b2 = linear(keys[1], H, H)
    wm, bm = linear(keys[2], H, K)
    wl, bl = linear(keys[3], H, K)
    _, bd = linear(keys[4], K, V)

    # decoder re-init: normal(0, std), std = 1/sqrt(init_mult*(V+K))
    std = 1.0 / math.sqrt(net_arch["init_mult"] * (V + K))
    wd = std * jax.random.normal(keys[5], (K, V), jnp.float32)

    def bn_params(F):
        # PyTorch BatchNorm1d defaults: gamma=1, beta=0, running_mean=0, running_var=1
        return jnp.stack(
            [jnp.ones((F,)), jnp.zeros((F,)), jnp.zeros((F,)), jnp.ones((F,))]
        ).astype(jnp.float32)

    prior_mean = jnp.zeros((1, K), jnp.float32)
    prior_var = jnp.full((1, K), (K - 1) / (K * net_arch["dir_prior"]), jnp.float32)

    # matmul weights are stored pre-quantized to bf16 (kernel and reference share values)
    return dict(
        w1=w1.astype(jnp.bfloat16), b1=b1,
        w2=w2.astype(jnp.bfloat16), b2=b2,
        wm=wm.astype(jnp.bfloat16), bm=bm, mbn=bn_params(K),
        wl=wl.astype(jnp.bfloat16), bl=bl, lbn=bn_params(K),
        wd=wd.astype(jnp.bfloat16), bd=bd, dbn=bn_params(V),
        prior_mean=prior_mean, prior_var=prior_var,
    )


# ---------------- pure-JAX reference (PyTorch eval semantics) ----------------
def prodlda_reference(x, raw):
    xf = x.astype(jnp.float32)

    def bn(y, b):
        return (y - b[2:3]) * b[0:1] / jnp.sqrt(b[3:4] + BN_EPS) + b[1:2]

    h1 = jax.nn.softplus(xf @ raw["w1"].astype(jnp.float32) + raw["b1"])
    h2 = jax.nn.softplus(h1 @ raw["w2"].astype(jnp.float32) + raw["b2"])
    mu = bn(h2 @ raw["wm"].astype(jnp.float32) + raw["bm"], raw["mbn"])
    lv = bn(h2 @ raw["wl"].astype(jnp.float32) + raw["bl"], raw["lbn"])
    var = jnp.exp(lv)
    p = jax.nn.softmax(mu, axis=1)
    recon = jax.nn.softmax(
        bn(p @ raw["wd"].astype(jnp.float32) + raw["bd"], raw["dbn"]), axis=1
    )

    NL = -jnp.sum(xf * jnp.log(recon + 1e-10), axis=1)
    pm, pv, plv = raw["prior_mean"], raw["prior_var"], jnp.log(raw["prior_var"])
    KLD = 0.5 * (
        jnp.sum(var / pv + (mu - pm) ** 2 / pv + plv - lv, axis=1) - mu.shape[1]
    )
    loss = NL + KLD
    return mu, p, recon, loss.mean(), NL.mean(), KLD.mean()


if __name__ == "__main__":
    net_arch = dict(
        num_input=256, n_hidden=128, num_topic=64,
        dir_prior=0.02, init_mult=1.0, model="prodLDA",
    )
    B = 64

    key = jax.random.PRNGKey(0)
    k_x, k_p = jax.random.split(key)
    # doc frequency vectors: non-negative "counts", stored bf16 (halves HBM->VMEM bytes)
    doc_freq_vecs = jax.random.uniform(
        k_x, (B, net_arch["num_input"]), jnp.float32, 0.0, 5.0
    ).astype(jnp.bfloat16)

    raw = init_raw_params(k_p, net_arch)
    kparams = prepare_kernel_params(raw)

    try:
        outs = prodlda_forward(doc_freq_vecs, kparams)
    except Exception:
        # TODO(synk): pl.Buffered(1) single-buffering of resident weights is not supported
        # on this JAX build; fall back to default (double-buffered) weight BlockSpecs.
        outs = prodlda_forward(doc_freq_vecs, kparams, single_buffer_weights=False)
    outs = jax.block_until_ready(outs)
    mu, p, recon, loss_m, nl_m, kld_m = outs

    # sanity check against pure-JAX f32 reference (same stored params, PyTorch eval math);
    # tolerances account for bf16 matmul inputs / bf16 recon output / approx reciprocal
    ref = prodlda_reference(doc_freq_vecs, raw)
    assert jnp.allclose(mu, ref[0], rtol=1e-2, atol=1e-2)
    assert jnp.allclose(p, ref[1], rtol=1e-2, atol=1e-3)
    assert jnp.allclose(recon.astype(jnp.float32), ref[2], rtol=1e-2, atol=1e-3)
    assert jnp.allclose(loss_m, ref[3], rtol=5e-3, atol=1e-1)
    assert jnp.allclose(nl_m, ref[4], rtol=5e-3, atol=1e-1)
    assert jnp.allclose(kld_m, ref[5], rtol=5e-3, atol=1e-1)

    print("KERNEL_OK")
</pallas_src>

<mosaic_0001>
module attributes {stable_mosaic.version = 11 : i64} {
  func.func @prodlda_kernel(%arg0: i32, %arg1: memref<32x256xbf16, #tpu.memory_space<vmem>>, %arg2: memref<256x128xbf16, #tpu.memory_space<vmem>>, %arg3: memref<1x128xf32, #tpu.memory_space<vmem>>, %arg4: memref<128x128xbf16, #tpu.memory_space<vmem>>, %arg5: memref<1x128xf32, #tpu.memory_space<vmem>>, %arg6: memref<128x128xbf16, #tpu.memory_space<vmem>>, %arg7: memref<1x128xf32, #tpu.memory_space<vmem>>, %arg8: memref<64x256xbf16, #tpu.memory_space<vmem>>, %arg9: memref<1x256xf32, #tpu.memory_space<vmem>>, %arg10: memref<3x64xf32, #tpu.memory_space<vmem>>, %arg11: memref<32x64xf32, #tpu.memory_space<vmem>>, %arg12: memref<32x256xbf16, #tpu.memory_space<vmem>>, %arg13: memref<32x128xf32, #tpu.memory_space<vmem>>) attributes {dimension_semantics = [#tpu.dimension_semantics<parallel>], iteration_bounds = array<i64: 2>, scalar_prefetch = 0 : i64, scratch_operands = 0 : i64, tpu.core_type = #tpu.core_type<tc>, window_params = [{transform_indices = @transform_0, window_bounds = array<i64: 32, 256>}, {pipeline_mode = #tpu.pipeline_mode<synchronous>, transform_indices = @transform_1, window_bounds = array<i64: 256, 128>}, {pipeline_mode = #tpu.pipeline_mode<synchronous>, transform_indices = @transform_2, window_bounds = array<i64: 1, 128>}, {pipeline_mode = #tpu.pipeline_mode<synchronous>, transform_indices = @transform_3, window_bounds = array<i64: 128, 128>}, {pipeline_mode = #tpu.pipeline_mode<synchronous>, transform_indices = @transform_4, window_bounds = array<i64: 1, 128>}, {pipeline_mode = #tpu.pipeline_mode<synchronous>, transform_indices = @transform_5, window_bounds = array<i64: 128, 128>}, {pipeline_mode = #tpu.pipeline_mode<synchronous>, transform_indices = @transform_6, window_bounds = array<i64: 1, 128>}, {pipeline_mode = #tpu.pipeline_mode<synchronous>, transform_indices = @transform_7, window_bounds = array<i64: 64, 256>}, {pipeline_mode = #tpu.pipeline_mode<synchronous>, transform_indices = @transform_8, window_bounds = array<i64: 1, 256>}, {pipeline_mode = #tpu.pipeline_mode<synchronous>, transform_indices = @transform_9, window_bounds = array<i64: 3, 64>}, {transform_indices = @transform_10, window_bounds = array<i64: 32, 64>}, {transform_indices = @transform_11, window_bounds = array<i64: 32, 256>}, {transform_indices = @transform_12, window_bounds = array<i64: 32, 128>}]} {
    %c0 = arith.constant 0 : index
    %c0_0 = arith.constant 0 : index
    %0 = vector.load %arg1[%c0, %c0_0] : memref<32x256xbf16, #tpu.memory_space<vmem>>, vector<32x256xbf16>
    %c0_1 = arith.constant 0 : index
    %c0_2 = arith.constant 0 : index
    %1 = vector.load %arg2[%c0_1, %c0_2] : memref<256x128xbf16, #tpu.memory_space<vmem>>, vector<256x128xbf16>
    %cst = arith.constant dense<0.000000e+00> : vector<32x128xf32>
    %2 = tpu.matmul %0, %1, %cst {dimension_numbers = #tpu.dot_dimension_numbers<[1], [0], [0], [1], [0, 0, 1, 1], [], []>} : vector<32x256xbf16>, vector<256x128xbf16>, vector<32x128xf32> -> vector<32x128xf32>
    %c0_3 = arith.constant 0 : index
    %c0_4 = arith.constant 0 : index
    %3 = vector.load %arg3[%c0_3, %c0_4] : memref<1x128xf32, #tpu.memory_space<vmem>>, vector<1x128xf32>
    %4 = vector.broadcast %3 : vector<1x128xf32> to vector<32x128xf32>
    %5 = arith.addf %2, %4 : vector<32x128xf32>
    %cst_5 = arith.constant 0.000000e+00 : f32
    %6 = vector.broadcast %cst_5 : f32 to vector<32x128xf32>
    %7 = arith.maximumf %5, %6 : vector<32x128xf32>
    %8 = math.absf %5 : vector<32x128xf32>
    %cst_6 = arith.constant 0.000000e+00 : f32
    %9 = vector.broadcast %cst_6 : f32 to vector<32x128xf32>
    %10 = arith.subf %9, %8 : vector<32x128xf32>
    %11 = math.exp %10 : vector<32x128xf32>
    %12 = math.log1p %11 : vector<32x128xf32>
    %13 = arith.addf %7, %12 : vector<32x128xf32>
    %14 = arith.truncf %13 : vector<32x128xf32> to vector<32x128xbf16>
    %c0_7 = arith.constant 0 : index
    %c0_8 = arith.constant 0 : index
    %15 = vector.load %arg4[%c0_7, %c0_8] : memref<128x128xbf16, #tpu.memory_space<vmem>>, vector<128x128xbf16>
    %cst_9 = arith.constant dense<0.000000e+00> : vector<32x128xf32>
    %16 = tpu.matmul %14, %15, %cst_9 {dimension_numbers = #tpu.dot_dimension_numbers<[1], [0], [0], [1], [0, 0, 1, 1], [], []>} : vector<32x128xbf16>, vector<128x128xbf16>, vector<32x128xf32> -> vector<32x128xf32>
    %c0_10 = arith.constant 0 : index
    %c0_11 = arith.constant 0 : index
    %17 = vector.load %arg5[%c0_10, %c0_11] : memref<1x128xf32, #tpu.memory_space<vmem>>, vector<1x128xf32>
    %18 = vector.broadcast %17 : vector<1x128xf32> to vector<32x128xf32>
    %19 = arith.addf %16, %18 : vector<32x128xf32>
    %cst_12 = arith.constant 0.000000e+00 : f32
    %20 = vector.broadcast %cst_12 : f32 to vector<32x128xf32>
    %21 = arith.maximumf %19, %20 : vector<32x128xf32>
    %22 = math.absf %19 : vector<32x128xf32>
    %cst_13 = arith.constant 0.000000e+00 : f32
    %23 = vector.broadcast %cst_13 : f32 to vector<32x128xf32>
    %24 = arith.subf %23, %22 : vector<32x128xf32>
    %25 = math.exp %24 : vector<32x128xf32>
    %26 = math.log1p %25 : vector<32x128xf32>
    %27 = arith.addf %21, %26 : vector<32x128xf32>
    %28 = arith.truncf %27 : vector<32x128xf32> to vector<32x128xbf16>
    %c0_14 = arith.constant 0 : index
    %c0_15 = arith.constant 0 : index
    %29 = vector.load %arg6[%c0_14, %c0_15] : memref<128x128xbf16, #tpu.memory_space<vmem>>, vector<128x128xbf16>
    %cst_16 = arith.constant dense<0.000000e+00> : vector<32x128xf32>
    %30 = tpu.matmul %28, %29, %cst_16 {dimension_numbers = #tpu.dot_dimension_numbers<[1], [0], [0], [1], [0, 0, 1, 1], [], []>} : vector<32x128xbf16>, vector<128x128xbf16>, vector<32x128xf32> -> vector<32x128xf32>
    %c0_17 = arith.constant 0 : index
    %c0_18 = arith.constant 0 : index
    %31 = vector.load %arg7[%c0_17, %c0_18] : memref<1x128xf32, #tpu.memory_space<vmem>>, vector<1x128xf32>
    %32 = vector.broadcast %31 : vector<1x128xf32> to vector<32x128xf32>
    %33 = arith.addf %30, %32 : vector<32x128xf32>
    %34 = vector.extract_strided_slice %33 {offsets = [0, 0], sizes = [32, 64], strides = [1, 1]} : vector<32x128xf32> to vector<32x64xf32>
    %35 = vector.extract_strided_slice %33 {offsets = [0, 64], sizes = [32, 64], strides = [1, 1]} : vector<32x128xf32> to vector<32x64xf32>
    %36 = math.exp %35 : vector<32x64xf32>
    %cst_19 = arith.constant dense<0xFF800000> : vector<32xf32>
    %37 = vector.multi_reduction <maximumf>, %34, %cst_19 [1] : vector<32x64xf32> to vector<32xf32>
    %38 = vector.shape_cast %37 : vector<32xf32> to vector<32x1xf32>
    %39 = vector.broadcast %38 : vector<32x1xf32> to vector<32x64xf32>
    %40 = arith.subf %34, %39 : vector<32x64xf32>
    %41 = math.exp %40 : vector<32x64xf32>
    %cst_20 = arith.constant dense<0.000000e+00> : vector<32xf32>
    %42 = vector.multi_reduction <add>, %41, %cst_20 [1] : vector<32x64xf32> to vector<32xf32>
    %43 = vector.shape_cast %42 : vector<32xf32> to vector<32x1xf32>
    %44 = tpu.reciprocal %43 {approx = true} : vector<32x1xf32> -> vector<32x1xf32>
    %45 = vector.broadcast %44 : vector<32x1xf32> to vector<32x64xf32>
    %46 = arith.mulf %41, %45 : vector<32x64xf32>
    %47 = arith.truncf %46 : vector<32x64xf32> to vector<32x64xbf16>
    %c0_21 = arith.constant 0 : index
    %c0_22 = arith.constant 0 : index
    %48 = vector.load %arg8[%c0_21, %c0_22] : memref<64x256xbf16, #tpu.memory_space<vmem>>, vector<64x256xbf16>
    %cst_23 = arith.constant dense<0.000000e+00> : vector<32x256xf32>
    %49 = tpu.matmul %47, %48, %cst_23 {dimension_numbers = #tpu.dot_dimension_numbers<[1], [0], [0], [1], [0, 0, 1, 1], [], []>} : vector<32x64xbf16>, vector<64x256xbf16>, vector<32x256xf32> -> vector<32x256xf32>
    %c0_24 = arith.constant 0 : index
    %c0_25 = arith.constant 0 : index
    %50 = vector.load %arg9[%c0_24, %c0_25] : memref<1x256xf32, #tpu.memory_space<vmem>>, vector<1x256xf32>
    %51 = vector.broadcast %50 : vector<1x256xf32> to vector<32x256xf32>
    %52 = arith.addf %49, %51 : vector<32x256xf32>
    %cst_26 = arith.constant dense<0xFF800000> : vector<32xf32>
    %53 = vector.multi_reduction <maximumf>, %52, %cst_26 [1] : vector<32x256xf32> to vector<32xf32>
    %54 = vector.shape_cast %53 : vector<32xf32> to vector<32x1xf32>
    %55 = vector.broadcast %54 : vector<32x1xf32> to vector<32x256xf32>
    %56 = arith.subf %52, %55 : vector<32x256xf32>
    %57 = math.exp %56 : vector<32x256xf32>
    %cst_27 = arith.constant dense<0.000000e+00> : vector<32xf32>
    %58 = vector.multi_reduction <add>, %57, %cst_27 [1] : vector<32x256xf32> to vector<32xf32>
    %59 = vector.shape_cast %58 : vector<32xf32> to vector<32x1xf32>
    %60 = tpu.reciprocal %59 {approx = true} : vector<32x1xf32> -> vector<32x1xf32>
    %61 = vector.broadcast %60 : vector<32x1xf32> to vector<32x256xf32>
    %62 = arith.mulf %57, %61 : vector<32x256xf32>
    %63 = vector.broadcast %54 : vector<32x1xf32> to vector<32x256xf32>
    %64 = arith.subf %52, %63 : vector<32x256xf32>
    %65 = math.log %59 : vector<32x1xf32>
    %66 = vector.broadcast %65 : vector<32x1xf32> to vector<32x256xf32>
    %67 = arith.subf %64, %66 : vector<32x256xf32>
    %68 = arith.extf %0 : vector<32x256xbf16> to vector<32x256xf32>
    %69 = arith.mulf %68, %67 : vector<32x256xf32>
    %cst_28 = arith.constant dense<0.000000e+00> : vector<32xf32>
    %70 = vector.multi_reduction <add>, %69, %cst_28 [1] : vector<32x256xf32> to vector<32xf32>
    %71 = vector.shape_cast %70 : vector<32xf32> to vector<32x1xf32>
    %cst_29 = arith.constant 0.000000e+00 : f32
    %72 = vector.broadcast %cst_29 : f32 to vector<32x1xf32>
    %73 = arith.subf %72, %71 : vector<32x1xf32>
    %c0_30 = arith.constant 0 : index
    %c0_31 = arith.constant 0 : index
    %74 = vector.load %arg10[%c0_30, %c0_31] : memref<3x64xf32, #tpu.memory_space<vmem>>, vector<1x64xf32>
    %c1 = arith.constant 1 : index
    %c0_32 = arith.constant 0 : index
    %75 = vector.load %arg10[%c1, %c0_32] : memref<3x64xf32, #tpu.memory_space<vmem>>, vector<1x64xf32>
    %c2 = arith.constant 2 : index
    %c0_33 = arith.constant 0 : index
    %76 = vector.load %arg10[%c2, %c0_33] : memref<3x64xf32, #tpu.memory_space<vmem>>, vector<1x64xf32>
    %77 = vector.broadcast %74 : vector<1x64xf32> to vector<32x64xf32>
    %78 = arith.subf %34, %77 : vector<32x64xf32>
    %79 = vector.broadcast %75 : vector<1x64xf32> to vector<32x64xf32>
    %80 = arith.mulf %36, %79 : vector<32x64xf32>
    %81 = arith.mulf %78, %78 : vector<32x64xf32>
    %82 = vector.broadcast %75 : vector<1x64xf32> to vector<32x64xf32>
    %83 = arith.mulf %81, %82 : vector<32x64xf32>
    %84 = arith.addf %80, %83 : vector<32x64xf32>
    %85 = vector.broadcast %76 : vector<1x64xf32> to vector<32x64xf32>
    %86 = arith.addf %84, %85 : vector<32x64xf32>
    %87 = arith.subf %86, %35 : vector<32x64xf32>
    %cst_34 = arith.constant dense<0.000000e+00> : vector<32xf32>
    %88 = vector.multi_reduction <add>, %87, %cst_34 [1] : vector<32x64xf32> to vector<32xf32>
    %89 = vector.shape_cast %88 : vector<32xf32> to vector<32x1xf32>
    %cst_35 = arith.constant 6.400000e+01 : f32
    %90 = vector.broadcast %cst_35 : f32 to vector<32x1xf32>
    %91 = arith.subf %89, %90 : vector<32x1xf32>
    %cst_36 = arith.constant 5.000000e-01 : f32
    %92 = vector.broadcast %cst_36 : f32 to vector<32x1xf32>
    %93 = arith.mulf %92, %91 : vector<32x1xf32>
    %94 = arith.addf %73, %93 : vector<32x1xf32>
    %c0_37 = arith.constant 0 : index
    %c0_38 = arith.constant 0 : index
    %95 = vector.load %arg11[%c0_37, %c0_38] : memref<32x64xf32, #tpu.memory_space<vmem>>, vector<32x64xf32>
    tpu.vector_store %arg11[%c0_37, %c0_38], %34 {strides = array<i32>} : memref<32x64xf32, #tpu.memory_space<vmem>>, vector<32x64xf32>,
    %96 = arith.truncf %62 : vector<32x256xf32> to vector<32x256xbf16>
    %c0_39 = arith.constant 0 : index
    %c0_40 = arith.constant 0 : index
    %97 = vector.load %arg12[%c0_39, %c0_40] : memref<32x256xbf16, #tpu.memory_space<vmem>>, vector<32x256xbf16>
    tpu.vector_store %arg12[%c0_39, %c0_40], %96 {strides = array<i32>} : memref<32x256xbf16, #tpu.memory_space<vmem>>, vector<32x256xbf16>,
    %98 = tpu.iota {dimensions = array<i32: 1>} : vector<32x128xi32>
    %c0_i32 = arith.constant 0 : i32
    %99 = vector.broadcast %c0_i32 : i32 to vector<32x128xi32>
    %100 = arith.cmpi eq, %98, %99 : vector<32x128xi32>
    %cst_41 = arith.constant 0.000000e+00 : f32
    %101 = vector.shape_cast %73 : vector<32x1xf32> to vector<32x1xf32>
    %102 = vector.broadcast %101 : vector<32x1xf32> to vector<32x128xf32>
    %103 = vector.broadcast %cst_41 : f32 to vector<32x128xf32>
    %104 = arith.select %100, %102, %103 : vector<32x128xi1>, vector<32x128xf32>
    %c1_i32 = arith.constant 1 : i32
    %105 = vector.broadcast %c1_i32 : i32 to vector<32x128xi32>
    %106 = arith.cmpi eq, %98, %105 : vector<32x128xi32>
    %cst_42 = arith.constant 0.000000e+00 : f32
    %107 = vector.shape_cast %93 : vector<32x1xf32> to vector<32x1xf32>
    %108 = vector.broadcast %107 : vector<32x1xf32> to vector<32x128xf32>
    %109 = vector.broadcast %cst_42 : f32 to vector<32x128xf32>
    %110 = arith.select %106, %108, %109 : vector<32x128xi1>, vector<32x128xf32>
    %111 = arith.addf %104, %110 : vector<32x128xf32>
    %c2_i32 = arith.constant 2 : i32
    %112 = vector.broadcast %c2_i32 : i32 to vector<32x128xi32>
    %113 = arith.cmpi eq, %98, %112 : vector<32x128xi32>
    %cst_43 = arith.constant 0.000000e+00 : f32
    %114 = vector.shape_cast %94 : vector<32x1xf32> to vector<32x1xf32>
    %115 = vector.broadcast %114 : vector<32x1xf32> to vector<32x128xf32>
    %116 = vector.broadcast %cst_43 : f32 to vector<32x128xf32>
    %117 = arith.select %113, %115, %116 : vector<32x128xi1>, vector<32x128xf32>
    %118 = arith.addf %111, %117 : vector<32x128xf32>
    %c0_44 = arith.constant 0 : index
    %c0_45 = arith.constant 0 : index
    %119 = vector.load %arg13[%c0_44, %c0_45] : memref<32x128xf32, #tpu.memory_space<vmem>>, vector<32x128xf32>
    tpu.vector_store %arg13[%c0_44, %c0_45], %118 {strides = array<i32>} : memref<32x128xf32, #tpu.memory_space<vmem>>, vector<32x128xf32>,
    return
  }
  func.func @transform_0(%arg0: i32) -> (i32, i32) {
    %c0_i32 = arith.constant 0 : i32
    %c0_i32_0 = arith.constant 0 : i32
    return %arg0, %c0_i32 : i32, i32
  }
  func.func @transform_1(%arg0: i32) -> (i32, i32) {
    %c0_i32 = arith.constant 0 : i32
    %c0_i32_0 = arith.constant 0 : i32
    %c0_i32_1 = arith.constant 0 : i32
    return %c0_i32, %c0_i32_0 : i32, i32
  }
  func.func @transform_2(%arg0: i32) -> (i32, i32) {
    %c0_i32 = arith.constant 0 : i32
    %c0_i32_0 = arith.constant 0 : i32
    %c0_i32_1 = arith.constant 0 : i32
    return %c0_i32, %c0_i32_0 : i32, i32
  }
  func.func @transform_3(%arg0: i32) -> (i32, i32) {
    %c0_i32 = arith.constant 0 : i32
    %c0_i32_0 = arith.constant 0 : i32
    %c0_i32_1 = arith.constant 0 : i32
    return %c0_i32, %c0_i32_0 : i32, i32
  }
  func.func @transform_4(%arg0: i32) -> (i32, i32) {
    %c0_i32 = arith.constant 0 : i32
    %c0_i32_0 = arith.constant 0 : i32
    %c0_i32_1 = arith.constant 0 : i32
    return %c0_i32, %c0_i32_0 : i32, i32
  }
  func.func @transform_5(%arg0: i32) -> (i32, i32) {
    %c0_i32 = arith.constant 0 : i32
    %c0_i32_0 = arith.constant 0 : i32
    %c0_i32_1 = arith.constant 0 : i32
    return %c0_i32, %c0_i32_0 : i32, i32
  }
  func.func @transform_6(%arg0: i32) -> (i32, i32) {
    %c0_i32 = arith.constant 0 : i32
    %c0_i32_0 = arith.constant 0 : i32
    %c0_i32_1 = arith.constant 0 : i32
    return %c0_i32, %c0_i32_0 : i32, i32
  }
  func.func @transform_7(%arg0: i32) -> (i32, i32) {
    %c0_i32 = arith.constant 0 : i32
    %c0_i32_0 = arith.constant 0 : i32
    %c0_i32_1 = arith.constant 0 : i32
    return %c0_i32, %c0_i32_0 : i32, i32
  }
  func.func @transform_8(%arg0: i32) -> (i32, i32) {
    %c0_i32 = arith.constant 0 : i32
    %c0_i32_0 = arith.constant 0 : i32
    %c0_i32_1 = arith.constant 0 : i32
    return %c0_i32, %c0_i32_0 : i32, i32
  }
  func.func @transform_9(%arg0: i32) -> (i32, i32) {
    %c0_i32 = arith.constant 0 : i32
    %c0_i32_0 = arith.constant 0 : i32
    %c0_i32_1 = arith.constant 0 : i32
    return %c0_i32, %c0_i32_0 : i32, i32
  }
  func.func @transform_10(%arg0: i32) -> (i32, i32) {
    %c0_i32 = arith.constant 0 : i32
    %c0_i32_0 = arith.constant 0 : i32
    return %arg0, %c0_i32 : i32, i32
  }
  func.func @transform_11(%arg0: i32) -> (i32, i32) {
    %c0_i32 = arith.constant 0 : i32
    %c0_i32_0 = arith.constant 0 : i32
    return %arg0, %c0_i32 : i32, i32
  }
  func.func @transform_12(%arg0: i32) -> (i32, i32) {
    %c0_i32 = arith.constant 0 : i32
    %c0_i32_0 = arith.constant 0 : i32
    return %arg0, %c0_i32 : i32, i32
  }
}

module attributes {stable_mosaic.version = 11 : i64} {
  func.func @prodlda_kernel(%arg0: i32, %arg1: memref<32x256xbf16, #tpu.memory_space<vmem>>, %arg2: memref<256x128xbf16, #tpu.memory_space<vmem>>, %arg3: memref<1x128xf32, #tpu.memory_space<vmem>>, %arg4: memref<128x128xbf16, #tpu.memory_space<vmem>>, %arg5: memref<1x128xf32, #tpu.memory_space<vmem>>, %arg6: memref<128x128xbf16, #tpu.memory_space<vmem>>, %arg7: memref<1x128xf32, #tpu.memory_space<vmem>>, %arg8: memref<64x256xbf16, #tpu.memory_space<vmem>>, %arg9: memref<1x256xf32, #tpu.memory_space<vmem>>, %arg10: memref<3x64xf32, #tpu.memory_space<vmem>>, %arg11: memref<32x64xf32, #tpu.memory_space<vmem>>, %arg12: memref<32x256xbf16, #tpu.memory_space<vmem>>, %arg13: memref<32x128xf32, #tpu.memory_space<vmem>>) attributes {dimension_semantics = [#tpu.dimension_semantics<parallel>], iteration_bounds = array<i64: 2>, scalar_prefetch = 0 : i64, scratch_operands = 0 : i64, tpu.core_type = #tpu.core_type<tc>, window_params = [{transform_indices = @transform_0, window_bounds = array<i64: 32, 256>}, {pipeline_mode = #tpu.pipeline_mode<synchronous>, transform_indices = @transform_1, window_bounds = array<i64: 256, 128>}, {pipeline_mode = #tpu.pipeline_mode<synchronous>, transform_indices = @transform_2, window_bounds = array<i64: 1, 128>}, {pipeline_mode = #tpu.pipeline_mode<synchronous>, transform_indices = @transform_3, window_bounds = array<i64: 128, 128>}, {pipeline_mode = #tpu.pipeline_mode<synchronous>, transform_indices = @transform_4, window_bounds = array<i64: 1, 128>}, {pipeline_mode = #tpu.pipeline_mode<synchronous>, transform_indices = @transform_5, window_bounds = array<i64: 128, 128>}, {pipeline_mode = #tpu.pipeline_mode<synchronous>, transform_indices = @transform_6, window_bounds = array<i64: 1, 128>}, {pipeline_mode = #tpu.pipeline_mode<synchronous>, transform_indices = @transform_7, window_bounds = array<i64: 64, 256>}, {pipeline_mode = #tpu.pipeline_mode<synchronous>, transform_indices = @transform_8, window_bounds = array<i64: 1, 256>}, {pipeline_mode = #tpu.pipeline_mode<synchronous>, transform_indices = @transform_9, window_bounds = array<i64: 3, 64>}, {transform_indices = @transform_10, window_bounds = array<i64: 32, 64>}, {transform_indices = @transform_11, window_bounds = array<i64: 32, 256>}, {transform_indices = @transform_12, window_bounds = array<i64: 32, 128>}]} {
    %c0 = arith.constant 0 : index
    %c0_0 = arith.constant 0 : index
    %0 = vector.load %arg1[%c0, %c0_0] : memref<32x256xbf16, #tpu.memory_space<vmem>>, vector<32x256xbf16>
    %c0_1 = arith.constant 0 : index
    %c0_2 = arith.constant 0 : index
    %1 = vector.load %arg2[%c0_1, %c0_2] : memref<256x128xbf16, #tpu.memory_space<vmem>>, vector<256x128xbf16>
    %cst = arith.constant dense<0.000000e+00> : vector<32x128xf32>
    %2 = tpu.matmul %0, %1, %cst {dimension_numbers = #tpu.dot_dimension_numbers<[1], [0], [0], [1], [0, 0, 1, 1], [], []>} : vector<32x256xbf16>, vector<256x128xbf16>, vector<32x128xf32> -> vector<32x128xf32>
    %c0_3 = arith.constant 0 : index
    %c0_4 = arith.constant 0 : index
    %3 = vector.load %arg3[%c0_3, %c0_4] : memref<1x128xf32, #tpu.memory_space<vmem>>, vector<1x128xf32>
    %4 = vector.broadcast %3 : vector<1x128xf32> to vector<32x128xf32>
    %5 = arith.addf %2, %4 : vector<32x128xf32>
    %cst_5 = arith.constant 0.000000e+00 : f32
    %6 = vector.broadcast %cst_5 : f32 to vector<32x128xf32>
    %7 = arith.maximumf %5, %6 : vector<32x128xf32>
    %8 = math.absf %5 : vector<32x128xf32>
    %cst_6 = arith.constant 0.000000e+00 : f32
    %9 = vector.broadcast %cst_6 : f32 to vector<32x128xf32>
    %10 = arith.subf %9, %8 : vector<32x128xf32>
    %11 = math.exp %10 : vector<32x128xf32>
    %12 = math.log1p %11 : vector<32x128xf32>
    %13 = arith.addf %7, %12 : vector<32x128xf32>
    %14 = arith.truncf %13 : vector<32x128xf32> to vector<32x128xbf16>
    %c0_7 = arith.constant 0 : index
    %c0_8 = arith.constant 0 : index
    %15 = vector.load %arg4[%c0_7, %c0_8] : memref<128x128xbf16, #tpu.memory_space<vmem>>, vector<128x128xbf16>
    %cst_9 = arith.constant dense<0.000000e+00> : vector<32x128xf32>
    %16 = tpu.matmul %14, %15, %cst_9 {dimension_numbers = #tpu.dot_dimension_numbers<[1], [0], [0], [1], [0, 0, 1, 1], [], []>} : vector<32x128xbf16>, vector<128x128xbf16>, vector<32x128xf32> -> vector<32x128xf32>
    %c0_10 = arith.constant 0 : index
    %c0_11 = arith.constant 0 : index
    %17 = vector.load %arg5[%c0_10, %c0_11] : memref<1x128xf32, #tpu.memory_space<vmem>>, vector<1x128xf32>
    %18 = vector.broadcast %17 : vector<1x128xf32> to vector<32x128xf32>
    %19 = arith.addf %16, %18 : vector<32x128xf32>
    %cst_12 = arith.constant 0.000000e+00 : f32
    %20 = vector.broadcast %cst_12 : f32 to vector<32x128xf32>
    %21 = arith.maximumf %19, %20 : vector<32x128xf32>
    %22 = math.absf %19 : vector<32x128xf32>
    %cst_13 = arith.constant 0.000000e+00 : f32
    %23 = vector.broadcast %cst_13 : f32 to vector<32x128xf32>
    %24 = arith.subf %23, %22 : vector<32x128xf32>
    %25 = math.exp %24 : vector<32x128xf32>
    %26 = math.log1p %25 : vector<32x128xf32>
    %27 = arith.addf %21, %26 : vector<32x128xf32>
    %28 = arith.truncf %27 : vector<32x128xf32> to vector<32x128xbf16>
    %c0_14 = arith.constant 0 : index
    %c0_15 = arith.constant 0 : index
    %29 = vector.load %arg6[%c0_14, %c0_15] : memref<128x128xbf16, #tpu.memory_space<vmem>>, vector<128x128xbf16>
    %cst_16 = arith.constant dense<0.000000e+00> : vector<32x128xf32>
    %30 = tpu.matmul %28, %29, %cst_16 {dimension_numbers = #tpu.dot_dimension_numbers<[1], [0], [0], [1], [0, 0, 1, 1], [], []>} : vector<32x128xbf16>, vector<128x128xbf16>, vector<32x128xf32> -> vector<32x128xf32>
    %c0_17 = arith.constant 0 : index
    %c0_18 = arith.constant 0 : index
    %31 = vector.load %arg7[%c0_17, %c0_18] : memref<1x128xf32, #tpu.memory_space<vmem>>, vector<1x128xf32>
    %32 = vector.broadcast %31 : vector<1x128xf32> to vector<32x128xf32>
    %33 = arith.addf %30, %32 : vector<32x128xf32>
    %34 = vector.extract_strided_slice %33 {offsets = [0, 0], sizes = [32, 64], strides = [1, 1]} : vector<32x128xf32> to vector<32x64xf32>
    %35 = vector.extract_strided_slice %33 {offsets = [0, 64], sizes = [32, 64], strides = [1, 1]} : vector<32x128xf32> to vector<32x64xf32>
    %36 = math.exp %35 : vector<32x64xf32>
    %cst_19 = arith.constant dense<0xFF800000> : vector<32xf32>
    %37 = vector.multi_reduction <maximumf>, %34, %cst_19 [1] : vector<32x64xf32> to vector<32xf32>
    %38 = vector.shape_cast %37 : vector<32xf32> to vector<32x1xf32>
    %39 = vector.broadcast %38 : vector<32x1xf32> to vector<32x64xf32>
    %40 = arith.subf %34, %39 : vector<32x64xf32>
    %41 = math.exp %40 : vector<32x64xf32>
    %cst_20 = arith.constant dense<0.000000e+00> : vector<32xf32>
    %42 = vector.multi_reduction <add>, %41, %cst_20 [1] : vector<32x64xf32> to vector<32xf32>
    %43 = vector.shape_cast %42 : vector<32xf32> to vector<32x1xf32>
    %44 = tpu.reciprocal %43 {approx = true} : vector<32x1xf32> -> vector<32x1xf32>
    %45 = vector.broadcast %44 : vector<32x1xf32> to vector<32x64xf32>
    %46 = arith.mulf %41, %45 : vector<32x64xf32>
    %47 = arith.truncf %46 : vector<32x64xf32> to vector<32x64xbf16>
    %c0_21 = arith.constant 0 : index
    %c0_22 = arith.constant 0 : index
    %48 = vector.load %arg8[%c0_21, %c0_22] : memref<64x256xbf16, #tpu.memory_space<vmem>>, vector<64x256xbf16>
    %cst_23 = arith.constant dense<0.000000e+00> : vector<32x256xf32>
    %49 = tpu.matmul %47, %48, %cst_23 {dimension_numbers = #tpu.dot_dimension_numbers<[1], [0], [0], [1], [0, 0, 1, 1], [], []>} : vector<32x64xbf16>, vector<64x256xbf16>, vector<32x256xf32> -> vector<32x256xf32>
    %c0_24 = arith.constant 0 : index
    %c0_25 = arith.constant 0 : index
    %50 = vector.load %arg9[%c0_24, %c0_25] : memref<1x256xf32, #tpu.memory_space<vmem>>, vector<1x256xf32>
    %51 = vector.broadcast %50 : vector<1x256xf32> to vector<32x256xf32>
    %52 = arith.addf %49, %51 : vector<32x256xf32>
    %cst_26 = arith.constant dense<0xFF800000> : vector<32xf32>
    %53 = vector.multi_reduction <maximumf>, %52, %cst_26 [1] : vector<32x256xf32> to vector<32xf32>
    %54 = vector.shape_cast %53 : vector<32xf32> to vector<32x1xf32>
    %55 = vector.broadcast %54 : vector<32x1xf32> to vector<32x256xf32>
    %56 = arith.subf %52, %55 : vector<32x256xf32>
    %57 = math.exp %56 : vector<32x256xf32>
    %cst_27 = arith.constant dense<0.000000e+00> : vector<32xf32>
    %58 = vector.multi_reduction <add>, %57, %cst_27 [1] : vector<32x256xf32> to vector<32xf32>
    %59 = vector.shape_cast %58 : vector<32xf32> to vector<32x1xf32>
    %60 = tpu.reciprocal %59 {approx = true} : vector<32x1xf32> -> vector<32x1xf32>
    %61 = vector.broadcast %60 : vector<32x1xf32> to vector<32x256xf32>
    %62 = arith.mulf %57, %61 : vector<32x256xf32>
    %63 = vector.broadcast %54 : vector<32x1xf32> to vector<32x256xf32>
    %64 = arith.subf %52, %63 : vector<32x256xf32>
    %65 = math.log %59 : vector<32x1xf32>
    %66 = vector.broadcast %65 : vector<32x1xf32> to vector<32x256xf32>
    %67 = arith.subf %64, %66 : vector<32x256xf32>
    %68 = arith.extf %0 : vector<32x256xbf16> to vector<32x256xf32>
    %69 = arith.mulf %68, %67 : vector<32x256xf32>
    %cst_28 = arith.constant dense<0.000000e+00> : vector<32xf32>
    %70 = vector.multi_reduction <add>, %69, %cst_28 [1] : vector<32x256xf32> to vector<32xf32>
    %71 = vector.shape_cast %70 : vector<32xf32> to vector<32x1xf32>
    %cst_29 = arith.constant 0.000000e+00 : f32
    %72 = vector.broadcast %cst_29 : f32 to vector<32x1xf32>
    %73 = arith.subf %72, %71 : vector<32x1xf32>
    %c0_30 = arith.constant 0 : index
    %c0_31 = arith.constant 0 : index
    %74 = vector.load %arg10[%c0_30, %c0_31] : memref<3x64xf32, #tpu.memory_space<vmem>>, vector<1x64xf32>
    %c1 = arith.constant 1 : index
    %c0_32 = arith.constant 0 : index
    %75 = vector.load %arg10[%c1, %c0_32] : memref<3x64xf32, #tpu.memory_space<vmem>>, vector<1x64xf32>
    %c2 = arith.constant 2 : index
    %c0_33 = arith.constant 0 : index
    %76 = vector.load %arg10[%c2, %c0_33] : memref<3x64xf32, #tpu.memory_space<vmem>>, vector<1x64xf32>
    %77 = vector.broadcast %74 : vector<1x64xf32> to vector<32x64xf32>
    %78 = arith.subf %34, %77 : vector<32x64xf32>
    %79 = vector.broadcast %75 : vector<1x64xf32> to vector<32x64xf32>
    %80 = arith.mulf %36, %79 : vector<32x64xf32>
    %81 = arith.mulf %78, %78 : vector<32x64xf32>
    %82 = vector.broadcast %75 : vector<1x64xf32> to vector<32x64xf32>
    %83 = arith.mulf %81, %82 : vector<32x64xf32>
    %84 = arith.addf %80, %83 : vector<32x64xf32>
    %85 = vector.broadcast %76 : vector<1x64xf32> to vector<32x64xf32>
    %86 = arith.addf %84, %85 : vector<32x64xf32>
    %87 = arith.subf %86, %35 : vector<32x64xf32>
    %cst_34 = arith.constant dense<0.000000e+00> : vector<32xf32>
    %88 = vector.multi_reduction <add>, %87, %cst_34 [1] : vector<32x64xf32> to vector<32xf32>
    %89 = vector.shape_cast %88 : vector<32xf32> to vector<32x1xf32>
    %cst_35 = arith.constant 6.400000e+01 : f32
    %90 = vector.broadcast %cst_35 : f32 to vector<32x1xf32>
    %91 = arith.subf %89, %90 : vector<32x1xf32>
    %cst_36 = arith.constant 5.000000e-01 : f32
    %92 = vector.broadcast %cst_36 : f32 to vector<32x1xf32>
    %93 = arith.mulf %92, %91 : vector<32x1xf32>
    %94 = arith.addf %73, %93 : vector<32x1xf32>
    %c0_37 = arith.constant 0 : index
    %c0_38 = arith.constant 0 : index
    %95 = vector.load %arg11[%c0_37, %c0_38] : memref<32x64xf32, #tpu.memory_space<vmem>>, vector<32x64xf32>
    tpu.vector_store %arg11[%c0_37, %c0_38], %34 {strides = array<i32>} : memref<32x64xf32, #tpu.memory_space<vmem>>, vector<32x64xf32>,
    %96 = arith.truncf %62 : vector<32x256xf32> to vector<32x256xbf16>
    %c0_39 = arith.constant 0 : index
    %c0_40 = arith.constant 0 : index
    %97 = vector.load %arg12[%c0_39, %c0_40] : memref<32x256xbf16, #tpu.memory_space<vmem>>, vector<32x256xbf16>
    tpu.vector_store %arg12[%c0_39, %c0_40], %96 {strides = array<i32>} : memref<32x256xbf16, #tpu.memory_space<vmem>>, vector<32x256xbf16>,
    %98 = tpu.iota {dimensions = array<i32: 1>} : vector<32x128xi32>
    %c0_i32 = arith.constant 0 : i32
    %99 = vector.broadcast %c0_i32 : i32 to vector<32x128xi32>
    %100 = arith.cmpi eq, %98, %99 : vector<32x128xi32>
    %cst_41 = arith.constant 0.000000e+00 : f32
    %101 = vector.shape_cast %73 : vector<32x1xf32> to vector<32x1xf32>
    %102 = vector.broadcast %101 : vector<32x1xf32> to vector<32x128xf32>
    %103 = vector.broadcast %cst_41 : f32 to vector<32x128xf32>
    %104 = arith.select %100, %102, %103 : vector<32x128xi1>, vector<32x128xf32>
    %c1_i32 = arith.constant 1 : i32
    %105 = vector.broadcast %c1_i32 : i32 to vector<32x128xi32>
    %106 = arith.cmpi eq, %98, %105 : vector<32x128xi32>
    %cst_42 = arith.constant 0.000000e+00 : f32
    %107 = vector.shape_cast %93 : vector<32x1xf32> to vector<32x1xf32>
    %108 = vector.broadcast %107 : vector<32x1xf32> to vector<32x128xf32>
    %109 = vector.broadcast %cst_42 : f32 to vector<32x128xf32>
    %110 = arith.select %106, %108, %109 : vector<32x128xi1>, vector<32x128xf32>
    %111 = arith.addf %104, %110 : vector<32x128xf32>
    %c2_i32 = arith.constant 2 : i32
    %112 = vector.broadcast %c2_i32 : i32 to vector<32x128xi32>
    %113 = arith.cmpi eq, %98, %112 : vector<32x128xi32>
    %cst_43 = arith.constant 0.000000e+00 : f32
    %114 = vector.shape_cast %94 : vector<32x1xf32> to vector<32x1xf32>
    %115 = vector.broadcast %114 : vector<32x1xf32> to vector<32x128xf32>
    %116 = vector.broadcast %cst_43 : f32 to vector<32x128xf32>
    %117 = arith.select %113, %115, %116 : vector<32x128xi1>, vector<32x128xf32>
    %118 = arith.addf %111, %117 : vector<32x128xf32>
    %c0_44 = arith.constant 0 : index
    %c0_45 = arith.constant 0 : index
    %119 = vector.load %arg13[%c0_44, %c0_45] : memref<32x128xf32, #tpu.memory_space<vmem>>, vector<32x128xf32>
    tpu.vector_store %arg13[%c0_44, %c0_45], %118 {strides = array<i32>} : memref<32x128xf32, #tpu.memory_space<vmem>>, vector<32x128xf32>,
    return
  }
  func.func @transform_0(%arg0: i32) -> (i32, i32) {
    %c0_i32 = arith.constant 0 : i32
    %c0_i32_0 = arith.constant 0 : i32
    return %arg0, %c0_i32 : i32, i32
  }
  func.func @transform_1(%arg0: i32) -> (i32, i32) {
    %c0_i32 = arith.constant 0 : i32
    %c0_i32_0 = arith.constant 0 : i32
    %c0_i32_1 = arith.constant 0 : i32
    return %c0_i32, %c0_i32_0 : i32, i32
  }
  func.func @transform_2(%arg0: i32) -> (i32, i32) {
    %c0_i32 = arith.constant 0 : i32
    %c0_i32_0 = arith.constant 0 : i32
    %c0_i32_1 = arith.constant 0 : i32
    return %c0_i32, %c0_i32_0 : i32, i32
  }
  func.func @transform_3(%arg0: i32) -> (i32, i32) {
    %c0_i32 = arith.constant 0 : i32
    %c0_i32_0 = arith.constant 0 : i32
    %c0_i32_1 = arith.constant 0 : i32
    return %c0_i32, %c0_i32_0 : i32, i32
  }
  func.func @transform_4(%arg0: i32) -> (i32, i32) {
    %c0_i32 = arith.constant 0 : i32
    %c0_i32_0 = arith.constant 0 : i32
    %c0_i32_1 = arith.constant 0 : i32
    return %c0_i32, %c0_i32_0 : i32, i32
  }
  func.func @transform_5(%arg0: i32) -> (i32, i32) {
    %c0_i32 = arith.constant 0 : i32
    %c0_i32_0 = arith.constant 0 : i32
    %c0_i32_1 = arith.constant 0 : i32
    return %c0_i32, %c0_i32_0 : i32, i32
  }
  func.func @transform_6(%arg0: i32) -> (i32, i32) {
    %c0_i32 = arith.constant 0 : i32
    %c0_i32_0 = arith.constant 0 : i32
    %c0_i32_1 = arith.constant 0 : i32
    return %c0_i32, %c0_i32_0 : i32, i32
  }
  func.func @transform_7(%arg0: i32) -> (i32, i32) {
    %c0_i32 = arith.constant 0 : i32
    %c0_i32_0 = arith.constant 0 : i32
    %c0_i32_1 = arith.constant 0 : i32
    return %c0_i32, %c0_i32_0 : i32, i32
  }
  func.func @transform_8(%arg0: i32) -> (i32, i32) {
    %c0_i32 = arith.constant 0 : i32
    %c0_i32_0 = arith.constant 0 : i32
    %c0_i32_1 = arith.constant 0 : i32
    return %c0_i32, %c0_i32_0 : i32, i32
  }
  func.func @transform_9(%arg0: i32) -> (i32, i32) {
    %c0_i32 = arith.constant 0 : i32
    %c0_i32_0 = arith.constant 0 : i32
    %c0_i32_1 = arith.constant 0 : i32
    return %c0_i32, %c0_i32_0 : i32, i32
  }
  func.func @transform_10(%arg0: i32) -> (i32, i32) {
    %c0_i32 = arith.constant 0 : i32
    %c0_i32_0 = arith.constant 0 : i32
    return %arg0, %c0_i32 : i32, i32
  }
  func.func @transform_11(%arg0: i32) -> (i32, i32) {
    %c0_i32 = arith.constant 0 : i32
    %c0_i32_0 = arith.constant 0 : i32
    return %arg0, %c0_i32 : i32, i32
  }
  func.func @transform_12(%arg0: i32) -> (i32, i32) {
    %c0_i32 = arith.constant 0 : i32
    %c0_i32_0 = arith.constant 0 : i32
    return %arg0, %c0_i32 : i32, i32
  }
}

</mosaic_0001>

<bundles_post_ra>
// kernel: tpu_custom_call.1
= control target key start
LH: loop header
LB: loop body
LE: loop exit
PB: predicated region body
PF: predicated region fallthrough
CT: control target
= control target key end

     0   :  { %s3152_s0 = inlined_call_operand.hbm [shape: bf16[64,256], index: 0, kind: input, shape index: {}]   ;;  %s3153_s1 = inlined_call_operand.hbm [shape: bf16[256,128], index: 1, kind: input, shape index: {}]   ;;  %s3154_s2 = inlined_call_operand.vmem [shape: f32[1,128], index: 2, kind: input, shape index: {}]   ;;  %s3155_s3 = inlined_call_operand.hbm [shape: bf16[128,128], index: 3, kind: input, shape index: {}]   ;;  %s3156_s4 = inlined_call_operand.vmem [shape: f32[1,128], index: 4, kind: input, shape index: {}]   ;;  %s3157_s5 = inlined_call_operand.hbm [shape: bf16[128,128], index: 5, kind: input, shape index: {}]   ;;  %s3158_s6 = inlined_call_operand.vmem [shape: f32[1,128], index: 6, kind: input, shape index: {}]   ;;  %s3159_s7 = inlined_call_operand.hbm [shape: bf16[64,256], index: 7, kind: input, shape index: {}]   ;;  %s3160_s8 = inlined_call_operand.vmem [shape: f32[1,256], index: 8, kind: input, shape index: {}]   ;;  %s3161_s9 = inlined_call_operand.vmem [shape: f32[3,64], index: 9, kind: input, shape index: {}]   ;;  %s3162_s10 = inlined_call_operand.hbm [shape: f32[64,64], index: 10, kind: output, shape index: {0}]   ;;  %s3163_s11 = inlined_call_operand.hbm [shape: bf16[64,256], index: 11, kind: output, shape index: {1}]   ;;  %s3164_s12 = inlined_call_operand.hbm [shape: f32[64,128], index: 12, kind: output, shape index: {2}]  }
   0x1   :  { %3175 = sst [smem:[#allocation22_spill]] %s3152_s0 }
   0x2   :  { %3176 = sst [smem:[#allocation23_spill]] %s3153_s1 }
   0x3   :  { %3177 = sst [smem:[#allocation24_spill]] %s3154_s2 }
   0x4   :  { %3178 = sst [smem:[#allocation25_spill]] %s3155_s3 }
   0x5   :  { %3179 = sst [smem:[#allocation26_spill]] %s3161_s9 }
   0x6   :  { %3180 = sst [smem:[#allocation27_spill]] %s3162_s10 }
   0x7   :  { %3181 = sst [smem:[#allocation28_spill]] %s3163_s11 }
   0x8   :  { %3182 = sst [smem:[#allocation29_spill]] %s3164_s12 }
   0x9   :  { %18 = vsyncpa [#allocation3], 0 }
   0xa   :  { %20 = vsyncpa [#allocation3 + $0x1], 0 }
   0xb   :  { %21 = vsyncpa [#allocation6], 0 }
   0xc   :  { %22 = vsyncpa [#allocation9], 0 }
   0xd   :  { %23 = vsyncpa [#allocation4], 0 }
   0xe   :  { %25 = vsyncpa [#allocation4 + $0x1], 0 }
   0xf   :  { %26 = vsyncpa [#allocation13], 0 }
  0x10   :  { %28 = vsyncpa [#allocation13 + $0x1], 0  ;;  %s2559_s21 = smov 0   ;;  %s2561_s22 = smov 0  }
  0x11   :  { %s2563_s23 = smov 0   ;;  %s2565_s24 = smov 0  }
  0x12 LB: > { %3183 = sst [smem:[#allocation20_spill]] %s2464_s21  ;;  %s2580_s25 = sadd.s32 4294967295, %s2476_s24   ;;  %s2476_s24 = sphi %s2565_s24, %s3217_s24   ;;  %s2472_s23 = sphi %s2563_s23, %s3216_s23   ;;  %s2468_s22 = sphi %s2561_s22, %s3215_s22   ;;  %s2464_s21 = sphi %s2559_s21, %s3214_s21  }
  0x13   : > { %s3165_s26 = sadd.s32 4294967294, %s2476_s24   ;;  %p54_p0 = scmp.ne.s32.totalorder %s2468_s22, %s2464_s21 }
  0x14   : > { %p3168_p1 = scmp.eq.s32.totalorder %s2580_s25, 0  ;;  %p273_p3 = scmp.eq.s32.totalorder %s3165_s26, 1 }
  0x15   : > { %p1766_p5 = scmp.ge.s32.totalorder %s2476_s24, 1  ;;  %p332_p7 = scmp.lt.s32.totalorder %s2476_s24, 3 }
  0x16   : > { %p2591_p4 = por %p3168_p1, %p54_p0  ;;  %p2596_p6 = por %p273_p3, %p54_p0 }
  0x17   : > { %p2601_p8 = pnand %p1766_p5, %p332_p7  ;;  %s2478_s30 = smov [#allocation5]  }
  0x18   : > { %s3184_s27 = scalar_select %p2591_p4, 1, 0 }
  0x19   : > { %s3185_s28 = scalar_select %p2596_p6, 1, 0 }
  0x1a   : > { %s3187_s29 = scalar_select %p2601_p8, 1, 0 }
  0x1b   : > { %3186 = sst [smem:[#allocation21_spill]] %s3185_s28  ;;  %s344_s13 = sshll.u32 %s2478_s30, 4  ;;  %s2605_s13 = int_to_ptr.vmem [resolvable:$true] %s344_s13 }
  0x1c   : > { %p1979_p9 = pneg %p2601_p8  ;;  %s2479_s15 = smov [#allocation8]  }
  0x1d   : > { %s376_s16 = sshll.u32 %s2479_s15, 4  ;;  %s2480_s17 = smov [#allocation7]   ;;  %s2616_s16 = int_to_ptr.vmem [resolvable:$true] %s376_s16 }
  0x1e   : > { %p2612_p11 = pnand %p1979_p9, %p3168_p1  ;;  %s2618_s18 = sshll.u32 %s2480_s17, 4  ;;  %s361_s18 = int_to_ptr.vmem [resolvable:$true] %s2618_s18 }
  0x1f   : > { %s3189_s1 = sld [smem:[#allocation23_spill]] }
  0x20   : > { %p2628_p13 = pneg %p2612_p11 }
  0x25   : > { %s2200_s30 = scalar_lea.hbm %s3189_s1, 2048 }
  0x26   : > { %p2201_p12 = scmp.ne.s32.totalorder %s3189_s1, %s2200_s30  ;;  %p2207_p5 = scmp.lt.u32.totalorder %s2200_s30, %s3189_s1 }
  0x28   : > { %p2203_p0 = pnand %p2628_p13, %p2201_p12 }
  0x2a   : > { %p2204_p3 = pneg %p2203_p0 }
  0x2c   : > { %p2209_p7 = pnand %p2207_p5, %p2204_p3 }
  0x2e   : > { %2212 = shalt.err (!%p2209_p7)
}
  0x2f   : > { %s2213_s26 = scalar_lea.vmem %s2605_s13, 2048  ;;  %p2221_p2 = scmp.lt.s32.totalorder %s2605_s13, %s2605_s13 }
  0x30   : > { %p2214_p9 = scmp.ne.s32.totalorder %s2605_s13, %s2213_s26  ;;  %p2222_p6 = scmp.lt.s32.totalorder %s2213_s26, %s2213_s26 }
  0x32   : > { %p2216_p10 = pnand %p2214_p9, %p2628_p13  ;;  %p2223_p12 = por %p2222_p6, %p2221_p2 }
  0x34   : > { %p2217_p1 = pneg %p2216_p10 }
  0x36   : > { %p2224_p0 = pnand %p2223_p12, %p2217_p1 }
  0x38   : > { %2227 = shalt.err (!%p2224_p0)
}
  0x39   : > { %s2481_s28 = smov 64   ;;  %s2482_s19 = smov 4  }
  0x3a   : > { %1982 = dma.hbm_to_vmem [thread:$0]  (!%p2612_p11), %s3189_s1, 2048, %s2605_s13, [#allocation6], %s2481_s28, %s2481_s28, %s2482_s19  }
  0x3b   : > { %s2228_s26 = scalar_lea.hbm %s3157_s5, 1024 }
  0x3c   : > { %p2229_p1 = scmp.ne.s32.totalorder %s3157_s5, %s2228_s26  ;;  %p2235_p10 = scmp.lt.u32.totalorder %s2228_s26, %s3157_s5 }
  0x3e   : > { %p2231_p2 = pnand %p2229_p1, %p2628_p13 }
  0x40   : > { %p2232_p6 = pneg %p2231_p2 }
  0x42   : > { %p2237_p3 = pnand %p2235_p10, %p2232_p6 }
  0x44   : > { %2240 = shalt.err (!%p2237_p3)
}
  0x45   : > { %s2241_s13 = scalar_lea.vmem %s2616_s16, 1024  ;;  %p2249_p12 = scmp.lt.s32.totalorder %s2616_s16, %s2616_s16 }
  0x46   : > { %p2242_p5 = scmp.ne.s32.totalorder %s2616_s16, %s2241_s13  ;;  %p2250_p0 = scmp.lt.s32.totalorder %s2241_s13, %s2241_s13 }
  0x48   : > { %p2244_p7 = pnand %p2242_p5, %p2628_p13  ;;  %p2251_p1 = por %p2250_p0, %p2249_p12 }
  0x4a   : > { %p2245_p9 = pneg %p2244_p7 }
  0x4c   : > { %p2252_p2 = pnand %p2251_p1, %p2245_p9 }
  0x4e   : > { %2255 = shalt.err (!%p2252_p2)
}
  0x4f   : > { %1988 = dma.hbm_to_vmem [thread:$0]  (!%p2612_p11), %s3157_s5, 1024, %s2616_s16, [#allocation9], %s2481_s28, %s2481_s28, %s2482_s19  }
  0x50   : > { %s3191_s3 = sld [smem:[#allocation25_spill]] }
  0x56   : > { %s2256_s20 = scalar_lea.hbm %s3191_s3, 1024 }
  0x57   : > { %p2257_p6 = scmp.ne.s32.totalorder %s3191_s3, %s2256_s20  ;;  %p2263_p5 = scmp.lt.u32.totalorder %s2256_s20, %s3191_s3 }
  0x59   : > { %p2259_p10 = pnand %p2257_p6, %p2628_p13 }
  0x5b   : > { %p2260_p3 = pneg %p2259_p10 }
  0x5d   : > { %p2265_p7 = pnand %p2263_p5, %p2260_p3 }
  0x5f   : > { %2268 = shalt.err (!%p2265_p7)
}
  0x60   : > { %s2269_s13 = scalar_lea.vmem %s361_s18, 1024  ;;  %p2277_p1 = scmp.lt.s32.totalorder %s361_s18, %s361_s18 }
  0x61   : > { %p2270_p9 = scmp.ne.s32.totalorder %s361_s18, %s2269_s13  ;;  %p2278_p2 = scmp.lt.s32.totalorder %s2269_s13, %s2269_s13 }
  0x63   : > { %p2272_p12 = pnand %p2270_p9, %p2628_p13  ;;  %p2279_p4 = por %p2278_p2, %p2277_p1 }
  0x65   : > { %p2273_p0 = pneg %p2272_p12 }
  0x67   : > { %p2280_p8 = pnand %p2279_p4, %p2273_p0 }
  0x69   : > { %2283 = shalt.err (!%p2280_p8)
}
  0x6a   : > { %1985 = dma.hbm_to_vmem [thread:$0]  (!%p2612_p11), %s3191_s3, 1024, %s361_s18, [#allocation6], %s2481_s28, %s2481_s28, %s2482_s19  }
  0x6b   : > { %s2483_s10 = smov [#allocation10]   ;;  %s2284_s30 = scalar_lea.hbm %s3159_s7, 1024 }
  0x6c   : > { %s392_s11 = sshll.u32 %s2483_s10, 4  ;;  %p2285_p4 = scmp.ne.s32.totalorder %s3159_s7, %s2284_s30  ;;  %s393_s11 = int_to_ptr.vmem [resolvable:$true] %s392_s11 }
  0x6d   : > { %p2291_p10 = scmp.lt.u32.totalorder %s2284_s30, %s3159_s7 }
  0x6e   : > { %p2287_p8 = pnand %p2285_p4, %p2628_p13 }
  0x70   : > { %p2288_p6 = pneg %p2287_p8 }
  0x72   : > { %p2293_p3 = pnand %p2291_p10, %p2288_p6 }
  0x74   : > { %2296 = shalt.err (!%p2293_p3)
}
  0x75   : > { %s2297_s18 = scalar_lea.vmem %s393_s11, 1024  ;;  %p2305_p12 = scmp.lt.s32.totalorder %s393_s11, %s393_s11 }
  0x76   : > { %p2298_p5 = scmp.ne.s32.totalorder %s393_s11, %s2297_s18  ;;  %p2306_p0 = scmp.lt.s32.totalorder %s2297_s18, %s2297_s18 }
  0x78   : > { %p2300_p7 = pnand %p2298_p5, %p2628_p13  ;;  %p2307_p1 = por %p2306_p0, %p2305_p12 }
  0x7a   : > { %p2301_p9 = pneg %p2300_p7 }
  0x7c   : > { %p2308_p2 = pnand %p2307_p1, %p2301_p9 }
  0x7e   : > { %2311 = shalt.err (!%p2308_p2)
}
  0x7f   : > { %s2484_s28 = smov 128   ;;  %s2485_s21 = smov 8  }
  0x80   : > { %1991 = dma.hbm_to_vmem [thread:$0]  (!%p2612_p11), %s3159_s7, 1024, %s393_s11, [#allocation9], %s2484_s28, %s2484_s28, %s2485_s21  }
  0x81   : > { %s2722_s9 = sadd.s32 1, %s2476_s24   ;;  %s41_s12 = sadd.s32 1, %s2472_s23 }
  0x82   : > { %s38_s10 = ssub.s32 %s2476_s24, %s2722_s9  ;;  %p48_p4 = scmp.ne.s32.totalorder %s2472_s23, %s2468_s22 }
  0x83   : > { %p39_p13 = scmp.eq.s32.totalorder %s38_s10, 0  ;;  %p49_p8 = scmp.eq.s32.totalorder %s2476_s24, 0 }
  0x84   : > { %p3192_p10 = scmp.eq.s32.totalorder %s2580_s25, 1  ;;  %p2010_p5 = scmp.lt.s32.totalorder %s2476_s24, 2 }
  0x85   : > { %s2731_s20 = scalar_select %p39_p13, %s2472_s23, %s41_s12  }
  0x86   : > { %p50_p6 = por %p49_p8, %p48_p4  ;;  %p2735_p3 = por %p3192_p10, %p48_p4 }
  0x87   : > { %s412_s30 = sand.u32 1, %s2472_s23   ;;  %s1858_s11 = sshll.u32 %s2476_s24, 9 }
  0x88   : > { %s1772_s15 = sshll.u32 %s412_s30, 5  ;;  %s3194_s0 = sld [smem:[#allocation22_spill]] }
  0x89   : > { %s416_s18 = scalar_lea.vmem [#allocation2], %s1772_s15  ;;  %p2749_p11 = pnand %p2010_p5, %p50_p6 }
  0x8a   : > { %s424_s19 = sshll.u32 %s416_s18, 4  ;;  %s2753_s10 = scalar_lea.sflag [#allocation3], %s412_s30  ;;  %s2747_s19 = int_to_ptr.vmem [resolvable:$true] %s424_s19 }
  0x8b   : > { %p2314_p9 = pneg %p2749_p11 }
  0x8e   : > { %s2745_s13 = scalar_lea.hbm %s3194_s0, %s1858_s11  ;;  %s2317_s17 = scalar_lea.hbm %s3194_s0, 1024 }
  0x8f   : > { %s2312_s12 = scalar_lea.hbm %s2745_s13, 512  ;;  %p2318_p1 = scmp.lt.u32.totalorder %s2745_s13, %s3194_s0 }
  0x90   : > { %p2313_p7 = scmp.ne.s32.totalorder %s2745_s13, %s2312_s12  ;;  %p2319_p2 = scmp.lt.u32.totalorder %s2317_s17, %s2312_s12 }
  0x91   : > { %p2321_p4 = scmp.lt.u32.totalorder %s2312_s12, %s2745_s13 }
  0x92   : > { %p2315_p12 = pnand %p2314_p9, %p2313_p7  ;;  %p2320_p13 = por %p2319_p2, %p2318_p1 }
  0x94   : > { %p2316_p0 = pneg %p2315_p12  ;;  %p2322_p8 = por %p2321_p4, %p2320_p13 }
  0x96   : > { %p2323_p6 = pnand %p2322_p8, %p2316_p0 }
  0x98   : > { %2326 = shalt.err (!%p2323_p6)
}
  0x99   : > { %s2327_s30 = scalar_lea.vmem %s2747_s19, 512  ;;  %s2486_s15 = smov [#allocation2]  }
  0x9a   : > { %p2328_p10 = scmp.ne.s32.totalorder %s2747_s19, %s2327_s30  ;;  %s2332_s11 = sshll.u32 %s2486_s15, 4  ;;  %s2333_s11 = int_to_ptr.vmem [resolvable:$false] %s2332_s11 }
  0x9b   : > { %s2334_s26 = scalar_lea.vmem %s2333_s11, 1024  ;;  %p2335_p12 = scmp.lt.s32.totalorder %s2747_s19, %s2333_s11 }
  0x9c   : > { %p2330_p5 = pnand %p2328_p10, %p2314_p9  ;;  %p2336_p1 = scmp.lt.s32.totalorder %s2334_s26, %s2327_s30 }
  0x9e   : > { %p2331_p7 = pneg %p2330_p5  ;;  %p2337_p2 = por %p2336_p1, %p2335_p12 }
  0xa0   : > { %p2338_p13 = pnand %p2337_p2, %p2331_p7 }
  0xa2   : > { %2341 = shalt.err (!%p2338_p13)
}
  0xa3   : > { %1995 = dma.hbm_to_vmem [thread:$0]  (!%p2749_p11), %s2745_s13, 512, %s2747_s19, %s2753_s10, %s2484_s28, %s2484_s28, %s2485_s21  }
  0xa4   : > { %p3196_p9 = scmp.ne.s32.totalorder %s3187_s29, 0 }
  0xa5   : > { %s2787_s12 = sand.u32 (!%p3196_p9), 1, %s2468_s22   ;;  %p3197_p0 = scmp.ne.s32.totalorder (!%p3196_p9), %s3184_s27, 0 }
  0xa6   : > { %436 = sbr.rel (%p3196_p9) target bundleno = 1983 (0x7bf), region = 60  ;;  %s2790_s17 = sshll.u32 (!%p3196_p9), %s2787_s12, 5 }
  0xa7   : > { %s439_s16 = scalar_lea.sflag (!%p3196_p9), [#allocation3], %s2787_s12  ;;  %s2794_s18 = scalar_lea.vmem (!%p3196_p9), [#allocation2], %s2790_s17 }
  0xad   : > { %2443 = dma.done.wait (%p3197_p0), %s439_s16, 512  }
  0xae   : > { %2445 = vsyncadd (%p3197_p0), %s439_s16, 4294966784  ;;  %p3198_p11 = scmp.eq.s32.totalorder %s2580_s25, 0 }
  0xb0   : > { %2447 = dma.done.wait (%p3198_p11), [#allocation6], 3072   ;;  %p3199_p4 = pmov %p3198_p11 }
  0xb2   : > { %2449 = vsyncadd (%p3199_p4), [#allocation6], 4294964224  ;;  %p3200_p8 = pmov %p3199_p4 }
  0xb3   : > { %p3201_p6 = pmov %p3199_p4 }
  0xb4   : > { %2451 = dma.done.wait (%p3200_p8), [#allocation9], 2048  }
  0xb5   : > { %2453 = vsyncadd (%p3201_p6), [#allocation9], 4294965248  ;;  %v2060_v0 = vld [vmem:[#allocation5 + $0x40] sm:$0xff]   ;;  %v2062_v2 = vld [vmem:[#allocation5 + $0x48] sm:$0xff]   ;;  %s3202_s2 = sld [smem:[#allocation24_spill]]  ;;  %vm1094_vm8 = vcmask 523264  }
  0xb6   : > { %v2061_v1 = vld [vmem:[#allocation5] sm:$0xff]   ;;  %1867 = vmatprep.subr.bf16.mxu0 %v2060_v0  ;;  %v2063_v3 = vld [vmem:[#allocation5 + $0x8] sm:$0xff]   ;;  %v2064_v4 = vld [vmem:[#allocation5 + $0x50] sm:$0xff]   ;;  %s2852_s10 = scalar_lea.vmem [#allocation11], %s2790_s17  ;;  %s3205_s16 = sld [smem:[#allocation26_spill]] }
  0xb7   : > { %1868 = vmatpush3.bf16.msra.mxu0 %v2061_v1  ;;  %v2065_v5 = vld [vmem:[#allocation5 + $0x10] sm:$0xff]   ;;  %v2066_v6 = vld [vmem:[#allocation5 + $0x58] sm:$0xff]   ;;  %v2068_v8 = vld [vmem:[#allocation5 + $0x60] sm:$0xff]   ;;  %s2488_s28 = smov 64   ;;  %s2978_s19 = scalar_lea.vmem [#allocation12], %s2790_s17 }
  0xb8   : > { %1869 = vmatprep.subr.bf16.mxu0 %v2062_v2  ;;  %v2067_v7 = vld [vmem:[#allocation5 + $0x18] sm:$0xff]   ;;  %v2069_v9 = vld [vmem:[#allocation5 + $0x20] sm:$0xff]   ;;  %v2070_v10 = vld [vmem:[#allocation5 + $0x68] sm:$0xff]   ;;  %s3004_s30 = sshll.u32 %s2580_s25, 9  ;;  %s3206_s26 = sld [smem:[#allocation28_spill]] }
  0xb9   : > { %v514_v11 = vld [vmem:[%s2794_s18] sm:$0xff]  ;;  %v515_v12 = vld [vmem:[%s2794_s18 + $0x8] sm:$0xff]  ;;  %v2072_v15 = vld [vmem:[#allocation5 + $0x70] sm:$0xff]   ;;  %s1577_s29 = sshll.u32 %s2978_s19, 4  ;;  %s3013_s29 = int_to_ptr.vmem [resolvable:$true] %s1577_s29 }
  0xba   : > { %v2071_v13 = vld [vmem:[#allocation5 + $0x28] sm:$0xff]   ;;  %v1787_v14 = vcombine.high %v514_v11, %v515_v12  ;;  %v2073_v16 = vld [vmem:[#allocation5 + $0x30] sm:$0xff]   ;;  %v2074_v17 = vld [vmem:[#allocation5 + $0x78] sm:$0xff]   ;;  %v1786_v21 = vcombine.low %v514_v11, %v515_v12  ;;  %s2342_s21 = scalar_lea.vmem %s3013_s29, 512 }
  0xbb   : > { %1870 = vmatpush3.bf16.msra.mxu0 %v2063_v3  ;;  %v2075_v18 = vld [vmem:[#allocation5 + $0x38] sm:$0xff]   ;;  %v516_v19 = vld [vmem:[%s2794_s18 + $0x10] sm:$0xff]  ;;  %v2080_v24 = vld [vmem:[#allocation7] sm:$0xff]   ;;  %p2343_p10 = scmp.ne.s32.totalorder %s3013_s29, %s2342_s21 }
  0xbc   : > { %1871 = vmatprep.subr.bf16.mxu0 %v2064_v4  ;;  %705 = vmatprep.mubr.bf16.mxu0 %v1787_v14  ;;  %v517_v20 = vld [vmem:[%s2794_s18 + $0x18] sm:$0xff]  ;;  %v2081_v25 = vld [vmem:[#allocation7 + $0x8] sm:$0xff]   ;;  %v2082_v26 = vld [vmem:[#allocation7 + $0x10] sm:$0xff]  }
  0xbd   : > { %v1789_v22 = vcombine.high %v516_v19, %v517_v20  ;;  %v1788_v23 = vcombine.low %v516_v19, %v517_v20  ;;  %1915 = vmatprep.subr.bf16.mxu1 %v2080_v24  ;;  %v2083_v27 = vld [vmem:[#allocation7 + $0x18] sm:$0xff]   ;;  %v2084_v28 = vld [vmem:[#allocation7 + $0x20] sm:$0xff]   ;;  %v2085_v29 = vld [vmem:[#allocation7 + $0x28] sm:$0xff]   ;;  %p2344_p5 = pnand %p2343_p10, %p2735_p3 }
  0xbe   : > { %1916 = vmatpush3.bf16.msra.mxu1 %v2080_v24  ;;  %v2086_v30 = vld [vmem:[#allocation7 + $0x30] sm:$0xff]   ;;  %v2087_v31 = vld [vmem:[#allocation7 + $0x38] sm:$0xff]   ;;  %v1785_v33 = vld [vmem:[%s3202_s2] ss:$0 sm:$0xff]  ;;  %s3010_s27 = scalar_lea.hbm %s3206_s26, %s3004_s30 }
  0xbf   : > { %1872 = vmatpush3.bf16.msra.mxu0 %v2065_v5  ;;  %1917 = vmatprep.subr.bf16.mxu1 %v2081_v25  ;;  %p2345_p7 = pneg %p2344_p5 }
  0xc0   : > { %1873 = vmatprep.subr.bf16.mxu0 %v2066_v6 }
  0xc2   : > { %1918 = vmatpush3.bf16.msra.mxu1 %v2081_v25 }
  0xc3   : > { %1874 = vmatpush3.bf16.msra.mxu0 %v2067_v7  ;;  %1919 = vmatprep.subr.bf16.mxu1 %v2082_v26 }
  0xc4   : > { %1875 = vmatprep.subr.bf16.mxu0 %v2068_v8 }
  0xc6   : > { %1920 = vmatpush3.bf16.msra.mxu1 %v2082_v26 }
  0xc7   : > { %1876 = vmatpush3.bf16.msra.mxu0 %v2069_v9  ;;  %1921 = vmatprep.subr.bf16.mxu1 %v2083_v27 }
  0xc8   : > { %1877 = vmatprep.subr.bf16.mxu0 %v2070_v10 }
  0xca   : > { %1922 = vmatpush3.bf16.msra.mxu1 %v2083_v27 }
  0xcb   : > { %1878 = vmatpush3.bf16.msra.mxu0 %v2071_v13  ;;  %1923 = vmatprep.subr.bf16.mxu1 %v2084_v28 }
  0xcc   : > { %1879 = vmatprep.subr.bf16.mxu0 %v2072_v15 }
  0xce   : > { %1924 = vmatpush3.bf16.msra.mxu1 %v2084_v28 }
  0xcf   : > { %1880 = vmatpush3.bf16.msra.mxu0 %v2073_v16  ;;  %1925 = vmatprep.subr.bf16.mxu1 %v2085_v29 }
  0xd0   : > { %1881 = vmatprep.subr.bf16.mxu0 %v2074_v17 }
  0xd2   : > { %1926 = vmatpush3.bf16.msra.mxu1 %v2085_v29 }
  0xd3   : > { %1882 = vmatpush3.bf16.msra.mxu0 %v2075_v18  ;;  %1927 = vmatprep.subr.bf16.mxu1 %v2086_v30 }
  0xd6   : > { %706 = vmatmul.mubr.bf16.vlgmr.msra.gmra.mrb[0].mxu0 %v1786_v21  ;;  %1928 = vmatpush3.bf16.msra.mxu1 %v2086_v30 }
  0xd7   : > { %713 = vmatprep.mubr.bf16.mxu0 %v1789_v22  ;;  %1929 = vmatprep.subr.bf16.mxu1 %v2087_v31 }
  0xda   : > { %1930 = vmatpush3.bf16.msra.mxu1 %v2087_v31 }
  0xde   : > { %714 = vmatmul.mubr.bf16.gmra.mrb[4].mxu0 %v1788_v23 }
 0x1a9   : > { %v1883_v32 = vpop.f32.mrb[0].mxu0 }
 0x1aa   : > { %v1884_v34 = vpop.f32.mrb[1].mxu0 }
 0x1ab   : > { %v1885_v35 = vadd.f32 %v1884_v34, %v1883_v32  ;;  %v1886_v36 = vpop.f32.mrb[2].mxu0 }
 0x1ac   : > { %v1887_v37 = vpop.f32.mrb[3].mxu0 }
 0x1ad   : > { %v708_v38 = vadd.f32 %v1885_v35, %v1785_v33  ;;  %v1888_v39 = vadd.f32 %v1887_v37, %v1886_v36 }
 0x1af   : > { %v726_v40 = vand.u32 2147483647, %v708_v38  ;;  %v711_v41 = vadd.f32 %v1888_v39, %v1785_v33  ;;  %v722_v20 = vmax.f32 %v708_v38, 0.0 }
 0x1b1   : > { %v730_v42 = vsub.f32 0.0, %v726_v40  ;;  %v727_v43 = vand.u32 2147483647, %v711_v41  ;;  %v1889_v44 = vpop.f32.mrb[4].mxu0  ;;  %v723_v21 = vmax.f32 %v711_v41, 0.0 }
 0x1b2   : > { %v1890_v45 = vpop.f32.mrb[5].mxu0 }
 0x1b3   : > { %v734_v46 = vmul.f32 1.442695, %v730_v42  ;;  %v731_v47 = vsub.f32 0.0, %v727_v43  ;;  %v1891_v48 = vadd.f32 %v1890_v45, %v1889_v44  ;;  %v1892_v49 = vpop.f32.mrb[6].mxu0  ;;  %v2088_v43 = vld [vmem:[#allocation8] sm:$0xff]   ;;  %v2089_v44 = vld [vmem:[#allocation8 + $0x8] sm:$0xff]  }
 0x1b4   : > { %v1893_v50 = vpop.f32.mrb[7].mxu0  ;;  %1935 = vmatprep.subr.bf16.mxu0 %v2088_v43  ;;  %v2090_v45 = vld [vmem:[#allocation8 + $0x10] sm:$0xff]  }
 0x1b5   : > { %2108 = vpow2.f32 %v734_v46  ;;  %v736_v51 = vmul.f32 1.442695, %v731_v47  ;;  %v2815_v52 = vadd.f32 %v1891_v48, %v1785_v33  ;;  %v1894_v53 = vadd.f32 %v1893_v50, %v1892_v49  ;;  %1936 = vmatpush3.bf16.msra.mxu0 %v2088_v43  ;;  %v2091_v46 = vld [vmem:[#allocation8 + $0x18] sm:$0xff]   ;;  %v2092_v47 = vld [vmem:[#allocation8 + $0x20] sm:$0xff]   ;;  %v2093_v48 = vld [vmem:[#allocation8 + $0x28] sm:$0xff]  }
 0x1b6   : > { %1937 = vmatprep.subr.bf16.mxu0 %v2089_v44  ;;  %v2094_v49 = vld [vmem:[#allocation8 + $0x30] sm:$0xff]   ;;  %v2095_v50 = vld [vmem:[#allocation8 + $0x38] sm:$0xff]  }
 0x1b7   : > { %2110 = vpow2.f32 %v736_v51  ;;  %v728_v54 = vand.u32 2147483647, %v2815_v52  ;;  %v719_v55 = vadd.f32 %v1894_v53, %v1785_v33  ;;  %v724_v37 = vmax.f32 %v2815_v52, 0.0  ;;  %v1806_v51 = vld [vmem:[%s3156_s4] ss:$0 sm:$0xff] }
 0x1b9   : > { %v732_v56 = vsub.f32 0.0, %v728_v54  ;;  %v729_v57 = vand.u32 2147483647, %v719_v55  ;;  %v725_v38 = vmax.f32 %v719_v55, 0.0  ;;  %1938 = vmatpush3.bf16.msra.mxu0 %v2089_v44 }
 0x1ba   : > { %1939 = vmatprep.subr.bf16.mxu0 %v2090_v45 }
 0x1bb   : > { %v738_v58 = vmul.f32 1.442695, %v732_v56  ;;  %v733_v59 = vsub.f32 0.0, %v729_v57 }
 0x1bd   : > { %2112 = vpow2.f32 %v738_v58  ;;  %v740_v60 = vmul.f32 1.442695, %v733_v59  ;;  %1940 = vmatpush3.bf16.msra.mxu0 %v2090_v45 }
 0x1be   : > { %1941 = vmatprep.subr.bf16.mxu0 %v2091_v46 }
 0x1bf   : > { %v2109_v61 = vpop.eup %2108  ;;  %2114 = vpow2.f32 %v740_v60 }
 0x1c0   : > { %v742_v62 = vadd.f32 1.0, %v2109_v61  ;;  %v745_v1 = vmul.f32 -0.5, %v2109_v61  ;;  %v748_v7 = vand.u32 2147483647, %v2109_v61 }
 0x1c1   : > { %v2111_v63 = vpop.eup %2110  ;;  %1942 = vmatpush3.bf16.msra.mxu0 %v2091_v46 }
 0x1c2   : > { %2116 = vlog2.f32 %v742_v62  ;;  %v751_v0 = vadd.f32 1.0, %v2111_v63  ;;  %v754_v3 = vmul.f32 -0.5, %v2111_v63  ;;  %v746_v6 = vadd.f32 1.0, %v745_v1  ;;  %1943 = vmatprep.subr.bf16.mxu0 %v2092_v47 }
 0x1c3   : > { %v757_v11 = vand.u32 2147483647, %v2111_v63  ;;  %vm749_vm0 = vcmp.lt.f32.partialorder %v748_v7, 0.0004427343 }
 0x1c4   : > { %2118 = vlog2.f32 %v751_v0  ;;  %v755_v9 = vadd.f32 1.0, %v754_v3  ;;  %v747_v13 = vmul.f32 %v2109_v61, %v746_v6 }
 0x1c5   : > { %vm758_vm1 = vcmp.lt.f32.partialorder %v757_v11, 0.0004427343  ;;  %1944 = vmatpush3.bf16.msra.mxu0 %v2092_v47 }
 0x1c6   : > { %v756_v18 = vmul.f32 %v2111_v63, %v755_v9  ;;  %1945 = vmatprep.subr.bf16.mxu0 %v2093_v48 }
 0x1c7   : > { %v2113_v2 = vpop.eup %2112 }
 0x1c8   : > { %v760_v4 = vadd.f32 1.0, %v2113_v2  ;;  %v763_v14 = vmul.f32 -0.5, %v2113_v2  ;;  %v766_v26 = vand.u32 2147483647, %v2113_v2 }
 0x1c9   : > { %v2115_v5 = vpop.eup %2114  ;;  %1946 = vmatpush3.bf16.msra.mxu0 %v2093_v48 }
 0x1ca   : > { %2120 = vlog2.f32 %v760_v4  ;;  %v769_v8 = vadd.f32 1.0, %v2115_v5  ;;  %v772_v19 = vmul.f32 -0.5, %v2115_v5  ;;  %v764_v23 = vadd.f32 1.0, %v763_v14  ;;  %1947 = vmatprep.subr.bf16.mxu0 %v2094_v49 }
 0x1cb   : > { %v775_v30 = vand.u32 2147483647, %v2115_v5  ;;  %vm767_vm2 = vcmp.lt.f32.partialorder %v766_v26, 0.0004427343 }
 0x1cc   : > { %v2117_v10 = vpop.eup %2116  ;;  %2122 = vlog2.f32 %v769_v8  ;;  %v773_v27 = vadd.f32 1.0, %v772_v19  ;;  %v765_v32 = vmul.f32 %v2113_v2, %v764_v23 }
 0x1cd   : > { %v744_v12 = vmul.f32 0.6931472, %v2117_v10  ;;  %vm776_vm3 = vcmp.lt.f32.partialorder %v775_v30, 0.0004427343  ;;  %1948 = vmatpush3.bf16.msra.mxu0 %v2094_v49 }
 0x1ce   : > { %v2119_v15 = vpop.eup %2118  ;;  %v774_v36 = vmul.f32 %v2115_v5, %v773_v27  ;;  %1949 = vmatprep.subr.bf16.mxu0 %v2095_v50 }
 0x1cf   : > { %v750_v16 = vsel %vm749_vm0, %v747_v13, %v744_v12  ;;  %v753_v17 = vmul.f32 0.6931472, %v2119_v15 }
 0x1d0   : > { %v778_v24 = vadd.f32 %v750_v16, %v722_v20 }
 0x1d1   : > { %v759_v22 = vsel %vm758_vm1, %v756_v18, %v753_v17  ;;  %1950 = vmatpush3.bf16.msra.mxu0 %v2095_v50 }
 0x1d2   : > { %v779_v25 = vadd.f32 %v759_v22, %v723_v21 }
 0x1d4   : > { %v2121_v28 = vpop.eup %2120  ;;  %v782_v29 = vpack.c.bf16 %v779_v25, %v778_v24 }
 0x1d5   : > { %v762_v31 = vmul.f32 0.6931472, %v2121_v28 }
 0x1d6   : > { %v2123_v33 = vpop.eup %2122  ;;  %1931 = vmatprep.mubr.bf16.mxu1 %v782_v29 }
 0x1d7   : > { %v768_v34 = vsel %vm767_vm2, %v765_v32, %v762_v31  ;;  %v771_v35 = vmul.f32 0.6931472, %v2123_v33 }
 0x1d8   : > { %v780_v40 = vadd.f32 %v768_v34, %v724_v37 }
 0x1d9   : > { %v777_v39 = vsel %vm776_vm3, %v774_v36, %v771_v35 }
 0x1da   : > { %v781_v41 = vadd.f32 %v777_v39, %v725_v38 }
 0x1dc   : > { %v783_v42 = vpack.c.bf16 %v781_v41, %v780_v40 }
 0x1de   : > { %1932 = vmatmul.mubr.bf16.vlgmr.msra.gmra.mrb[0].mxu1 %v783_v42 }
 0x2b1   : > { %v1933_v52 = vpop.f32.mrb[0].mxu1 }
 0x2b2   : > { %v2822_v53 = vadd.f32 %v1933_v52, %v1806_v51  ;;  %v889_v54 = vpop.f32.mrb[1].mxu1 }
 0x2b3   : > { %v2824_v55 = vadd.f32 %v1806_v51, %v889_v54  ;;  %v1934_v56 = vpop.f32.mrb[2].mxu1 }
 0x2b4   : > { %v910_v57 = vand.u32 2147483647, %v2822_v53  ;;  %v2827_v58 = vadd.f32 %v1934_v56, %v1806_v51  ;;  %v892_v59 = vpop.f32.mrb[3].mxu1  ;;  %v906_v28 = vmax.f32 %v2822_v53, 0.0 }
 0x2b5   : > { %v908_v60 = vand.u32 2147483647, %v2824_v55  ;;  %v2830_v61 = vadd.f32 %v1806_v51, %v892_v59  ;;  %v904_v41 = vmax.f32 %v2824_v55, 0.0  ;;  %v1815_v55 = vld [vmem:[%s3158_s6] ss:$0 sm:$0xff] }
 0x2b6   : > { %v914_v62 = vsub.f32 0.0, %v910_v57  ;;  %v911_v63 = vand.u32 2147483647, %v2827_v58  ;;  %v907_v42 = vmax.f32 %v2827_v58, 0.0 }
 0x2b7   : > { %v912_v0 = vsub.f32 0.0, %v908_v60  ;;  %v909_v1 = vand.u32 2147483647, %v2830_v61  ;;  %v905_v49 = vmax.f32 %v2830_v61, 0.0 }
 0x2b8   : > { %v920_v2 = vmul.f32 1.442695, %v914_v62  ;;  %v915_v3 = vsub.f32 0.0, %v911_v63 }
 0x2b9   : > { %v916_v4 = vmul.f32 1.442695, %v912_v0  ;;  %v913_v5 = vsub.f32 0.0, %v909_v1 }
 0x2ba   : > { %2124 = vpow2.f32 %v920_v2  ;;  %v922_v6 = vmul.f32 1.442695, %v915_v3 }
 0x2bb   : > { %2126 = vpow2.f32 %v916_v4  ;;  %v918_v7 = vmul.f32 1.442695, %v913_v5 }
 0x2bc   : > { %2128 = vpow2.f32 %v922_v6 }
 0x2bd   : > { %2130 = vpow2.f32 %v918_v7 }
 0x2c4   : > { %v2125_v8 = vpop.eup %2124 }
 0x2c5   : > { %v2127_v9 = vpop.eup %2126  ;;  %v942_v10 = vadd.f32 1.0, %v2125_v8  ;;  %v945_v16 = vmul.f32 -0.5, %v2125_v8  ;;  %v948_v21 = vand.u32 2147483647, %v2125_v8 }
 0x2c6   : > { %v2129_v11 = vpop.eup %2128  ;;  %v924_v12 = vadd.f32 1.0, %v2127_v9  ;;  %v927_v17 = vmul.f32 -0.5, %v2127_v9  ;;  %v930_v25 = vand.u32 2147483647, %v2127_v9 }
 0x2c7   : > { %v2131_v13 = vpop.eup %2130  ;;  %2132 = vlog2.f32 %v942_v10  ;;  %v951_v14 = vadd.f32 1.0, %v2129_v11  ;;  %v954_v18 = vmul.f32 -0.5, %v2129_v11  ;;  %v946_v19 = vadd.f32 1.0, %v945_v16 }
 0x2c8   : > { %2134 = vlog2.f32 %v924_v12  ;;  %v933_v15 = vadd.f32 1.0, %v2131_v13  ;;  %v936_v20 = vmul.f32 -0.5, %v2131_v13  ;;  %v928_v22 = vadd.f32 1.0, %v927_v17 }
 0x2c9   : > { %2136 = vlog2.f32 %v951_v14  ;;  %v955_v23 = vadd.f32 1.0, %v954_v18  ;;  %v957_v26 = vand.u32 2147483647, %v2129_v11  ;;  %v947_v30 = vmul.f32 %v2125_v8, %v946_v19 }
 0x2ca   : > { %2138 = vlog2.f32 %v933_v15  ;;  %v937_v31 = vadd.f32 1.0, %v936_v20  ;;  %vm2835_vm4 = vcmp.lt.f32.partialorder %v948_v21, 0.0004427343  ;;  %v939_v35 = vand.u32 2147483647, %v2131_v13 }
 0x2cb   : > { %v929_v37 = vmul.f32 %v2127_v9, %v928_v22  ;;  %v956_v39 = vmul.f32 %v2129_v11, %v955_v23  ;;  %vm931_vm5 = vcmp.lt.f32.partialorder %v930_v25, 0.0004427343  ;;  %vm958_vm6 = vcmp.lt.f32.partialorder %v957_v26, 0.0004427343  ;;  %v2096_v25 = vld [vmem:[#allocation10] ss:$8 sps:$4 sm:$0xff]  }
 0x2cc   : > { %v938_v46 = vmul.f32 %v2131_v13, %v937_v31  ;;  %vm940_vm7 = vcmp.lt.f32.partialorder %v939_v35, 0.0004427343  ;;  %v2101_v26 = vld [vmem:[#allocation10 + $0x14] ss:$8 sps:$4 sm:$0xff]   ;;  %v2105_v31 = vld [vmem:[#allocation10 + $0x30] ss:$8 sps:$4 sm:$0xff]  }
 0x2d1   : > { %v2133_v24 = vpop.eup %2132 }
 0x2d2   : > { %v2135_v27 = vpop.eup %2134  ;;  %v944_v29 = vmul.f32 0.6931472, %v2133_v24  ;;  %v2098_v24 = vld [vmem:[#allocation10 + $0x4] ss:$8 sps:$4 sm:$0xff]  }
 0x2d3   : > { %v2137_v32 = vpop.eup %2136  ;;  %v926_v34 = vmul.f32 0.6931472, %v2135_v27  ;;  %1207 = vmatprep.subr.bf16.mxu1 %v2098_v24  ;;  %v2099_v27 = vld [vmem:[#allocation10 + $0x10] ss:$8 sps:$4 sm:$0xff]  }
 0x2d4   : > { %v950_v36 = vsel %vm2835_vm4, %v947_v30, %v944_v29  ;;  %v953_v38 = vmul.f32 0.6931472, %v2137_v32  ;;  %v2139_v40 = vpop.eup %2138  ;;  %1208 = vmatpush1.bf16.msra.mxu1 %v2096_v25  ;;  %v2102_v29 = vld [vmem:[#allocation10 + $0x20] ss:$8 sps:$4 sm:$0xff]   ;;  %v2107_v30 = vld [vmem:[#allocation10 + $0x34] ss:$8 sps:$4 sm:$0xff]  }
 0x2d5   : > { %v932_v43 = vsel %vm931_vm5, %v929_v37, %v926_v34  ;;  %v935_v45 = vmul.f32 0.6931472, %v2139_v40  ;;  %v962_v47 = vadd.f32 %v950_v36, %v906_v28  ;;  %1209 = vmatprep.subr.bf16.mxu1 %v2101_v26  ;;  %v2104_v28 = vld [vmem:[#allocation10 + $0x24] ss:$8 sps:$4 sm:$0xff]   ;;  %v2487_v32 = vmov 0  }
 0x2d6   : > { %v959_v44 = vsel %vm958_vm6, %v956_v39, %v953_v38  ;;  %v960_v51 = vadd.f32 %v932_v43, %v904_v41  ;;  %1239 = vmatprep.mubr.bf16.mxu1 %v2487_v32 }
 0x2d7   : > { %v963_v48 = vadd.f32 %v959_v44, %v907_v42  ;;  %v941_v50 = vsel %vm940_vm7, %v938_v46, %v935_v45 }
 0x2d8   : > { %v961_v53 = vadd.f32 %v941_v50, %v905_v49  ;;  %1210 = vmatpush1.bf16.msra.mxu1 %v2099_v27  ;;  %v1149_v50 = vld [vmem:[%s3160_s8] sm:$0x3] }
 0x2d9   : > { %v965_v52 = vpack.c.bf16 %v963_v48, %v962_v47  ;;  %1211 = vmatprep.subr.bf16.mxu1 %v2104_v28  ;;  %v1151_v47 = vlaneseq  ;;  %v1836_v28 = vld [vmem:[%s3205_s16 + $0x2] ss:$0 sm:$0xff] }
 0x2da   : > { %v964_v54 = vpack.c.bf16 %v961_v53, %v960_v51 }
 0x2db   : > { %v1152_v48 = vshrl.u32 %v1151_v47, 7 }
 0x2dc   : > { %1951 = vmatprep.mubr.bf16.mxu0 %v964_v54  ;;  %1212 = vmatpush1.bf16.msra.mxu1 %v2102_v29 }
 0x2dd   : > { %1952 = vmatmul.mubr.bf16.vlgmr.msra.gmra.mrb[8].mxu0 %v965_v52  ;;  %1213 = vmatprep.subr.bf16.mxu1 %v2107_v30  ;;  %v1153_v49 = vsub.s32 0, %v1152_v48  ;;  %v1157_v51 = vsub.s32 1, %v1152_v48 }
 0x2df   : > { %v1154_v52 = vrot.slane %v1149_v50, %v1153_v49  ;;  %v1158_v53 = vrot.slane %v1149_v50, %v1157_v51 }
 0x2e0   : > { %1214 = vmatpush1.bf16.msra.mxu1 %v2105_v31 }
 0x3b0   : > { %v1953_v56 = vpop.f32.mrb[8].mxu0 }
 0x3b1   : > { %v2847_v57 = vadd.f32 %v1953_v56, %v1815_v55  ;;  %v1071_v58 = vpop.f32.mrb[9].mxu0 }
 0x3b2   : > { %v2849_v59 = vadd.f32 %v1815_v55, %v1071_v58  ;;  %v1954_v60 = vpop.f32.mrb[10].mxu0 }
 0x3b3   : > { %1477 = vst.msk [vmem:[%s2852_s10 + $0x10] sm:$0xff] %vm1094_vm8, %v2847_v57  ;;  %v2857_v61 = vadd.f32 %v1954_v60, %v1815_v55  ;;  %v1074_v62 = vpop.f32.mrb[11].mxu0  ;;  %v1101_v63 = vsel %vm1094_vm8, %v2847_v57, -inf }
 0x3b4   : > { %1475 = vst.msk [vmem:[%s2852_s10] sm:$0xff] %vm1094_vm8, %v2849_v59  ;;  %v2864_v0 = vadd.f32 %v1815_v55, %v1074_v62  ;;  %1102 = vmax.xlane.f32.xlu1 %v1101_v63  ;;  %v1095_v1 = vsel %vm1094_vm8, %v2849_v59, -inf }
 0x3b5   : > { %1478 = vst.msk [vmem:[%s2852_s10 + $0x18] sm:$0xff] %vm1094_vm8, %v2857_v61  ;;  %1096 = vmax.xlane.f32.xlu0 %v1095_v1  ;;  %v1104_v2 = vsel %vm1094_vm8, %v2857_v61, -inf }
 0x3b6   : > { %1476 = vst.msk [vmem:[%s2852_s10 + $0x8] sm:$0xff] %vm1094_vm8, %v2864_v0  ;;  %v1098_v3 = vsel %vm1094_vm8, %v2864_v0, -inf  ;;  %v1088_v50 = vmul.f32 1.442695, %v2864_v0 }
 0x3b8   : > { %1105 = vmax.xlane.f32.xlu1 %v1104_v2 }
 0x3b9   : > { %1099 = vmax.xlane.f32.xlu0 %v1098_v3 }
 0x441   : > { %v1103_v4 = vpop.xlane.xlu1 %1102 }
 0x442   : > { %v1109_v5 = vsub.f32 %v2847_v57, %v1103_v4  ;;  %v1097_v6 = vpop.xlane.xlu0 %1096 }
 0x443   : > { %v1107_v7 = vsub.f32 %v2849_v59, %v1097_v6 }
 0x444   : > { %v1115_v8 = vmul.f32 1.442695, %v1109_v5 }
 0x445   : > { %v1111_v9 = vmul.f32 1.442695, %v1107_v7  ;;  %v1106_v10 = vpop.xlane.xlu1 %1105 }
 0x446   : > { %v1110_v11 = vsub.f32 %v2857_v61, %v1106_v10  ;;  %v1100_v12 = vpop.xlane.xlu0 %1099 }
 0x447   : > { %2140 = vpow2.f32 %v1111_v9  ;;  %v1108_v13 = vsub.f32 %v2864_v0, %v1100_v12 }
 0x448   : > { %2142 = vpow2.f32 %v1115_v8  ;;  %v1117_v14 = vmul.f32 1.442695, %v1110_v11 }
 0x449   : > { %v1113_v15 = vmul.f32 1.442695, %v1108_v13 }
 0x44b   : > { %2144 = vpow2.f32 %v1113_v15 }
 0x44c   : > { %2146 = vpow2.f32 %v1117_v14  ;;  %v1834_v14 = vld [vmem:[%s3205_s16] ss:$0 sm:$0xff] }
 0x44d   : > { %v1375_v15 = vsub.f32 %v2849_v59, %v1834_v14 }
 0x451   : > { %v2141_v16 = vpop.eup %2140 }
 0x452   : > { %v1119_v17 = vsel %vm1094_vm8, %v2141_v16, 0.0  ;;  %v2143_v18 = vpop.eup %2142 }
 0x453   : > { %1120 = vadd.xlane.f32.xlu0 %v1119_v17  ;;  %v1125_v20 = vsel %vm1094_vm8, %v2143_v18, 0.0  ;;  %v1376_v17 = vsub.f32 %v2864_v0, %v1834_v14 }
 0x455   : > { %v2145_v19 = vpop.eup %2144 }
 0x456   : > { %v1122_v21 = vsel %vm1094_vm8, %v2145_v19, 0.0  ;;  %v2147_v22 = vpop.eup %2146 }
 0x457   : > { %1126 = vadd.xlane.f32.xlu0 %v1125_v20  ;;  %1123 = vadd.xlane.f32.xlu1 %v1122_v21  ;;  %v1128_v23 = vsel %vm1094_vm8, %v2147_v22, 0.0  ;;  %v1392_v21 = vmul.f32 %v1376_v17, %v1376_v17 }
 0x45b   : > { %1129 = vadd.xlane.f32.xlu1 %v1128_v23 }
 0x4e0   : > { %v1121_v33 = vpop.xlane.xlu0 %1120 }
 0x4e1   : > { %2148 = vrcp.f32 %v1121_v33 }
 0x4e4   : > { %v1124_v34 = vpop.xlane.xlu1 %1123  ;;  %v1127_v35 = vpop.xlane.xlu0 %1126 }
 0x4e5   : > { %2150 = vrcp.f32 %v1124_v34 }
 0x4e8   : > { %v1130_v36 = vpop.xlane.xlu1 %1129 }
 0x4e9   : > { %2152 = vrcp.f32 %v1130_v36 }
 0x4ea   : > { %2154 = vrcp.f32 %v1127_v35 }
 0x4eb   : > { %v2149_v37 = vpop.eup %2148 }
 0x4ec   : > { %v1135_v39 = vmul.f32 %v2149_v37, %v2141_v16  ;;  %v1391_v16 = vmul.f32 %v1375_v15, %v1375_v15 }
 0x4ef   : > { %v2151_v38 = vpop.eup %2150 }
 0x4f0   : > { %v1136_v40 = vmul.f32 %v2151_v38, %v2145_v19  ;;  %v1378_v19 = vsub.f32 %v2857_v61, %v1834_v14 }
 0x4f2   : > { %v1139_v41 = vpack.c.bf16 %v1136_v40, %v1135_v39  ;;  %v1394_v23 = vmul.f32 %v1378_v19, %v1378_v19 }
 0x4f3   : > { %v2153_v42 = vpop.eup %2152 }
 0x4f4   : > { %1832 = vmatmul.mubr.msk.bf16.vlgmr.msra.gmra.mrb[4].mxu1 %vm1094_vm8, %v1139_v41  ;;  %v2155_v43 = vpop.eup %2154  ;;  %v1138_v44 = vmul.f32 %v2153_v42, %v2147_v22  ;;  %v1377_v22 = vsub.f32 %v2847_v57, %v1834_v14 }
 0x4f5   : > { %1249 = vmatprep.mubr.bf16.mxu1 %v2487_v32  ;;  %v1137_v45 = vmul.f32 %v2155_v43, %v2143_v18  ;;  %v1835_v18 = vld [vmem:[%s3205_s16 + $0x1] ss:$0 sm:$0xff] }
 0x4f6   : > { %v1395_v20 = vmul.f32 %v1835_v18, %v1391_v16  ;;  %v1396_v24 = vmul.f32 %v1835_v18, %v1392_v21  ;;  %v1393_v25 = vmul.f32 %v1377_v22, %v1377_v22  ;;  %v1398_v26 = vmul.f32 %v1835_v18, %v1394_v23 }
 0x4f7   : > { %v1140_v46 = vpack.c.bf16 %v1138_v44, %v1137_v45 }
 0x4f8   : > { %v1397_v27 = vmul.f32 %v1835_v18, %v1393_v25 }
 0x4fc   : > { %1833 = vmatmul.mubr.msk.bf16.gmra.mrb[8].mxu1 %vm1094_vm8, %v1140_v46 }
 0x5c7   : > { %v1241_v54 = vpop.f32.mrb[4].mxu1 }
 0x5c8   : > { %v1242_v55 = vadd.f32 %v1241_v54, %v1154_v52  ;;  %v1243_v56 = vpop.f32.mrb[5].mxu1 }
 0x5c9   : > { %v1244_v58 = vadd.f32 %v1243_v56, %v1158_v53  ;;  %v1245_v60 = vpop.f32.mrb[6].mxu1  ;;  %v1090_v56 = vmul.f32 1.442695, %v2847_v57 }
 0x5ca   : > { %v1246_v62 = vadd.f32 %v1245_v60, %v1154_v52  ;;  %v1247_v63 = vpop.f32.mrb[7].mxu1 }
 0x5cb   : > { %v1248_v1 = vadd.f32 %v1247_v63, %v1158_v53  ;;  %v1260_v2 = vmax.f32 %v1242_v55, %v1244_v58  ;;  %v1092_v63 = vmul.f32 1.442695, %v2857_v61 }
 0x5cd   : > { %1261 = vmax.xlane.f32.xlu0 %v1260_v2  ;;  %v1263_v3 = vmax.f32 %v1246_v62, %v1248_v1 }
 0x5cf   : > { %1264 = vmax.xlane.f32.xlu1 %v1263_v3  ;;  %v1251_v4 = vpop.f32.mrb[8].mxu1 }
 0x5d0   : > { %v1252_v5 = vadd.f32 %v1251_v4, %v1154_v52  ;;  %v1253_v6 = vpop.f32.mrb[9].mxu1 }
 0x5d1   : > { %v1254_v7 = vadd.f32 %v1253_v6, %v1158_v53  ;;  %v1255_v8 = vpop.f32.mrb[10].mxu1 }
 0x5d2   : > { %v1256_v9 = vadd.f32 %v1255_v8, %v1154_v52  ;;  %v1257_v10 = vpop.f32.mrb[11].mxu1  ;;  %v1086_v8 = vmul.f32 1.442695, %v2849_v59 }
 0x5d3   : > { %v1258_v11 = vadd.f32 %v1257_v10, %v1158_v53  ;;  %v1266_v12 = vmax.f32 %v1252_v5, %v1254_v7 }
 0x5d5   : > { %1267 = vmax.xlane.f32.xlu0 %v1266_v12  ;;  %v1269_v13 = vmax.f32 %v1256_v9, %v1258_v11 }
 0x5d7   : > { %1270 = vmax.xlane.f32.xlu1 %v1269_v13 }
 0x5e8   : > { %1403 = vrot.lane.b32.xlu1 %v1395_v20, %s2488_s28 }
 0x5eb   : > { %1384 = vrot.lane.b32.xlu0 %v1835_v18, %s2488_s28 }
 0x5ec   : > { %1405 = vrot.lane.b32.xlu1 %v1396_v24, %s2488_s28 }
 0x5ef   : > { %1409 = vrot.lane.b32.xlu0 %v1398_v26, %s2488_s28 }
 0x5f0   : > { %1407 = vrot.lane.b32.xlu1 %v1397_v27, %s2488_s28 }
 0x5f4   : > { %1424 = vrot.lane.b32.xlu1 %v1836_v28, %s2488_s28 }
 0x65a   : > { %v1262_v29 = vpop.xlane.xlu0 %1261 }
 0x65b   : > { %v2911_v30 = vsub.f32 %v1242_v55, %v1262_v29  ;;  %v2913_v31 = vsub.f32 %v1244_v58, %v1262_v29 }
 0x65c   : > { %v1265_v32 = vpop.xlane.xlu1 %1264 }
 0x65d   : > { %v1280_v33 = vmul.f32 1.442695, %v2911_v30  ;;  %v1282_v34 = vmul.f32 1.442695, %v2913_v31  ;;  %v2917_v35 = vsub.f32 %v1246_v62, %v1265_v32  ;;  %v2919_v36 = vsub.f32 %v1248_v1, %v1265_v32 }
 0x65f   : > { %2156 = vpow2.f32 %v1280_v33  ;;  %v1284_v37 = vmul.f32 1.442695, %v2917_v35  ;;  %v1286_v38 = vmul.f32 1.442695, %v2919_v36 }
 0x660   : > { %2158 = vpow2.f32 %v1282_v34 }
 0x661   : > { %2160 = vpow2.f32 %v1284_v37 }
 0x662   : > { %2162 = vpow2.f32 %v1286_v38  ;;  %v1268_v39 = vpop.xlane.xlu0 %1267 }
 0x663   : > { %v2923_v40 = vsub.f32 %v1252_v5, %v1268_v39  ;;  %v2925_v41 = vsub.f32 %v1254_v7, %v1268_v39 }
 0x664   : > { %v1271_v42 = vpop.xlane.xlu1 %1270 }
 0x665   : > { %v1288_v43 = vmul.f32 1.442695, %v2923_v40  ;;  %v1290_v44 = vmul.f32 1.442695, %v2925_v41  ;;  %v2929_v45 = vsub.f32 %v1256_v9, %v1271_v42  ;;  %v2931_v46 = vsub.f32 %v1258_v11, %v1271_v42 }
 0x666   : > { %v1385_v5 = vpop.permute.xlu0 %1384 }
 0x667   : > { %2164 = vpow2.f32 %v1288_v43  ;;  %v1292_v48 = vmul.f32 1.442695, %v2929_v45  ;;  %v1294_v49 = vmul.f32 1.442695, %v2931_v46 }
 0x668   : > { %2166 = vpow2.f32 %v1290_v44  ;;  %v1404_v51 = vpop.permute.xlu1 %1403 }
 0x669   : > { %v2936_v52 = vpop.eup %2156  ;;  %2168 = vpow2.f32 %v1292_v48 }
 0x66a   : > { %v2938_v53 = vpop.eup %2158  ;;  %2170 = vpow2.f32 %v1294_v49  ;;  %v1410_v19 = vpop.permute.xlu0 %1409 }
 0x66b   : > { %v2940_v54 = vpop.eup %2160  ;;  %2172 = vpow2.f32 %v1088_v50  ;;  %v1296_v55 = vadd.f32 %v2938_v53, %v2936_v52 }
 0x66c   : > { %v2945_v58 = vpop.eup %2162  ;;  %v1406_v60 = vpop.permute.xlu1 %1405  ;;  %2174 = vpow2.f32 %v1090_v56 }
 0x66d   : > { %1297 = vadd.xlane.f32.xlu0 %v1296_v55  ;;  %v1299_v62 = vadd.f32 %v2945_v58, %v2940_v54  ;;  %2176 = vpow2.f32 %v1092_v63 }
 0x66e   : > { %2178 = vpow2.f32 %v1086_v8 }
 0x66f   : > { %1300 = vadd.xlane.f32.xlu1 %v1299_v62 }
 0x670   : > { %v1408_v2 = vpop.permute.xlu1 %1407 }
 0x671   : > { %v2950_v1 = vpop.eup %2164 }
 0x672   : > { %v2952_v3 = vpop.eup %2166 }
 0x673   : > { %v2954_v4 = vpop.eup %2168  ;;  %v1302_v6 = vadd.f32 %v2952_v3, %v2950_v1 }
 0x674   : > { %v2958_v7 = vpop.eup %2170  ;;  %v1425_v11 = vpop.permute.xlu1 %1424 }
 0x675   : > { %v2173_v9 = vpop.eup %2172  ;;  %1303 = vadd.xlane.f32.xlu0 %v1302_v6  ;;  %v1305_v12 = vadd.f32 %v2958_v7, %v2954_v4  ;;  %v2197_v6 = vld [vmem:[%s2794_s18] sm:$0xff] }
 0x676   : > { %v1388_v10 = vmul.f32 %v2173_v9, %v1385_v5  ;;  %v2175_v14 = vpop.eup %2174  ;;  %v1336_v8 = vunpack.c.l.bf16 %v2197_v6  ;;  %v1337_v9 = vunpack.c.h.bf16 %v2197_v6 }
 0x677   : > { %v1389_v15 = vmul.f32 %v2175_v14, %v1385_v5  ;;  %v2177_v18 = vpop.eup %2176 }
 0x678   : > { %v1416_v13 = vadd.f32 %v1406_v60, %v1388_v10  ;;  %v1390_v20 = vmul.f32 %v2177_v18, %v1385_v5  ;;  %v2179_v24 = vpop.eup %2178  ;;  %v2196_v60 = vld [vmem:[%s2794_s18 + $0x8] sm:$0xff] }
 0x679   : > { %1306 = vadd.xlane.f32.xlu0 %v1305_v12  ;;  %v1417_v17 = vadd.f32 %v1408_v2, %v1389_v15  ;;  %v1387_v27 = vmul.f32 %v2179_v24, %v1385_v5  ;;  %v1338_v62 = vunpack.c.l.bf16 %v2196_v60  ;;  %v1339_v63 = vunpack.c.h.bf16 %v2196_v60 }
 0x67a   : > { %v1428_v16 = vadd.f32 %v1425_v11, %v1416_v13  ;;  %v1418_v23 = vadd.f32 %v1410_v19, %v1390_v20 }
 0x67b   : > { %v1429_v21 = vadd.f32 %v1425_v11, %v1417_v17  ;;  %v1415_v29 = vadd.f32 %v1404_v51, %v1387_v27 }
 0x67c   : > { %v1432_v22 = vsub.f32 %v1428_v16, %v2864_v0  ;;  %v1430_v25 = vadd.f32 %v1425_v11, %v1418_v23  ;;  %v2198_v23 = vld [vmem:[%s2794_s18 + $0x10] sm:$0xff] }
 0x67d   : > { %v1433_v26 = vsub.f32 %v1429_v21, %v2847_v57  ;;  %v1427_v32 = vadd.f32 %v1425_v11, %v1415_v29  ;;  %v1341_v24 = vunpack.c.h.bf16 %v2198_v23 }
 0x67e   : > { %v1434_v28 = vsub.f32 %v1430_v25, %v2857_v61 }
 0x67f   : > { %v1431_v33 = vsub.f32 %v1427_v32, %v2849_v59  ;;  %v2199_v32 = vld [vmem:[%s2794_s18 + $0x18] sm:$0xff]  ;;  %s1541_s18 = sand.u32 1, %s2580_s25   ;;  %s2489_s25 = smov [#allocation12]  }
 0x680   : > { %1441 = vrot.lane.b32.xlu1 %v1432_v22, %s2488_s28  ;;  %s2346_s13 = sshll.u32 %s2489_s25, 4  ;;  %s2347_s13 = int_to_ptr.vmem [resolvable:$false] %s2346_s13 }
 0x681   : > { %s2348_s0 = scalar_lea.vmem %s2347_s13, 1024  ;;  %p2349_p12 = scmp.lt.s32.totalorder %s3013_s29, %s2347_s13 }
 0x682   : > { %p2350_p1 = scmp.lt.s32.totalorder %s2348_s0, %s2342_s21 }
 0x684   : > { %1443 = vrot.lane.b32.xlu1 %v1433_v26, %s2488_s28  ;;  %p2351_p2 = por %p2350_p1, %p2349_p12 }
 0x686   : > { %p2352_p13 = pnand %p2351_p2, %p2345_p7 }
 0x688   : > { %1445 = vrot.lane.b32.xlu1 %v1434_v28, %s2488_s28 }
 0x68f   : > { %1439 = vrot.lane.b32.xlu0 %v1431_v33, %s2488_s28  ;;  %v1342_v33 = vunpack.c.l.bf16 %v2199_v32  ;;  %s3015_s28 = scalar_lea.sflag [#allocation13], %s1541_s18 }
 0x6fa   : > { %v1298_v0 = vpop.xlane.xlu0 %1297 }
 0x6fb   : > { %2180 = vrcp.f32 %v1298_v0 }
 0x6fc   : > { %2182 = vlog2.f32 %v1298_v0  ;;  %v1301_v34 = vpop.xlane.xlu1 %1300  ;;  %v1343_v0 = vunpack.c.h.bf16 %v2199_v32 }
 0x6fd   : > { %2184 = vrcp.f32 %v1301_v34 }
 0x6fe   : > { %2186 = vlog2.f32 %v1301_v34 }
 0x700   : > { %v1442_v57 = vpop.permute.xlu1 %1441 }
 0x701   : > { %v1454_v37 = vsel %vm1094_vm8, %v1442_v57, 0.0 }
 0x702   : > { %1455 = vadd.xlane.f32.xlu1 %v1454_v37  ;;  %v1304_v38 = vpop.xlane.xlu0 %1303 }
 0x703   : > { %2188 = vrcp.f32 %v1304_v38 }
 0x704   : > { %2190 = vlog2.f32 %v1304_v38 }
 0x705   : > { %v2181_v61 = vpop.eup %2180 }
 0x706   : > { %v2183_v39 = vpop.eup %2182  ;;  %v1312_v59 = vmul.f32 %v2181_v61, %v2936_v52  ;;  %v1313_v42 = vmul.f32 %v2181_v61, %v2938_v53  ;;  %v1307_v43 = vpop.xlane.xlu0 %1306 }
 0x707   : > { %v2185_v44 = vpop.eup %2184  ;;  %2192 = vrcp.f32 %v1307_v43  ;;  %v1321_v55 = vmul.f32 0.6931472, %v2183_v39  ;;  %v1444_v53 = vpop.permute.xlu1 %1443 }
 0x708   : > { %v2187_v48 = vpop.eup %2186  ;;  %v1859_v49 = vpack.c.bf16 %v1313_v42, %v1312_v59  ;;  %v1314_v50 = vmul.f32 %v2185_v44, %v2940_v54  ;;  %v1315_v51 = vmul.f32 %v2185_v44, %v2945_v58  ;;  %2194 = vlog2.f32 %v1307_v43 }
 0x709   : > { %v1323_v56 = vmul.f32 0.6931472, %v2187_v48  ;;  %v1328_v13 = vsub.f32 %v2911_v30, %v1321_v55  ;;  %v1329_v14 = vsub.f32 %v2913_v31, %v1321_v55  ;;  %v1457_v18 = vsel %vm1094_vm8, %v1444_v53, 0.0 }
 0x70a   : > { %1503 = vst [vmem:[%s2978_s19] sm:$0xff] %v1859_v49  ;;  %v1860_v52 = vpack.c.bf16 %v1315_v51, %v1314_v50  ;;  %v1440_v2 = vpop.permute.xlu0 %1439  ;;  %v1340_v31 = vunpack.c.l.bf16 %v2198_v23 }
 0x70b   : > { %v1451_v5 = vsel %vm1094_vm8, %v1440_v2, 0.0  ;;  %v1330_v54 = vsub.f32 %v2917_v35, %v1323_v56  ;;  %v1331_v58 = vsub.f32 %v2919_v36, %v1323_v56  ;;  %v1446_v20 = vpop.permute.xlu1 %1445  ;;  %v1344_v22 = vmul.f32 %v1336_v8, %v1328_v13 }
 0x70c   : > { %1504 = vst [vmem:[%s2978_s19 + $0x8] sm:$0xff] %v1860_v52  ;;  %1452 = vadd.xlane.f32.xlu0 %v1451_v5  ;;  %v1345_v30 = vmul.f32 %v1337_v9, %v1329_v14  ;;  %v1460_v29 = vsel %vm1094_vm8, %v1446_v20, 0.0 }
 0x70d   : > { %v2189_v10 = vpop.eup %2188  ;;  %v1346_v11 = vmul.f32 %v1338_v62, %v1330_v54  ;;  %v1347_v12 = vmul.f32 %v1339_v63, %v1331_v58 }
 0x70e   : > { %v2191_v15 = vpop.eup %2190  ;;  %v1316_v16 = vmul.f32 %v2189_v10, %v2950_v1  ;;  %v1317_v35 = vmul.f32 %v2189_v10, %v2952_v3 }
 0x70f   : > { %v1325_v36 = vmul.f32 0.6931472, %v2191_v15  ;;  %v1355_v17 = vadd.f32 %v1347_v12, %v1346_v11 }
 0x710   : > { %v1861_v19 = vpack.c.bf16 %v1317_v35, %v1316_v16  ;;  %1458 = vadd.xlane.f32.xlu0 %v1457_v18 }
 0x711   : > { %v2193_v21 = vpop.eup %2192  ;;  %1356 = vadd.xlane.f32.xlu1 %v1355_v17  ;;  %v1332_v26 = vsub.f32 %v2923_v40, %v1325_v36  ;;  %v1333_v27 = vsub.f32 %v2925_v41, %v1325_v36 }
 0x712   : > { %v2195_v1 = vpop.eup %2194  ;;  %1505 = vst [vmem:[%s2978_s19 + $0x10] sm:$0xff] %v1861_v19  ;;  %v1318_v3 = vmul.f32 %v2193_v21, %v2954_v4  ;;  %v1319_v25 = vmul.f32 %v2193_v21, %v2958_v7  ;;  %v1352_v7 = vadd.f32 %v1345_v30, %v1344_v22 }
 0x713   : > { %v1327_v28 = vmul.f32 0.6931472, %v2195_v1  ;;  %v1348_v40 = vmul.f32 %v1340_v31, %v1332_v26  ;;  %v1349_v37 = vmul.f32 %v1341_v24, %v1333_v27 }
 0x714   : > { %v1862_v34 = vpack.c.bf16 %v1319_v25, %v1318_v3  ;;  %1461 = vadd.xlane.f32.xlu0 %v1460_v29 }
 0x715   : > { %v1334_v57 = vsub.f32 %v2929_v45, %v1327_v28  ;;  %v1335_v4 = vsub.f32 %v2931_v46, %v1327_v28  ;;  %v1358_v39 = vadd.f32 %v1349_v37, %v1348_v40 }
 0x716   : > { %1506 = vst [vmem:[%s2978_s19 + $0x18] sm:$0xff] %v1862_v34 }
 0x717   : > { %v1350_v41 = vmul.f32 %v1342_v33, %v1334_v57  ;;  %v1351_v38 = vmul.f32 %v1343_v0, %v1335_v4 }
 0x718   : > { %1353 = vadd.xlane.f32.xlu0 %v1352_v7 }
 0x719   : > { %v1361_v61 = vadd.f32 %v1351_v38, %v1350_v41 }
 0x71b   : > { %1362 = vadd.xlane.f32.xlu1 %v1361_v61 }
 0x71c   : > { %1359 = vadd.xlane.f32.xlu0 %v1358_v39 }
 0x71d   : > { %2355 = shalt.err (!%p2352_p13)
}
 0x71e   : > { %s2356_s19 = scalar_lea.hbm %s3010_s27, 512  ;;  %s2360_s11 = scalar_lea.hbm %s3206_s26, 1024 }
 0x71f   : > { %p2357_p9 = scmp.ne.s32.totalorder %s3010_s27, %s2356_s19  ;;  %p2361_p4 = scmp.lt.u32.totalorder %s3010_s27, %s3206_s26 }
 0x720   : > { %p2362_p8 = scmp.lt.u32.totalorder %s2360_s11, %s2356_s19  ;;  %p2364_p10 = scmp.lt.u32.totalorder %s2356_s19, %s3010_s27 }
 0x721   : > { %p2358_p0 = pnand %p2357_p9, %p2735_p3 }
 0x722   : > { %p2363_p6 = por %p2362_p8, %p2361_p4 }
 0x723   : > { %p2359_p11 = pneg %p2358_p0 }
 0x724   : > { %p2365_p5 = por %p2364_p10, %p2363_p6 }
 0x726   : > { %p2366_p7 = pnand %p2365_p5, %p2359_p11 }
 0x728   : > { %2369 = shalt.err (!%p2366_p7)
}
 0x729   : > { %s2490_s0 = smov 128   ;;  %s2491_s21 = smov 8  }
 0x72a   : > { %1974 = dma.vmem_to_hbm [thread:$0]  (%p2735_p3), %s3013_s29, 512, %s3010_s27, %s3015_s28, %s2490_s0, %s2490_s0, %s2491_s21  }
 0x72b   : > { %s3207_s15 = sld [smem:[#allocation27_spill]]  ;;  %s1560_s25 = sshll.u32 %s2852_s10, 4  ;;  %s3049_s25 = int_to_ptr.vmem [resolvable:$true] %s1560_s25 }
 0x72c   : > { %s1537_s13 = scalar_lea.sflag [#allocation4], %s2787_s12  ;;  %s2370_s1 = scalar_lea.vmem %s3049_s25, 512 }
 0x72d   : > { %p2371_p12 = scmp.ne.s32.totalorder %s3049_s25, %s2370_s1  ;;  %s2492_s2 = smov [#allocation11]  }
 0x72e   : > { %s2374_s3 = sshll.u32 %s2492_s2, 4  ;;  %s2375_s3 = int_to_ptr.vmem [resolvable:$false] %s2374_s3 }
 0x72f   : > { %p2372_p1 = pnand %p2371_p12, %p2735_p3  ;;  %s2376_s27 = scalar_lea.vmem %s2375_s3, 1024 }
 0x730   : > { %p2377_p13 = scmp.lt.s32.totalorder %s3049_s25, %s2375_s3  ;;  %p2378_p9 = scmp.lt.s32.totalorder %s2376_s27, %s2370_s1 }
 0x731   : > { %s3046_s11 = scalar_lea.hbm %s3207_s15, %s3004_s30  ;;  %p2373_p2 = pneg %p2372_p1 }
 0x732   : > { %p2379_p0 = por %p2378_p9, %p2377_p13 }
 0x734   : > { %p2380_p11 = pnand %p2379_p0, %p2373_p2 }
 0x736   : > { %2383 = shalt.err (!%p2380_p11)
}
 0x737   : > { %s2384_s10 = scalar_lea.hbm %s3046_s11, 512  ;;  %s2388_s2 = scalar_lea.hbm %s3207_s15, 1024 }
 0x738   : > { %p2385_p4 = scmp.ne.s32.totalorder %s3046_s11, %s2384_s10  ;;  %p2389_p10 = scmp.lt.u32.totalorder %s3046_s11, %s3207_s15 }
 0x739   : > { %p2390_p5 = scmp.lt.u32.totalorder %s2388_s2, %s2384_s10  ;;  %p2392_p12 = scmp.lt.u32.totalorder %s2384_s10, %s3046_s11 }
 0x73a   : > { %p2386_p8 = pnand %p2385_p4, %p2735_p3 }
 0x73b   : > { %p2391_p7 = por %p2390_p5, %p2389_p10 }
 0x73c   : > { %p2387_p6 = pneg %p2386_p8 }
 0x73d   : > { %p2393_p1 = por %p2392_p12, %p2391_p7 }
 0x73f   : > { %p2394_p2 = pnand %p2393_p1, %p2387_p6 }
 0x741   : > { %2397 = shalt.err (!%p2394_p2)
}
 0x742   : > { %1973 = dma.vmem_to_hbm [thread:$0]  (%p2735_p3), %s3049_s25, 512, %s3046_s11, %s1537_s13, %s2490_s0, %s2490_s0, %s2491_s21   ;;  %v1508_v42 = vand.u32 127, %v1151_v47 }
 0x743   : > { %s3083_s1 = scalar_lea.vmem [#allocation14], %s2790_s17  ;;  %s3208_s25 = sld [smem:[#allocation29_spill]] }
 0x744   : > { %vm1514_vm9 = vcmp.eq.s32.totalorder %v1508_v42, 1  ;;  %vm1509_vm10 = vcmp.eq.s32.totalorder %v1508_v42, 0  ;;  %vm1523_vm11 = vcmp.eq.s32.totalorder %v1508_v42, 2  ;;  %s1593_s12 = sshll.u32 %s3083_s1, 4  ;;  %s2493_s10 = smov [#allocation14]   ;;  %s3097_s12 = int_to_ptr.vmem [resolvable:$true] %s1593_s12 }
 0x745   : > { %s2398_s27 = scalar_lea.vmem %s3097_s12, 512  ;;  %s2402_s29 = sshll.u32 %s2493_s10, 4  ;;  %s2403_s29 = int_to_ptr.vmem [resolvable:$false] %s2402_s29 }
 0x746   : > { %p2399_p13 = scmp.ne.s32.totalorder %s3097_s12, %s2398_s27  ;;  %s2404_s18 = scalar_lea.vmem %s2403_s29, 1024 }
 0x747   : > { %p2405_p11 = scmp.lt.s32.totalorder %s3097_s12, %s2403_s29  ;;  %p2406_p4 = scmp.lt.s32.totalorder %s2404_s18, %s2398_s27 }
 0x748   : > { %p2400_p9 = pnand %p2399_p13, %p2735_p3 }
 0x749   : > { %s3103_s13 = scalar_lea.hbm %s3208_s25, %s3004_s30  ;;  %p2407_p8 = por %p2406_p4, %p2405_p11 }
 0x74a   : > { %p2401_p0 = pneg %p2400_p9 }
 0x74c   : > { %p2408_p6 = pnand %p2407_p8, %p2401_p0 }
 0x78f   : > { %v1456_v45 = vpop.xlane.xlu1 %1455 }
 0x790   : > { %v1838_v46 = vadd.f32 -64.0, %v1456_v45 }
 0x792   : > { %v1468_v43 = vmul.f32 0.5, %v1838_v46 }
 0x794   : > { %v1516_v51 = vsel %vm1514_vm9, %v1468_v43, 0.0 }
 0x799   : > { %v1453_v59 = vpop.xlane.xlu0 %1452 }
 0x79a   : > { %v1837_v50 = vadd.f32 -64.0, %v1453_v59 }
 0x79c   : > { %v1467_v47 = vmul.f32 0.5, %v1837_v50 }
 0x79d   : > { %v1459_v44 = vpop.xlane.xlu0 %1458 }
 0x79e   : > { %v1357_v48 = vpop.xlane.xlu1 %1356  ;;  %v1839_v2 = vadd.f32 -64.0, %v1459_v44  ;;  %v1515_v6 = vsel %vm1514_vm9, %v1467_v47, 0.0 }
 0x79f   : > { %v1365_v49 = vsub.f32 0.0, %v1357_v48 }
 0x7a0   : > { %v1469_v8 = vmul.f32 0.5, %v1839_v2 }
 0x7a1   : > { %v1472_v55 = vadd.f32 %v1468_v43, %v1365_v49  ;;  %v1511_v56 = vsel %vm1509_vm10, %v1365_v49, 0.0  ;;  %v1462_v60 = vpop.xlane.xlu0 %1461 }
 0x7a2   : > { %v1520_v62 = vadd.f32 %v1516_v51, %v1511_v56  ;;  %v1840_v52 = vadd.f32 -64.0, %v1462_v60  ;;  %v1517_v19 = vsel %vm1514_vm9, %v1469_v8, 0.0 }
 0x7a3   : > { %v1525_v63 = vsel %vm1523_vm11, %v1472_v55, 0.0 }
 0x7a4   : > { %v1529_v53 = vadd.f32 %v1525_v63, %v1520_v62  ;;  %v1470_v58 = vmul.f32 0.5, %v1840_v52 }
 0x7a5   : > { %v1354_v5 = vpop.xlane.xlu0 %1353 }
 0x7a6   : > { %1533 = vst [vmem:[%s3083_s1 + $0x8] sm:$0xff] %v1529_v53  ;;  %v1364_v54 = vsub.f32 0.0, %v1354_v5  ;;  %v1518_v35 = vsel %vm1514_vm9, %v1470_v58, 0.0 }
 0x7a8   : > { %v1471_v9 = vadd.f32 %v1467_v47, %v1364_v54  ;;  %v1510_v10 = vsel %vm1509_vm10, %v1364_v54, 0.0  ;;  %v1363_v11 = vpop.xlane.xlu1 %1362 }
 0x7a9   : > { %v1519_v12 = vadd.f32 %v1515_v6, %v1510_v10  ;;  %v1367_v13 = vsub.f32 0.0, %v1363_v11  ;;  %v1360_v14 = vpop.xlane.xlu0 %1359 }
 0x7aa   : > { %v1524_v15 = vsel %vm1523_vm11, %v1471_v9, 0.0  ;;  %v1366_v16 = vsub.f32 0.0, %v1360_v14 }
 0x7ab   : > { %v1528_v36 = vadd.f32 %v1524_v15, %v1519_v12  ;;  %v1474_v17 = vadd.f32 %v1470_v58, %v1367_v13  ;;  %v1513_v18 = vsel %vm1509_vm10, %v1367_v13, 0.0 }
 0x7ac   : > { %v1522_v20 = vadd.f32 %v1518_v35, %v1513_v18  ;;  %v1473_v21 = vadd.f32 %v1469_v8, %v1366_v16  ;;  %v1512_v22 = vsel %vm1509_vm10, %v1366_v16, 0.0 }
 0x7ad   : > { %1532 = vst [vmem:[%s3083_s1] sm:$0xff] %v1528_v36  ;;  %v1527_v30 = vsel %vm1523_vm11, %v1474_v17, 0.0  ;;  %v1521_v23 = vadd.f32 %v1517_v19, %v1512_v22 }
 0x7ae   : > { %v1531_v31 = vadd.f32 %v1527_v30, %v1522_v20  ;;  %v1526_v24 = vsel %vm1523_vm11, %v1473_v21, 0.0 }
 0x7af   : > { %v1530_v1 = vadd.f32 %v1526_v24, %v1521_v23 }
 0x7b0   : > { %1535 = vst [vmem:[%s3083_s1 + $0x18] sm:$0xff] %v1531_v31 }
 0x7b1   : > { %1534 = vst [vmem:[%s3083_s1 + $0x10] sm:$0xff] %v1530_v1 }
 0x7b2   : > { %2411 = shalt.err (!%p2408_p6)
}
 0x7b3   : > { %s2412_s30 = scalar_lea.hbm %s3103_s13, 512  ;;  %s2416_s3 = scalar_lea.hbm %s3208_s25, 1024 }
 0x7b4   : > { %p2413_p10 = scmp.ne.s32.totalorder %s3103_s13, %s2412_s30  ;;  %p2417_p12 = scmp.lt.u32.totalorder %s3103_s13, %s3208_s25 }
 0x7b5   : > { %p2418_p1 = scmp.lt.u32.totalorder %s2416_s3, %s2412_s30  ;;  %p2420_p13 = scmp.lt.u32.totalorder %s2412_s30, %s3103_s13 }
 0x7b6   : > { %p2414_p5 = pnand %p2413_p10, %p2735_p3 }
 0x7b7   : > { %p2419_p2 = por %p2418_p1, %p2417_p12 }
 0x7b8   : > { %p2415_p7 = pneg %p2414_p5 }
 0x7b9   : > { %p2421_p9 = por %p2420_p13, %p2419_p2 }
 0x7bb   : > { %p2422_p0 = pnand %p2421_p9, %p2415_p7 }
 0x7bd   : > { %2425 = shalt.err (!%p2422_p0)
}
 0x7be   : > { %1975 = dma.vmem_to_hbm [thread:$0]  (%p2735_p3), %s3097_s12, 512, %s3103_s13, %s3015_s28, %s2490_s0, %s2490_s0, %s2491_s21  }
 0x7bf PF: > { %s3209_s11 = sld [smem:[#allocation20_spill]]  ;;  %s3210_s27 = sld [smem:[#allocation21_spill]] }
 0x7c0   : > { %p3212_p4 = scmp.ge.s32.totalorder %s2476_s24, 2 }
 0x7c5   : > { %s1608_s10 = sand.u32 1, %s3209_s11   ;;  %p3211_p11 = scmp.ne.s32.totalorder %s3210_s27, 0 }
 0x7c6   : > { %s1609_s29 = scalar_lea.sflag [#allocation4], %s1608_s10 }
 0x7c7   : > { %p1997_p8 = pnand %p3212_p4, %p3211_p11 }
 0x7c9   : > { %2455 = dma.done.wait (!%p1997_p8), %s1609_s29, 512  }
 0x7ca   : > { %2457 = vsyncadd (!%p1997_p8), %s1609_s29, 4294966784  ;;  %s3213_s14 = sadd.s32 4294967294, %s2476_s24  }
 0x7cb   : > { %s1617_s18 = sand.u32 1, %s3213_s14  }
 0x7cc   : > { %s1618_s30 = scalar_lea.sflag [#allocation13], %s1617_s18 }
 0x7cd   : > { %2459 = dma.done.wait (!%p1997_p8), %s1618_s30, 1024  }
 0x7ce   : > { %2461 = vsyncadd (!%p1997_p8), %s1618_s30, 4294966272  ;;  %p31_p3 = scmp.ge.s32.totalorder %s2722_s9, 4   ;;  %s3214_s21 = smov %s2468_s22 }
 0x7cf   : > { %s3215_s22 = smov %s2472_s23  ;;  %s3216_s23 = smov %s2731_s20 }
 0x7d0   : > { %s3217_s24 = smov %s2722_s9  ;;  %33 = sbr.rel (!%p31_p3) target bundleno = 18 (0x12), region = 153 }
 0x7d7   :  { %1632 = vsyncpa [#allocation3], 1 }
 0x7d8   :  { %1634 = vsyncpa [#allocation3 + $0x1], 1 }
 0x7d9   :  { %1635 = vsyncpa [#allocation6], 1 }
 0x7da   :  { %1636 = vsyncpa [#allocation9], 1 }
 0x7db   :  { %1637 = vsyncpa [#allocation4], 1 }
 0x7dc   :  { %1639 = vsyncpa [#allocation4 + $0x1], 1 }
 0x7dd   :  { %1640 = vsyncpa [#allocation13], 1 }
 0x7de   :  { %1642 = vsyncpa [#allocation13 + $0x1], 1 }

// kernel: tpu_custom_call.1
= control target key start
LH: loop header
LB: loop body
LE: loop exit
PB: predicated region body
PF: predicated region fallthrough
CT: control target
= control target key end

     0   :  { %s3152_s0 = inlined_call_operand.hbm [shape: bf16[64,256], index: 0, kind: input, shape index: {}]   ;;  %s3153_s1 = inlined_call_operand.hbm [shape: bf16[256,128], index: 1, kind: input, shape index: {}]   ;;  %s3154_s2 = inlined_call_operand.vmem [shape: f32[1,128], index: 2, kind: input, shape index: {}]   ;;  %s3155_s3 = inlined_call_operand.hbm [shape: bf16[128,128], index: 3, kind: input, shape index: {}]   ;;  %s3156_s4 = inlined_call_operand.vmem [shape: f32[1,128], index: 4, kind: input, shape index: {}]   ;;  %s3157_s5 = inlined_call_operand.hbm [shape: bf16[128,128], index: 5, kind: input, shape index: {}]   ;;  %s3158_s6 = inlined_call_operand.vmem [shape: f32[1,128], index: 6, kind: input, shape index: {}]   ;;  %s3159_s7 = inlined_call_operand.hbm [shape: bf16[64,256], index: 7, kind: input, shape index: {}]   ;;  %s3160_s8 = inlined_call_operand.vmem [shape: f32[1,256], index: 8, kind: input, shape index: {}]   ;;  %s3161_s9 = inlined_call_operand.vmem [shape: f32[3,64], index: 9, kind: input, shape index: {}]   ;;  %s3162_s10 = inlined_call_operand.hbm [shape: f32[64,64], index: 10, kind: output, shape index: {0}]   ;;  %s3163_s11 = inlined_call_operand.hbm [shape: bf16[64,256], index: 11, kind: output, shape index: {1}]   ;;  %s3164_s12 = inlined_call_operand.hbm [shape: f32[64,128], index: 12, kind: output, shape index: {2}]  }
   0x1   :  { %3175 = sst [smem:[#allocation22_spill]] %s3152_s0 }
   0x2   :  { %3176 = sst [smem:[#allocation23_spill]] %s3153_s1 }
   0x3   :  { %3177 = sst [smem:[#allocation24_spill]] %s3154_s2 }
   0x4   :  { %3178 = sst [smem:[#allocation25_spill]] %s3155_s3 }
   0x5   :  { %3179 = sst [smem:[#allocation26_spill]] %s3161_s9 }
   0x6   :  { %3180 = sst [smem:[#allocation27_spill]] %s3162_s10 }
   0x7   :  { %3181 = sst [smem:[#allocation28_spill]] %s3163_s11 }
   0x8   :  { %3182 = sst [smem:[#allocation29_spill]] %s3164_s12 }
   0x9   :  { %18 = vsyncpa [#allocation3], 0 }
   0xa   :  { %20 = vsyncpa [#allocation3 + $0x1], 0 }
   0xb   :  { %21 = vsyncpa [#allocation6], 0 }
   0xc   :  { %22 = vsyncpa [#allocation9], 0 }
   0xd   :  { %23 = vsyncpa [#allocation4], 0 }
   0xe   :  { %25 = vsyncpa [#allocation4 + $0x1], 0 }
   0xf   :  { %26 = vsyncpa [#allocation13], 0 }
  0x10   :  { %28 = vsyncpa [#allocation13 + $0x1], 0  ;;  %s2559_s21 = smov 0   ;;  %s2561_s22 = smov 0  }
  0x11   :  { %s2563_s23 = smov 0   ;;  %s2565_s24 = smov 0  }
  0x12 LB: > { %3183 = sst [smem:[#allocation20_spill]] %s2464_s21  ;;  %s2580_s25 = sadd.s32 4294967295, %s2476_s24   ;;  %s2476_s24 = sphi %s2565_s24, %s3217_s24   ;;  %s2472_s23 = sphi %s2563_s23, %s3216_s23   ;;  %s2468_s22 = sphi %s2561_s22, %s3215_s22   ;;  %s2464_s21 = sphi %s2559_s21, %s3214_s21  }
  0x13   : > { %s3165_s26 = sadd.s32 4294967294, %s2476_s24   ;;  %p54_p0 = scmp.ne.s32.totalorder %s2468_s22, %s2464_s21 }
  0x14   : > { %p3168_p1 = scmp.eq.s32.totalorder %s2580_s25, 0  ;;  %p273_p3 = scmp.eq.s32.totalorder %s3165_s26, 1 }
  0x15   : > { %p1766_p5 = scmp.ge.s32.totalorder %s2476_s24, 1  ;;  %p332_p7 = scmp.lt.s32.totalorder %s2476_s24, 3 }
  0x16   : > { %p2591_p4 = por %p3168_p1, %p54_p0  ;;  %p2596_p6 = por %p273_p3, %p54_p0 }
  0x17   : > { %p2601_p8 = pnand %p1766_p5, %p332_p7  ;;  %s2478_s30 = smov [#allocation5]  }
  0x18   : > { %s3184_s27 = scalar_select %p2591_p4, 1, 0 }
  0x19   : > { %s3185_s28 = scalar_select %p2596_p6, 1, 0 }
  0x1a   : > { %s3187_s29 = scalar_select %p2601_p8, 1, 0 }
  0x1b   : > { %3186 = sst [smem:[#allocation21_spill]] %s3185_s28  ;;  %s344_s13 = sshll.u32 %s2478_s30, 4  ;;  %s2605_s13 = int_to_ptr.vmem [resolvable:$true] %s344_s13 }
  0x1c   : > { %p1979_p9 = pneg %p2601_p8  ;;  %s2479_s15 = smov [#allocation8]  }
  0x1d   : > { %s376_s16 = sshll.u32 %s2479_s15, 4  ;;  %s2480_s17 = smov [#allocation7]   ;;  %s2616_s16 = int_to_ptr.vmem [resolvable:$true] %s376_s16 }
  0x1e   : > { %p2612_p11 = pnand %p1979_p9, %p3168_p1  ;;  %s2618_s18 = sshll.u32 %s2480_s17, 4  ;;  %s361_s18 = int_to_ptr.vmem [resolvable:$true] %s2618_s18 }
  0x1f   : > { %s3189_s1 = sld [smem:[#allocation23_spill]] }
  0x20   : > { %p2628_p13 = pneg %p2612_p11 }
  0x25   : > { %s2200_s30 = scalar_lea.hbm %s3189_s1, 2048 }
  0x26   : > { %p2201_p12 = scmp.ne.s32.totalorder %s3189_s1, %s2200_s30  ;;  %p2207_p5 = scmp.lt.u32.totalorder %s2200_s30, %s3189_s1 }
  0x28   : > { %p2203_p0 = pnand %p2628_p13, %p2201_p12 }
  0x2a   : > { %p2204_p3 = pneg %p2203_p0 }
  0x2c   : > { %p2209_p7 = pnand %p2207_p5, %p2204_p3 }
  0x2e   : > { %2212 = shalt.err (!%p2209_p7)
}
  0x2f   : > { %s2213_s26 = scalar_lea.vmem %s2605_s13, 2048  ;;  %p2221_p2 = scmp.lt.s32.totalorder %s2605_s13, %s2605_s13 }
  0x30   : > { %p2214_p9 = scmp.ne.s32.totalorder %s2605_s13, %s2213_s26  ;;  %p2222_p6 = scmp.lt.s32.totalorder %s2213_s26, %s2213_s26 }
  0x32   : > { %p2216_p10 = pnand %p2214_p9, %p2628_p13  ;;  %p2223_p12 = por %p2222_p6, %p2221_p2 }
  0x34   : > { %p2217_p1 = pneg %p2216_p10 }
  0x36   : > { %p2224_p0 = pnand %p2223_p12, %p2217_p1 }
  0x38   : > { %2227 = shalt.err (!%p2224_p0)
}
  0x39   : > { %s2481_s28 = smov 64   ;;  %s2482_s19 = smov 4  }
  0x3a   : > { %1982 = dma.hbm_to_vmem [thread:$0]  (!%p2612_p11), %s3189_s1, 2048, %s2605_s13, [#allocation6], %s2481_s28, %s2481_s28, %s2482_s19  }
  0x3b   : > { %s2228_s26 = scalar_lea.hbm %s3157_s5, 1024 }
  0x3c   : > { %p2229_p1 = scmp.ne.s32.totalorder %s3157_s5, %s2228_s26  ;;  %p2235_p10 = scmp.lt.u32.totalorder %s2228_s26, %s3157_s5 }
  0x3e   : > { %p2231_p2 = pnand %p2229_p1, %p2628_p13 }
  0x40   : > { %p2232_p6 = pneg %p2231_p2 }
  0x42   : > { %p2237_p3 = pnand %p2235_p10, %p2232_p6 }
  0x44   : > { %2240 = shalt.err (!%p2237_p3)
}
  0x45   : > { %s2241_s13 = scalar_lea.vmem %s2616_s16, 1024  ;;  %p2249_p12 = scmp.lt.s32.totalorder %s2616_s16, %s2616_s16 }
  0x46   : > { %p2242_p5 = scmp.ne.s32.totalorder %s2616_s16, %s2241_s13  ;;  %p2250_p0 = scmp.lt.s32.totalorder %s2241_s13, %s2241_s13 }
  0x48   : > { %p2244_p7 = pnand %p2242_p5, %p2628_p13  ;;  %p2251_p1 = por %p2250_p0, %p2249_p12 }
  0x4a   : > { %p2245_p9 = pneg %p2244_p7 }
  0x4c   : > { %p2252_p2 = pnand %p2251_p1, %p2245_p9 }
  0x4e   : > { %2255 = shalt.err (!%p2252_p2)
}
  0x4f   : > { %1988 = dma.hbm_to_vmem [thread:$0]  (!%p2612_p11), %s3157_s5, 1024, %s2616_s16, [#allocation9], %s2481_s28, %s2481_s28, %s2482_s19  }
  0x50   : > { %s3191_s3 = sld [smem:[#allocation25_spill]] }
  0x56   : > { %s2256_s20 = scalar_lea.hbm %s3191_s3, 1024 }
  0x57   : > { %p2257_p6 = scmp.ne.s32.totalorder %s3191_s3, %s2256_s20  ;;  %p2263_p5 = scmp.lt.u32.totalorder %s2256_s20, %s3191_s3 }
  0x59   : > { %p2259_p10 = pnand %p2257_p6, %p2628_p13 }
  0x5b   : > { %p2260_p3 = pneg %p2259_p10 }
  0x5d   : > { %p2265_p7 = pnand %p2263_p5, %p2260_p3 }
  0x5f   : > { %2268 = shalt.err (!%p2265_p7)
}
  0x60   : > { %s2269_s13 = scalar_lea.vmem %s361_s18, 1024  ;;  %p2277_p1 = scmp.lt.s32.totalorder %s361_s18, %s361_s18 }
  0x61   : > { %p2270_p9 = scmp.ne.s32.totalorder %s361_s18, %s2269_s13  ;;  %p2278_p2 = scmp.lt.s32.totalorder %s2269_s13, %s2269_s13 }
  0x63   : > { %p2272_p12 = pnand %p2270_p9, %p2628_p13  ;;  %p2279_p4 = por %p2278_p2, %p2277_p1 }
  0x65   : > { %p2273_p0 = pneg %p2272_p12 }
  0x67   : > { %p2280_p8 = pnand %p2279_p4, %p2273_p0 }
  0x69   : > { %2283 = shalt.err (!%p2280_p8)
}
  0x6a   : > { %1985 = dma.hbm_to_vmem [thread:$0]  (!%p2612_p11), %s3191_s3, 1024, %s361_s18, [#allocation6], %s2481_s28, %s2481_s28, %s2482_s19  }
  0x6b   : > { %s2483_s10 = smov [#allocation10]   ;;  %s2284_s30 = scalar_lea.hbm %s3159_s7, 1024 }
  0x6c   : > { %s392_s11 = sshll.u32 %s2483_s10, 4  ;;  %p2285_p4 = scmp.ne.s32.totalorder %s3159_s7, %s2284_s30  ;;  %s393_s11 = int_to_ptr.vmem [resolvable:$true] %s392_s11 }
  0x6d   : > { %p2291_p10 = scmp.lt.u32.totalorder %s2284_s30, %s3159_s7 }
  0x6e   : > { %p2287_p8 = pnand %p2285_p4, %p2628_p13 }
  0x70   : > { %p2288_p6 = pneg %p2287_p8 }
  0x72   : > { %p2293_p3 = pnand %p2291_p10, %p2288_p6 }
  0x74   : > { %2296 = shalt.err (!%p2293_p3)
}
  0x75   : > { %s2297_s18 = scalar_lea.vmem %s393_s11, 1024  ;;  %p2305_p12 = scmp.lt.s32.totalorder %s393_s11, %s393_s11 }
  0x76   : > { %p2298_p5 = scmp.ne.s32.totalorder %s393_s11, %s2297_s18  ;;  %p2306_p0 = scmp.lt.s32.totalorder %s2297_s18, %s2297_s18 }
  0x78   : > { %p2300_p7 = pnand %p2298_p5, %p2628_p13  ;;  %p2307_p1 = por %p2306_p0, %p2305_p12 }
  0x7a   : > { %p2301_p9 = pneg %p2300_p7 }
  0x7c   : > { %p2308_p2 = pnand %p2307_p1, %p2301_p9 }
  0x7e   : > { %2311 = shalt.err (!%p2308_p2)
}
  0x7f   : > { %s2484_s28 = smov 128   ;;  %s2485_s21 = smov 8  }
  0x80   : > { %1991 = dma.hbm_to_vmem [thread:$0]  (!%p2612_p11), %s3159_s7, 1024, %s393_s11, [#allocation9], %s2484_s28, %s2484_s28, %s2485_s21  }
  0x81   : > { %s2722_s9 = sadd.s32 1, %s2476_s24   ;;  %s41_s12 = sadd.s32 1, %s2472_s23 }
  0x82   : > { %s38_s10 = ssub.s32 %s2476_s24, %s2722_s9  ;;  %p48_p4 = scmp.ne.s32.totalorder %s2472_s23, %s2468_s22 }
  0x83   : > { %p39_p13 = scmp.eq.s32.totalorder %s38_s10, 0  ;;  %p49_p8 = scmp.eq.s32.totalorder %s2476_s24, 0 }
  0x84   : > { %p3192_p10 = scmp.eq.s32.totalorder %s2580_s25, 1  ;;  %p2010_p5 = scmp.lt.s32.totalorder %s2476_s24, 2 }
  0x85   : > { %s2731_s20 = scalar_select %p39_p13, %s2472_s23, %s41_s12  }
  0x86   : > { %p50_p6 = por %p49_p8, %p48_p4  ;;  %p2735_p3 = por %p3192_p10, %p48_p4 }
  0x87   : > { %s412_s30 = sand.u32 1, %s2472_s23   ;;  %s1858_s11 = sshll.u32 %s2476_s24, 9 }
  0x88   : > { %s1772_s15 = sshll.u32 %s412_s30, 5  ;;  %s3194_s0 = sld [smem:[#allocation22_spill]] }
  0x89   : > { %s416_s18 = scalar_lea.vmem [#allocation2], %s1772_s15  ;;  %p2749_p11 = pnand %p2010_p5, %p50_p6 }
  0x8a   : > { %s424_s19 = sshll.u32 %s416_s18, 4  ;;  %s2753_s10 = scalar_lea.sflag [#allocation3], %s412_s30  ;;  %s2747_s19 = int_to_ptr.vmem [resolvable:$true] %s424_s19 }
  0x8b   : > { %p2314_p9 = pneg %p2749_p11 }
  0x8e   : > { %s2745_s13 = scalar_lea.hbm %s3194_s0, %s1858_s11  ;;  %s2317_s17 = scalar_lea.hbm %s3194_s0, 1024 }
  0x8f   : > { %s2312_s12 = scalar_lea.hbm %s2745_s13, 512  ;;  %p2318_p1 = scmp.lt.u32.totalorder %s2745_s13, %s3194_s0 }
  0x90   : > { %p2313_p7 = scmp.ne.s32.totalorder %s2745_s13, %s2312_s12  ;;  %p2319_p2 = scmp.lt.u32.totalorder %s2317_s17, %s2312_s12 }
  0x91   : > { %p2321_p4 = scmp.lt.u32.totalorder %s2312_s12, %s2745_s13 }
  0x92   : > { %p2315_p12 = pnand %p2314_p9, %p2313_p7  ;;  %p2320_p13 = por %p2319_p2, %p2318_p1 }
  0x94   : > { %p2316_p0 = pneg %p2315_p12  ;;  %p2322_p8 = por %p2321_p4, %p2320_p13 }
  0x96   : > { %p2323_p6 = pnand %p2322_p8, %p2316_p0 }
  0x98   : > { %2326 = shalt.err (!%p2323_p6)
}
  0x99   : > { %s2327_s30 = scalar_lea.vmem %s2747_s19, 512  ;;  %s2486_s15 = smov [#allocation2]  }
  0x9a   : > { %p2328_p10 = scmp.ne.s32.totalorder %s2747_s19, %s2327_s30  ;;  %s2332_s11 = sshll.u32 %s2486_s15, 4  ;;  %s2333_s11 = int_to_ptr.vmem [resolvable:$false] %s2332_s11 }
  0x9b   : > { %s2334_s26 = scalar_lea.vmem %s2333_s11, 1024  ;;  %p2335_p12 = scmp.lt.s32.totalorder %s2747_s19, %s2333_s11 }
  0x9c   : > { %p2330_p5 = pnand %p2328_p10, %p2314_p9  ;;  %p2336_p1 = scmp.lt.s32.totalorder %s2334_s26, %s2327_s30 }
  0x9e   : > { %p2331_p7 = pneg %p2330_p5  ;;  %p2337_p2 = por %p2336_p1, %p2335_p12 }
  0xa0   : > { %p2338_p13 = pnand %p2337_p2, %p2331_p7 }
  0xa2   : > { %2341 = shalt.err (!%p2338_p13)
}
  0xa3   : > { %1995 = dma.hbm_to_vmem [thread:$0]  (!%p2749_p11), %s2745_s13, 512, %s2747_s19, %s2753_s10, %s2484_s28, %s2484_s28, %s2485_s21  }
  0xa4   : > { %p3196_p9 = scmp.ne.s32.totalorder %s3187_s29, 0 }
  0xa5   : > { %s2787_s12 = sand.u32 (!%p3196_p9), 1, %s2468_s22   ;;  %p3197_p0 = scmp.ne.s32.totalorder (!%p3196_p9), %s3184_s27, 0 }
  0xa6   : > { %436 = sbr.rel (%p3196_p9) target bundleno = 1983 (0x7bf), region = 60  ;;  %s2790_s17 = sshll.u32 (!%p3196_p9), %s2787_s12, 5 }
  0xa7   : > { %s439_s16 = scalar_lea.sflag (!%p3196_p9), [#allocation3], %s2787_s12  ;;  %s2794_s18 = scalar_lea.vmem (!%p3196_p9), [#allocation2], %s2790_s17 }
  0xad   : > { %2443 = dma.done.wait (%p3197_p0), %s439_s16, 512  }
  0xae   : > { %2445 = vsyncadd (%p3197_p0), %s439_s16, 4294966784  ;;  %p3198_p11 = scmp.eq.s32.totalorder %s2580_s25, 0 }
  0xb0   : > { %2447 = dma.done.wait (%p3198_p11), [#allocation6], 3072   ;;  %p3199_p4 = pmov %p3198_p11 }
  0xb2   : > { %2449 = vsyncadd (%p3199_p4), [#allocation6], 4294964224  ;;  %p3200_p8 = pmov %p3199_p4 }
  0xb3   : > { %p3201_p6 = pmov %p3199_p4 }
  0xb4   : > { %2451 = dma.done.wait (%p3200_p8), [#allocation9], 2048  }
  0xb5   : > { %2453 = vsyncadd (%p3201_p6), [#allocation9], 4294965248  ;;  %v2060_v0 = vld [vmem:[#allocation5 + $0x40] sm:$0xff]   ;;  %v2062_v2 = vld [vmem:[#allocation5 + $0x48] sm:$0xff]   ;;  %s3202_s2 = sld [smem:[#allocation24_spill]]  ;;  %vm1094_vm8 = vcmask 523264  }
  0xb6   : > { %v2061_v1 = vld [vmem:[#allocation5] sm:$0xff]   ;;  %1867 = vmatprep.subr.bf16.mxu0 %v2060_v0  ;;  %v2063_v3 = vld [vmem:[#allocation5 + $0x8] sm:$0xff]   ;;  %v2064_v4 = vld [vmem:[#allocation5 + $0x50] sm:$0xff]   ;;  %s2852_s10 = scalar_lea.vmem [#allocation11], %s2790_s17  ;;  %s3205_s16 = sld [smem:[#allocation26_spill]] }
  0xb7   : > { %1868 = vmatpush3.bf16.msra.mxu0 %v2061_v1  ;;  %v2065_v5 = vld [vmem:[#allocation5 + $0x10] sm:$0xff]   ;;  %v2066_v6 = vld [vmem:[#allocation5 + $0x58] sm:$0xff]   ;;  %v2068_v8 = vld [vmem:[#allocation5 + $0x60] sm:$0xff]   ;;  %s2488_s28 = smov 64   ;;  %s2978_s19 = scalar_lea.vmem [#allocation12], %s2790_s17 }
  0xb8   : > { %1869 = vmatprep.subr.bf16.mxu0 %v2062_v2  ;;  %v2067_v7 = vld [vmem:[#allocation5 + $0x18] sm:$0xff]   ;;  %v2069_v9 = vld [vmem:[#allocation5 + $0x20] sm:$0xff]   ;;  %v2070_v10 = vld [vmem:[#allocation5 + $0x68] sm:$0xff]   ;;  %s3004_s30 = sshll.u32 %s2580_s25, 9  ;;  %s3206_s26 = sld [smem:[#allocation28_spill]] }
  0xb9   : > { %v514_v11 = vld [vmem:[%s2794_s18] sm:$0xff]  ;;  %v515_v12 = vld [vmem:[%s2794_s18 + $0x8] sm:$0xff]  ;;  %v2072_v15 = vld [vmem:[#allocation5 + $0x70] sm:$0xff]   ;;  %s1577_s29 = sshll.u32 %s2978_s19, 4  ;;  %s3013_s29 = int_to_ptr.vmem [resolvable:$true] %s1577_s29 }
  0xba   : > { %v2071_v13 = vld [vmem:[#allocation5 + $0x28] sm:$0xff]   ;;  %v1787_v14 = vcombine.high %v514_v11, %v515_v12  ;;  %v2073_v16 = vld [vmem:[#allocation5 + $0x30] sm:$0xff]   ;;  %v2074_v17 = vld [vmem:[#allocation5 + $0x78] sm:$0xff]   ;;  %v1786_v21 = vcombine.low %v514_v11, %v515_v12  ;;  %s2342_s21 = scalar_lea.vmem %s3013_s29, 512 }
  0xbb   : > { %1870 = vmatpush3.bf16.msra.mxu0 %v2063_v3  ;;  %v2075_v18 = vld [vmem:[#allocation5 + $0x38] sm:$0xff]   ;;  %v516_v19 = vld [vmem:[%s2794_s18 + $0x10] sm:$0xff]  ;;  %v2080_v24 = vld [vmem:[#allocation7] sm:$0xff]   ;;  %p2343_p10 = scmp.ne.s32.totalorder %s3013_s29, %s2342_s21 }
  0xbc   : > { %1871 = vmatprep.subr.bf16.mxu0 %v2064_v4  ;;  %705 = vmatprep.mubr.bf16.mxu0 %v1787_v14  ;;  %v517_v20 = vld [vmem:[%s2794_s18 + $0x18] sm:$0xff]  ;;  %v2081_v25 = vld [vmem:[#allocation7 + $0x8] sm:$0xff]   ;;  %v2082_v26 = vld [vmem:[#allocation7 + $0x10] sm:$0xff]  }
  0xbd   : > { %v1789_v22 = vcombine.high %v516_v19, %v517_v20  ;;  %v1788_v23 = vcombine.low %v516_v19, %v517_v20  ;;  %1915 = vmatprep.subr.bf16.mxu1 %v2080_v24  ;;  %v2083_v27 = vld [vmem:[#allocation7 + $0x18] sm:$0xff]   ;;  %v2084_v28 = vld [vmem:[#allocation7 + $0x20] sm:$0xff]   ;;  %v2085_v29 = vld [vmem:[#allocation7 + $0x28] sm:$0xff]   ;;  %p2344_p5 = pnand %p2343_p10, %p2735_p3 }
  0xbe   : > { %1916 = vmatpush3.bf16.msra.mxu1 %v2080_v24  ;;  %v2086_v30 = vld [vmem:[#allocation7 + $0x30] sm:$0xff]   ;;  %v2087_v31 = vld [vmem:[#allocation7 + $0x38] sm:$0xff]   ;;  %v1785_v33 = vld [vmem:[%s3202_s2] ss:$0 sm:$0xff]  ;;  %s3010_s27 = scalar_lea.hbm %s3206_s26, %s3004_s30 }
  0xbf   : > { %1872 = vmatpush3.bf16.msra.mxu0 %v2065_v5  ;;  %1917 = vmatprep.subr.bf16.mxu1 %v2081_v25  ;;  %p2345_p7 = pneg %p2344_p5 }
  0xc0   : > { %1873 = vmatprep.subr.bf16.mxu0 %v2066_v6 }
  0xc2   : > { %1918 = vmatpush3.bf16.msra.mxu1 %v2081_v25 }
  0xc3   : > { %1874 = vmatpush3.bf16.msra.mxu0 %v2067_v7  ;;  %1919 = vmatprep.subr.bf16.mxu1 %v2082_v26 }
  0xc4   : > { %1875 = vmatprep.subr.bf16.mxu0 %v2068_v8 }
  0xc6   : > { %1920 = vmatpush3.bf16.msra.mxu1 %v2082_v26 }
  0xc7   : > { %1876 = vmatpush3.bf16.msra.mxu0 %v2069_v9  ;;  %1921 = vmatprep.subr.bf16.mxu1 %v2083_v27 }
  0xc8   : > { %1877 = vmatprep.subr.bf16.mxu0 %v2070_v10 }
  0xca   : > { %1922 = vmatpush3.bf16.msra.mxu1 %v2083_v27 }
  0xcb   : > { %1878 = vmatpush3.bf16.msra.mxu0 %v2071_v13  ;;  %1923 = vmatprep.subr.bf16.mxu1 %v2084_v28 }
  0xcc   : > { %1879 = vmatprep.subr.bf16.mxu0 %v2072_v15 }
  0xce   : > { %1924 = vmatpush3.bf16.msra.mxu1 %v2084_v28 }
  0xcf   : > { %1880 = vmatpush3.bf16.msra.mxu0 %v2073_v16  ;;  %1925 = vmatprep.subr.bf16.mxu1 %v2085_v29 }
  0xd0   : > { %1881 = vmatprep.subr.bf16.mxu0 %v2074_v17 }
  0xd2   : > { %1926 = vmatpush3.bf16.msra.mxu1 %v2085_v29 }
  0xd3   : > { %1882 = vmatpush3.bf16.msra.mxu0 %v2075_v18  ;;  %1927 = vmatprep.subr.bf16.mxu1 %v2086_v30 }
  0xd6   : > { %706 = vmatmul.mubr.bf16.vlgmr.msra.gmra.mrb[0].mxu0 %v1786_v21  ;;  %1928 = vmatpush3.bf16.msra.mxu1 %v2086_v30 }
  0xd7   : > { %713 = vmatprep.mubr.bf16.mxu0 %v1789_v22  ;;  %1929 = vmatprep.subr.bf16.mxu1 %v2087_v31 }
  0xda   : > { %1930 = vmatpush3.bf16.msra.mxu1 %v2087_v31 }
  0xde   : > { %714 = vmatmul.mubr.bf16.gmra.mrb[4].mxu0 %v1788_v23 }
 0x1a9   : > { %v1883_v32 = vpop.f32.mrb[0].mxu0 }
 0x1aa   : > { %v1884_v34 = vpop.f32.mrb[1].mxu0 }
 0x1ab   : > { %v1885_v35 = vadd.f32 %v1884_v34, %v1883_v32  ;;  %v1886_v36 = vpop.f32.mrb[2].mxu0 }
 0x1ac   : > { %v1887_v37 = vpop.f32.mrb[3].mxu0 }
 0x1ad   : > { %v708_v38 = vadd.f32 %v1885_v35, %v1785_v33  ;;  %v1888_v39 = vadd.f32 %v1887_v37, %v1886_v36 }
 0x1af   : > { %v726_v40 = vand.u32 2147483647, %v708_v38  ;;  %v711_v41 = vadd.f32 %v1888_v39, %v1785_v33  ;;  %v722_v20 = vmax.f32 %v708_v38, 0.0 }
 0x1b1   : > { %v730_v42 = vsub.f32 0.0, %v726_v40  ;;  %v727_v43 = vand.u32 2147483647, %v711_v41  ;;  %v1889_v44 = vpop.f32.mrb[4].mxu0  ;;  %v723_v21 = vmax.f32 %v711_v41, 0.0 }
 0x1b2   : > { %v1890_v45 = vpop.f32.mrb[5].mxu0 }
 0x1b3   : > { %v734_v46 = vmul.f32 1.442695, %v730_v42  ;;  %v731_v47 = vsub.f32 0.0, %v727_v43  ;;  %v1891_v48 = vadd.f32 %v1890_v45, %v1889_v44  ;;  %v1892_v49 = vpop.f32.mrb[6].mxu0  ;;  %v2088_v43 = vld [vmem:[#allocation8] sm:$0xff]   ;;  %v2089_v44 = vld [vmem:[#allocation8 + $0x8] sm:$0xff]  }
 0x1b4   : > { %v1893_v50 = vpop.f32.mrb[7].mxu0  ;;  %1935 = vmatprep.subr.bf16.mxu0 %v2088_v43  ;;  %v2090_v45 = vld [vmem:[#allocation8 + $0x10] sm:$0xff]  }
 0x1b5   : > { %2108 = vpow2.f32 %v734_v46  ;;  %v736_v51 = vmul.f32 1.442695, %v731_v47  ;;  %v2815_v52 = vadd.f32 %v1891_v48, %v1785_v33  ;;  %v1894_v53 = vadd.f32 %v1893_v50, %v1892_v49  ;;  %1936 = vmatpush3.bf16.msra.mxu0 %v2088_v43  ;;  %v2091_v46 = vld [vmem:[#allocation8 + $0x18] sm:$0xff]   ;;  %v2092_v47 = vld [vmem:[#allocation8 + $0x20] sm:$0xff]   ;;  %v2093_v48 = vld [vmem:[#allocation8 + $0x28] sm:$0xff]  }
 0x1b6   : > { %1937 = vmatprep.subr.bf16.mxu0 %v2089_v44  ;;  %v2094_v49 = vld [vmem:[#allocation8 + $0x30] sm:$0xff]   ;;  %v2095_v50 = vld [vmem:[#allocation8 + $0x38] sm:$0xff]  }
 0x1b7   : > { %2110 = vpow2.f32 %v736_v51  ;;  %v728_v54 = vand.u32 2147483647, %v2815_v52  ;;  %v719_v55 = vadd.f32 %v1894_v53, %v1785_v33  ;;  %v724_v37 = vmax.f32 %v2815_v52, 0.0  ;;  %v1806_v51 = vld [vmem:[%s3156_s4] ss:$0 sm:$0xff] }
 0x1b9   : > { %v732_v56 = vsub.f32 0.0, %v728_v54  ;;  %v729_v57 = vand.u32 2147483647, %v719_v55  ;;  %v725_v38 = vmax.f32 %v719_v55, 0.0  ;;  %1938 = vmatpush3.bf16.msra.mxu0 %v2089_v44 }
 0x1ba   : > { %1939 = vmatprep.subr.bf16.mxu0 %v2090_v45 }
 0x1bb   : > { %v738_v58 = vmul.f32 1.442695, %v732_v56  ;;  %v733_v59 = vsub.f32 0.0, %v729_v57 }
 0x1bd   : > { %2112 = vpow2.f32 %v738_v58  ;;  %v740_v60 = vmul.f32 1.442695, %v733_v59  ;;  %1940 = vmatpush3.bf16.msra.mxu0 %v2090_v45 }
 0x1be   : > { %1941 = vmatprep.subr.bf16.mxu0 %v2091_v46 }
 0x1bf   : > { %v2109_v61 = vpop.eup %2108  ;;  %2114 = vpow2.f32 %v740_v60 }
 0x1c0   : > { %v742_v62 = vadd.f32 1.0, %v2109_v61  ;;  %v745_v1 = vmul.f32 -0.5, %v2109_v61  ;;  %v748_v7 = vand.u32 2147483647, %v2109_v61 }
 0x1c1   : > { %v2111_v63 = vpop.eup %2110  ;;  %1942 = vmatpush3.bf16.msra.mxu0 %v2091_v46 }
 0x1c2   : > { %2116 = vlog2.f32 %v742_v62  ;;  %v751_v0 = vadd.f32 1.0, %v2111_v63  ;;  %v754_v3 = vmul.f32 -0.5, %v2111_v63  ;;  %v746_v6 = vadd.f32 1.0, %v745_v1  ;;  %1943 = vmatprep.subr.bf16.mxu0 %v2092_v47 }
 0x1c3   : > { %v757_v11 = vand.u32 2147483647, %v2111_v63  ;;  %vm749_vm0 = vcmp.lt.f32.partialorder %v748_v7, 0.0004427343 }
 0x1c4   : > { %2118 = vlog2.f32 %v751_v0  ;;  %v755_v9 = vadd.f32 1.0, %v754_v3  ;;  %v747_v13 = vmul.f32 %v2109_v61, %v746_v6 }
 0x1c5   : > { %vm758_vm1 = vcmp.lt.f32.partialorder %v757_v11, 0.0004427343  ;;  %1944 = vmatpush3.bf16.msra.mxu0 %v2092_v47 }
 0x1c6   : > { %v756_v18 = vmul.f32 %v2111_v63, %v755_v9  ;;  %1945 = vmatprep.subr.bf16.mxu0 %v2093_v48 }
 0x1c7   : > { %v2113_v2 = vpop.eup %2112 }
 0x1c8   : > { %v760_v4 = vadd.f32 1.0, %v2113_v2  ;;  %v763_v14 = vmul.f32 -0.5, %v2113_v2  ;;  %v766_v26 = vand.u32 2147483647, %v2113_v2 }
 0x1c9   : > { %v2115_v5 = vpop.eup %2114  ;;  %1946 = vmatpush3.bf16.msra.mxu0 %v2093_v48 }
 0x1ca   : > { %2120 = vlog2.f32 %v760_v4  ;;  %v769_v8 = vadd.f32 1.0, %v2115_v5  ;;  %v772_v19 = vmul.f32 -0.5, %v2115_v5  ;;  %v764_v23 = vadd.f32 1.0, %v763_v14  ;;  %1947 = vmatprep.subr.bf16.mxu0 %v2094_v49 }
 0x1cb   : > { %v775_v30 = vand.u32 2147483647, %v2115_v5  ;;  %vm767_vm2 = vcmp.lt.f32.partialorder %v766_v26, 0.0004427343 }
 0x1cc   : > { %v2117_v10 = vpop.eup %2116  ;;  %2122 = vlog2.f32 %v769_v8  ;;  %v773_v27 = vadd.f32 1.0, %v772_v19  ;;  %v765_v32 = vmul.f32 %v2113_v2, %v764_v23 }
 0x1cd   : > { %v744_v12 = vmul.f32 0.6931472, %v2117_v10  ;;  %vm776_vm3 = vcmp.lt.f32.partialorder %v775_v30, 0.0004427343  ;;  %1948 = vmatpush3.bf16.msra.mxu0 %v2094_v49 }
 0x1ce   : > { %v2119_v15 = vpop.eup %2118  ;;  %v774_v36 = vmul.f32 %v2115_v5, %v773_v27  ;;  %1949 = vmatprep.subr.bf16.mxu0 %v2095_v50 }
 0x1cf   : > { %v750_v16 = vsel %vm749_vm0, %v747_v13, %v744_v12  ;;  %v753_v17 = vmul.f32 0.6931472, %v2119_v15 }
 0x1d0   : > { %v778_v24 = vadd.f32 %v750_v16, %v722_v20 }
 0x1d1   : > { %v759_v22 = vsel %vm758_vm1, %v756_v18, %v753_v17  ;;  %1950 = vmatpush3.bf16.msra.mxu0 %v2095_v50 }
 0x1d2   : > { %v779_v25 = vadd.f32 %v759_v22, %v723_v21 }
 0x1d4   : > { %v2121_v28 = vpop.eup %2120  ;;  %v782_v29 = vpack.c.bf16 %v779_v25, %v778_v24 }
 0x1d5   : > { %v762_v31 = vmul.f32 0.6931472, %v2121_v28 }
 0x1d6   : > { %v2123_v33 = vpop.eup %2122  ;;  %1931 = vmatprep.mubr.bf16.mxu1 %v782_v29 }
 0x1d7   : > { %v768_v34 = vsel %vm767_vm2, %v765_v32, %v762_v31  ;;  %v771_v35 = vmul.f32 0.6931472, %v2123_v33 }
 0x1d8   : > { %v780_v40 = vadd.f32 %v768_v34, %v724_v37 }
 0x1d9   : > { %v777_v39 = vsel %vm776_vm3, %v774_v36, %v771_v35 }
 0x1da   : > { %v781_v41 = vadd.f32 %v777_v39, %v725_v38 }
 0x1dc   : > { %v783_v42 = vpack.c.bf16 %v781_v41, %v780_v40 }
 0x1de   : > { %1932 = vmatmul.mubr.bf16.vlgmr.msra.gmra.mrb[0].mxu1 %v783_v42 }
 0x2b1   : > { %v1933_v52 = vpop.f32.mrb[0].mxu1 }
 0x2b2   : > { %v2822_v53 = vadd.f32 %v1933_v52, %v1806_v51  ;;  %v889_v54 = vpop.f32.mrb[1].mxu1 }
 0x2b3   : > { %v2824_v55 = vadd.f32 %v1806_v51, %v889_v54  ;;  %v1934_v56 = vpop.f32.mrb[2].mxu1 }
 0x2b4   : > { %v910_v57 = vand.u32 2147483647, %v2822_v53  ;;  %v2827_v58 = vadd.f32 %v1934_v56, %v1806_v51  ;;  %v892_v59 = vpop.f32.mrb[3].mxu1  ;;  %v906_v28 = vmax.f32 %v2822_v53, 0.0 }
 0x2b5   : > { %v908_v60 = vand.u32 2147483647, %v2824_v55  ;;  %v2830_v61 = vadd.f32 %v1806_v51, %v892_v59  ;;  %v904_v41 = vmax.f32 %v2824_v55, 0.0  ;;  %v1815_v55 = vld [vmem:[%s3158_s6] ss:$0 sm:$0xff] }
 0x2b6   : > { %v914_v62 = vsub.f32 0.0, %v910_v57  ;;  %v911_v63 = vand.u32 2147483647, %v2827_v58  ;;  %v907_v42 = vmax.f32 %v2827_v58, 0.0 }
 0x2b7   : > { %v912_v0 = vsub.f32 0.0, %v908_v60  ;;  %v909_v1 = vand.u32 2147483647, %v2830_v61  ;;  %v905_v49 = vmax.f32 %v2830_v61, 0.0 }
 0x2b8   : > { %v920_v2 = vmul.f32 1.442695, %v914_v62  ;;  %v915_v3 = vsub.f32 0.0, %v911_v63 }
 0x2b9   : > { %v916_v4 = vmul.f32 1.442695, %v912_v0  ;;  %v913_v5 = vsub.f32 0.0, %v909_v1 }
 0x2ba   : > { %2124 = vpow2.f32 %v920_v2  ;;  %v922_v6 = vmul.f32 1.442695, %v915_v3 }
 0x2bb   : > { %2126 = vpow2.f32 %v916_v4  ;;  %v918_v7 = vmul.f32 1.442695, %v913_v5 }
 0x2bc   : > { %2128 = vpow2.f32 %v922_v6 }
 0x2bd   : > { %2130 = vpow2.f32 %v918_v7 }
 0x2c4   : > { %v2125_v8 = vpop.eup %2124 }
 0x2c5   : > { %v2127_v9 = vpop.eup %2126  ;;  %v942_v10 = vadd.f32 1.0, %v2125_v8  ;;  %v945_v16 = vmul.f32 -0.5, %v2125_v8  ;;  %v948_v21 = vand.u32 2147483647, %v2125_v8 }
 0x2c6   : > { %v2129_v11 = vpop.eup %2128  ;;  %v924_v12 = vadd.f32 1.0, %v2127_v9  ;;  %v927_v17 = vmul.f32 -0.5, %v2127_v9  ;;  %v930_v25 = vand.u32 2147483647, %v2127_v9 }
 0x2c7   : > { %v2131_v13 = vpop.eup %2130  ;;  %2132 = vlog2.f32 %v942_v10  ;;  %v951_v14 = vadd.f32 1.0, %v2129_v11  ;;  %v954_v18 = vmul.f32 -0.5, %v2129_v11  ;;  %v946_v19 = vadd.f32 1.0, %v945_v16 }
 0x2c8   : > { %2134 = vlog2.f32 %v924_v12  ;;  %v933_v15 = vadd.f32 1.0, %v2131_v13  ;;  %v936_v20 = vmul.f32 -0.5, %v2131_v13  ;;  %v928_v22 = vadd.f32 1.0, %v927_v17 }
 0x2c9   : > { %2136 = vlog2.f32 %v951_v14  ;;  %v955_v23 = vadd.f32 1.0, %v954_v18  ;;  %v957_v26 = vand.u32 2147483647, %v2129_v11  ;;  %v947_v30 = vmul.f32 %v2125_v8, %v946_v19 }
 0x2ca   : > { %2138 = vlog2.f32 %v933_v15  ;;  %v937_v31 = vadd.f32 1.0, %v936_v20  ;;  %vm2835_vm4 = vcmp.lt.f32.partialorder %v948_v21, 0.0004427343  ;;  %v939_v35 = vand.u32 2147483647, %v2131_v13 }
 0x2cb   : > { %v929_v37 = vmul.f32 %v2127_v9, %v928_v22  ;;  %v956_v39 = vmul.f32 %v2129_v11, %v955_v23  ;;  %vm931_vm5 = vcmp.lt.f32.partialorder %v930_v25, 0.0004427343  ;;  %vm958_vm6 = vcmp.lt.f32.partialorder %v957_v26, 0.0004427343  ;;  %v2096_v25 = vld [vmem:[#allocation10] ss:$8 sps:$4 sm:$0xff]  }
 0x2cc   : > { %v938_v46 = vmul.f32 %v2131_v13, %v937_v31  ;;  %vm940_vm7 = vcmp.lt.f32.partialorder %v939_v35, 0.0004427343  ;;  %v2101_v26 = vld [vmem:[#allocation10 + $0x14] ss:$8 sps:$4 sm:$0xff]   ;;  %v2105_v31 = vld [vmem:[#allocation10 + $0x30] ss:$8 sps:$4 sm:$0xff]  }
 0x2d1   : > { %v2133_v24 = vpop.eup %2132 }
 0x2d2   : > { %v2135_v27 = vpop.eup %2134  ;;  %v944_v29 = vmul.f32 0.6931472, %v2133_v24  ;;  %v2098_v24 = vld [vmem:[#allocation10 + $0x4] ss:$8 sps:$4 sm:$0xff]  }
 0x2d3   : > { %v2137_v32 = vpop.eup %2136  ;;  %v926_v34 = vmul.f32 0.6931472, %v2135_v27  ;;  %1207 = vmatprep.subr.bf16.mxu1 %v2098_v24  ;;  %v2099_v27 = vld [vmem:[#allocation10 + $0x10] ss:$8 sps:$4 sm:$0xff]  }
 0x2d4   : > { %v950_v36 = vsel %vm2835_vm4, %v947_v30, %v944_v29  ;;  %v953_v38 = vmul.f32 0.6931472, %v2137_v32  ;;  %v2139_v40 = vpop.eup %2138  ;;  %1208 = vmatpush1.bf16.msra.mxu1 %v2096_v25  ;;  %v2102_v29 = vld [vmem:[#allocation10 + $0x20] ss:$8 sps:$4 sm:$0xff]   ;;  %v2107_v30 = vld [vmem:[#allocation10 + $0x34] ss:$8 sps:$4 sm:$0xff]  }
 0x2d5   : > { %v932_v43 = vsel %vm931_vm5, %v929_v37, %v926_v34  ;;  %v935_v45 = vmul.f32 0.6931472, %v2139_v40  ;;  %v962_v47 = vadd.f32 %v950_v36, %v906_v28  ;;  %1209 = vmatprep.subr.bf16.mxu1 %v2101_v26  ;;  %v2104_v28 = vld [vmem:[#allocation10 + $0x24] ss:$8 sps:$4 sm:$0xff]   ;;  %v2487_v32 = vmov 0  }
 0x2d6   : > { %v959_v44 = vsel %vm958_vm6, %v956_v39, %v953_v38  ;;  %v960_v51 = vadd.f32 %v932_v43, %v904_v41  ;;  %1239 = vmatprep.mubr.bf16.mxu1 %v2487_v32 }
 0x2d7   : > { %v963_v48 = vadd.f32 %v959_v44, %v907_v42  ;;  %v941_v50 = vsel %vm940_vm7, %v938_v46, %v935_v45 }
 0x2d8   : > { %v961_v53 = vadd.f32 %v941_v50, %v905_v49  ;;  %1210 = vmatpush1.bf16.msra.mxu1 %v2099_v27  ;;  %v1149_v50 = vld [vmem:[%s3160_s8] sm:$0x3] }
 0x2d9   : > { %v965_v52 = vpack.c.bf16 %v963_v48, %v962_v47  ;;  %1211 = vmatprep.subr.bf16.mxu1 %v2104_v28  ;;  %v1151_v47 = vlaneseq  ;;  %v1836_v28 = vld [vmem:[%s3205_s16 + $0x2] ss:$0 sm:$0xff] }
 0x2da   : > { %v964_v54 = vpack.c.bf16 %v961_v53, %v960_v51 }
 0x2db   : > { %v1152_v48 = vshrl.u32 %v1151_v47, 7 }
 0x2dc   : > { %1951 = vmatprep.mubr.bf16.mxu0 %v964_v54  ;;  %1212 = vmatpush1.bf16.msra.mxu1 %v2102_v29 }
 0x2dd   : > { %1952 = vmatmul.mubr.bf16.vlgmr.msra.gmra.mrb[8].mxu0 %v965_v52  ;;  %1213 = vmatprep.subr.bf16.mxu1 %v2107_v30  ;;  %v1153_v49 = vsub.s32 0, %v1152_v48  ;;  %v1157_v51 = vsub.s32 1, %v1152_v48 }
 0x2df   : > { %v1154_v52 = vrot.slane %v1149_v50, %v1153_v49  ;;  %v1158_v53 = vrot.slane %v1149_v50, %v1157_v51 }
 0x2e0   : > { %1214 = vmatpush1.bf16.msra.mxu1 %v2105_v31 }
 0x3b0   : > { %v1953_v56 = vpop.f32.mrb[8].mxu0 }
 0x3b1   : > { %v2847_v57 = vadd.f32 %v1953_v56, %v1815_v55  ;;  %v1071_v58 = vpop.f32.mrb[9].mxu0 }
 0x3b2   : > { %v2849_v59 = vadd.f32 %v1815_v55, %v1071_v58  ;;  %v1954_v60 = vpop.f32.mrb[10].mxu0 }
 0x3b3   : > { %1477 = vst.msk [vmem:[%s2852_s10 + $0x10] sm:$0xff] %vm1094_vm8, %v2847_v57  ;;  %v2857_v61 = vadd.f32 %v1954_v60, %v1815_v55  ;;  %v1074_v62 = vpop.f32.mrb[11].mxu0  ;;  %v1101_v63 = vsel %vm1094_vm8, %v2847_v57, -inf }
 0x3b4   : > { %1475 = vst.msk [vmem:[%s2852_s10] sm:$0xff] %vm1094_vm8, %v2849_v59  ;;  %v2864_v0 = vadd.f32 %v1815_v55, %v1074_v62  ;;  %1102 = vmax.xlane.f32.xlu1 %v1101_v63  ;;  %v1095_v1 = vsel %vm1094_vm8, %v2849_v59, -inf }
 0x3b5   : > { %1478 = vst.msk [vmem:[%s2852_s10 + $0x18] sm:$0xff] %vm1094_vm8, %v2857_v61  ;;  %1096 = vmax.xlane.f32.xlu0 %v1095_v1  ;;  %v1104_v2 = vsel %vm1094_vm8, %v2857_v61, -inf }
 0x3b6   : > { %1476 = vst.msk [vmem:[%s2852_s10 + $0x8] sm:$0xff] %vm1094_vm8, %v2864_v0  ;;  %v1098_v3 = vsel %vm1094_vm8, %v2864_v0, -inf  ;;  %v1088_v50 = vmul.f32 1.442695, %v2864_v0 }
 0x3b8   : > { %1105 = vmax.xlane.f32.xlu1 %v1104_v2 }
 0x3b9   : > { %1099 = vmax.xlane.f32.xlu0 %v1098_v3 }
 0x441   : > { %v1103_v4 = vpop.xlane.xlu1 %1102 }
 0x442   : > { %v1109_v5 = vsub.f32 %v2847_v57, %v1103_v4  ;;  %v1097_v6 = vpop.xlane.xlu0 %1096 }
 0x443   : > { %v1107_v7 = vsub.f32 %v2849_v59, %v1097_v6 }
 0x444   : > { %v1115_v8 = vmul.f32 1.442695, %v1109_v5 }
 0x445   : > { %v1111_v9 = vmul.f32 1.442695, %v1107_v7  ;;  %v1106_v10 = vpop.xlane.xlu1 %1105 }
 0x446   : > { %v1110_v11 = vsub.f32 %v2857_v61, %v1106_v10  ;;  %v1100_v12 = vpop.xlane.xlu0 %1099 }
 0x447   : > { %2140 = vpow2.f32 %v1111_v9  ;;  %v1108_v13 = vsub.f32 %v2864_v0, %v1100_v12 }
 0x448   : > { %2142 = vpow2.f32 %v1115_v8  ;;  %v1117_v14 = vmul.f32 1.442695, %v1110_v11 }
 0x449   : > { %v1113_v15 = vmul.f32 1.442695, %v1108_v13 }
 0x44b   : > { %2144 = vpow2.f32 %v1113_v15 }
 0x44c   : > { %2146 = vpow2.f32 %v1117_v14  ;;  %v1834_v14 = vld [vmem:[%s3205_s16] ss:$0 sm:$0xff] }
 0x44d   : > { %v1375_v15 = vsub.f32 %v2849_v59, %v1834_v14 }
 0x451   : > { %v2141_v16 = vpop.eup %2140 }
 0x452   : > { %v1119_v17 = vsel %vm1094_vm8, %v2141_v16, 0.0  ;;  %v2143_v18 = vpop.eup %2142 }
 0x453   : > { %1120 = vadd.xlane.f32.xlu0 %v1119_v17  ;;  %v1125_v20 = vsel %vm1094_vm8, %v2143_v18, 0.0  ;;  %v1376_v17 = vsub.f32 %v2864_v0, %v1834_v14 }
 0x455   : > { %v2145_v19 = vpop.eup %2144 }
 0x456   : > { %v1122_v21 = vsel %vm1094_vm8, %v2145_v19, 0.0  ;;  %v2147_v22 = vpop.eup %2146 }
 0x457   : > { %1126 = vadd.xlane.f32.xlu0 %v1125_v20  ;;  %1123 = vadd.xlane.f32.xlu1 %v1122_v21  ;;  %v1128_v23 = vsel %vm1094_vm8, %v2147_v22, 0.0  ;;  %v1392_v21 = vmul.f32 %v1376_v17, %v1376_v17 }
 0x45b   : > { %1129 = vadd.xlane.f32.xlu1 %v1128_v23 }
 0x4e0   : > { %v1121_v33 = vpop.xlane.xlu0 %1120 }
 0x4e1   : > { %2148 = vrcp.f32 %v1121_v33 }
 0x4e4   : > { %v1124_v34 = vpop.xlane.xlu1 %1123  ;;  %v1127_v35 = vpop.xlane.xlu0 %1126 }
 0x4e5   : > { %2150 = vrcp.f32 %v1124_v34 }
 0x4e8   : > { %v1130_v36 = vpop.xlane.xlu1 %1129 }
 0x4e9   : > { %2152 = vrcp.f32 %v1130_v36 }
 0x4ea   : > { %2154 = vrcp.f32 %v1127_v35 }
 0x4eb   : > { %v2149_v37 = vpop.eup %2148 }
 0x4ec   : > { %v1135_v39 = vmul.f32 %v2149_v37, %v2141_v16  ;;  %v1391_v16 = vmul.f32 %v1375_v15, %v1375_v15 }
 0x4ef   : > { %v2151_v38 = vpop.eup %2150 }
 0x4f0   : > { %v1136_v40 = vmul.f32 %v2151_v38, %v2145_v19  ;;  %v1378_v19 = vsub.f32 %v2857_v61, %v1834_v14 }
 0x4f2   : > { %v1139_v41 = vpack.c.bf16 %v1136_v40, %v1135_v39  ;;  %v1394_v23 = vmul.f32 %v1378_v19, %v1378_v19 }
 0x4f3   : > { %v2153_v42 = vpop.eup %2152 }
 0x4f4   : > { %1832 = vmatmul.mubr.msk.bf16.vlgmr.msra.gmra.mrb[4].mxu1 %vm1094_vm8, %v1139_v41  ;;  %v2155_v43 = vpop.eup %2154  ;;  %v1138_v44 = vmul.f32 %v2153_v42, %v2147_v22  ;;  %v1377_v22 = vsub.f32 %v2847_v57, %v1834_v14 }
 0x4f5   : > { %1249 = vmatprep.mubr.bf16.mxu1 %v2487_v32  ;;  %v1137_v45 = vmul.f32 %v2155_v43, %v2143_v18  ;;  %v1835_v18 = vld [vmem:[%s3205_s16 + $0x1] ss:$0 sm:$0xff] }
 0x4f6   : > { %v1395_v20 = vmul.f32 %v1835_v18, %v1391_v16  ;;  %v1396_v24 = vmul.f32 %v1835_v18, %v1392_v21  ;;  %v1393_v25 = vmul.f32 %v1377_v22, %v1377_v22  ;;  %v1398_v26 = vmul.f32 %v1835_v18, %v1394_v23 }
 0x4f7   : > { %v1140_v46 = vpack.c.bf16 %v1138_v44, %v1137_v45 }
 0x4f8   : > { %v1397_v27 = vmul.f32 %v1835_v18, %v1393_v25 }
 0x4fc   : > { %1833 = vmatmul.mubr.msk.bf16.gmra.mrb[8].mxu1 %vm1094_vm8, %v1140_v46 }
 0x5c7   : > { %v1241_v54 = vpop.f32.mrb[4].mxu1 }
 0x5c8   : > { %v1242_v55 = vadd.f32 %v1241_v54, %v1154_v52  ;;  %v1243_v56 = vpop.f32.mrb[5].mxu1 }
 0x5c9   : > { %v1244_v58 = vadd.f32 %v1243_v56, %v1158_v53  ;;  %v1245_v60 = vpop.f32.mrb[6].mxu1  ;;  %v1090_v56 = vmul.f32 1.442695, %v2847_v57 }
 0x5ca   : > { %v1246_v62 = vadd.f32 %v1245_v60, %v1154_v52  ;;  %v1247_v63 = vpop.f32.mrb[7].mxu1 }
 0x5cb   : > { %v1248_v1 = vadd.f32 %v1247_v63, %v1158_v53  ;;  %v1260_v2 = vmax.f32 %v1242_v55, %v1244_v58  ;;  %v1092_v63 = vmul.f32 1.442695, %v2857_v61 }
 0x5cd   : > { %1261 = vmax.xlane.f32.xlu0 %v1260_v2  ;;  %v1263_v3 = vmax.f32 %v1246_v62, %v1248_v1 }
 0x5cf   : > { %1264 = vmax.xlane.f32.xlu1 %v1263_v3  ;;  %v1251_v4 = vpop.f32.mrb[8].mxu1 }
 0x5d0   : > { %v1252_v5 = vadd.f32 %v1251_v4, %v1154_v52  ;;  %v1253_v6 = vpop.f32.mrb[9].mxu1 }
 0x5d1   : > { %v1254_v7 = vadd.f32 %v1253_v6, %v1158_v53  ;;  %v1255_v8 = vpop.f32.mrb[10].mxu1 }
 0x5d2   : > { %v1256_v9 = vadd.f32 %v1255_v8, %v1154_v52  ;;  %v1257_v10 = vpop.f32.mrb[11].mxu1  ;;  %v1086_v8 = vmul.f32 1.442695, %v2849_v59 }
 0x5d3   : > { %v1258_v11 = vadd.f32 %v1257_v10, %v1158_v53  ;;  %v1266_v12 = vmax.f32 %v1252_v5, %v1254_v7 }
 0x5d5   : > { %1267 = vmax.xlane.f32.xlu0 %v1266_v12  ;;  %v1269_v13 = vmax.f32 %v1256_v9, %v1258_v11 }
 0x5d7   : > { %1270 = vmax.xlane.f32.xlu1 %v1269_v13 }
 0x5e8   : > { %1403 = vrot.lane.b32.xlu1 %v1395_v20, %s2488_s28 }
 0x5eb   : > { %1384 = vrot.lane.b32.xlu0 %v1835_v18, %s2488_s28 }
 0x5ec   : > { %1405 = vrot.lane.b32.xlu1 %v1396_v24, %s2488_s28 }
 0x5ef   : > { %1409 = vrot.lane.b32.xlu0 %v1398_v26, %s2488_s28 }
 0x5f0   : > { %1407 = vrot.lane.b32.xlu1 %v1397_v27, %s2488_s28 }
 0x5f4   : > { %1424 = vrot.lane.b32.xlu1 %v1836_v28, %s2488_s28 }
 0x65a   : > { %v1262_v29 = vpop.xlane.xlu0 %1261 }
 0x65b   : > { %v2911_v30 = vsub.f32 %v1242_v55, %v1262_v29  ;;  %v2913_v31 = vsub.f32 %v1244_v58, %v1262_v29 }
 0x65c   : > { %v1265_v32 = vpop.xlane.xlu1 %1264 }
 0x65d   : > { %v1280_v33 = vmul.f32 1.442695, %v2911_v30  ;;  %v1282_v34 = vmul.f32 1.442695, %v2913_v31  ;;  %v2917_v35 = vsub.f32 %v1246_v62, %v1265_v32  ;;  %v2919_v36 = vsub.f32 %v1248_v1, %v1265_v32 }
 0x65f   : > { %2156 = vpow2.f32 %v1280_v33  ;;  %v1284_v37 = vmul.f32 1.442695, %v2917_v35  ;;  %v1286_v38 = vmul.f32 1.442695, %v2919_v36 }
 0x660   : > { %2158 = vpow2.f32 %v1282_v34 }
 0x661   : > { %2160 = vpow2.f32 %v1284_v37 }
 0x662   : > { %2162 = vpow2.f32 %v1286_v38  ;;  %v1268_v39 = vpop.xlane.xlu0 %1267 }
 0x663   : > { %v2923_v40 = vsub.f32 %v1252_v5, %v1268_v39  ;;  %v2925_v41 = vsub.f32 %v1254_v7, %v1268_v39 }
 0x664   : > { %v1271_v42 = vpop.xlane.xlu1 %1270 }
 0x665   : > { %v1288_v43 = vmul.f32 1.442695, %v2923_v40  ;;  %v1290_v44 = vmul.f32 1.442695, %v2925_v41  ;;  %v2929_v45 = vsub.f32 %v1256_v9, %v1271_v42  ;;  %v2931_v46 = vsub.f32 %v1258_v11, %v1271_v42 }
 0x666   : > { %v1385_v5 = vpop.permute.xlu0 %1384 }
 0x667   : > { %2164 = vpow2.f32 %v1288_v43  ;;  %v1292_v48 = vmul.f32 1.442695, %v2929_v45  ;;  %v1294_v49 = vmul.f32 1.442695, %v2931_v46 }
 0x668   : > { %2166 = vpow2.f32 %v1290_v44  ;;  %v1404_v51 = vpop.permute.xlu1 %1403 }
 0x669   : > { %v2936_v52 = vpop.eup %2156  ;;  %2168 = vpow2.f32 %v1292_v48 }
 0x66a   : > { %v2938_v53 = vpop.eup %2158  ;;  %2170 = vpow2.f32 %v1294_v49  ;;  %v1410_v19 = vpop.permute.xlu0 %1409 }
 0x66b   : > { %v2940_v54 = vpop.eup %2160  ;;  %2172 = vpow2.f32 %v1088_v50  ;;  %v1296_v55 = vadd.f32 %v2938_v53, %v2936_v52 }
 0x66c   : > { %v2945_v58 = vpop.eup %2162  ;;  %v1406_v60 = vpop.permute.xlu1 %1405  ;;  %2174 = vpow2.f32 %v1090_v56 }
 0x66d   : > { %1297 = vadd.xlane.f32.xlu0 %v1296_v55  ;;  %v1299_v62 = vadd.f32 %v2945_v58, %v2940_v54  ;;  %2176 = vpow2.f32 %v1092_v63 }
 0x66e   : > { %2178 = vpow2.f32 %v1086_v8 }
 0x66f   : > { %1300 = vadd.xlane.f32.xlu1 %v1299_v62 }
 0x670   : > { %v1408_v2 = vpop.permute.xlu1 %1407 }
 0x671   : > { %v2950_v1 = vpop.eup %2164 }
 0x672   : > { %v2952_v3 = vpop.eup %2166 }
 0x673   : > { %v2954_v4 = vpop.eup %2168  ;;  %v1302_v6 = vadd.f32 %v2952_v3, %v2950_v1 }
 0x674   : > { %v2958_v7 = vpop.eup %2170  ;;  %v1425_v11 = vpop.permute.xlu1 %1424 }
 0x675   : > { %v2173_v9 = vpop.eup %2172  ;;  %1303 = vadd.xlane.f32.xlu0 %v1302_v6  ;;  %v1305_v12 = vadd.f32 %v2958_v7, %v2954_v4  ;;  %v2197_v6 = vld [vmem:[%s2794_s18] sm:$0xff] }
 0x676   : > { %v1388_v10 = vmul.f32 %v2173_v9, %v1385_v5  ;;  %v2175_v14 = vpop.eup %2174  ;;  %v1336_v8 = vunpack.c.l.bf16 %v2197_v6  ;;  %v1337_v9 = vunpack.c.h.bf16 %v2197_v6 }
 0x677   : > { %v1389_v15 = vmul.f32 %v2175_v14, %v1385_v5  ;;  %v2177_v18 = vpop.eup %2176 }
 0x678   : > { %v1416_v13 = vadd.f32 %v1406_v60, %v1388_v10  ;;  %v1390_v20 = vmul.f32 %v2177_v18, %v1385_v5  ;;  %v2179_v24 = vpop.eup %2178  ;;  %v2196_v60 = vld [vmem:[%s2794_s18 + $0x8] sm:$0xff] }
 0x679   : > { %1306 = vadd.xlane.f32.xlu0 %v1305_v12  ;;  %v1417_v17 = vadd.f32 %v1408_v2, %v1389_v15  ;;  %v1387_v27 = vmul.f32 %v2179_v24, %v1385_v5  ;;  %v1338_v62 = vunpack.c.l.bf16 %v2196_v60  ;;  %v1339_v63 = vunpack.c.h.bf16 %v2196_v60 }
 0x67a   : > { %v1428_v16 = vadd.f32 %v1425_v11, %v1416_v13  ;;  %v1418_v23 = vadd.f32 %v1410_v19, %v1390_v20 }
 0x67b   : > { %v1429_v21 = vadd.f32 %v1425_v11, %v1417_v17  ;;  %v1415_v29 = vadd.f32 %v1404_v51, %v1387_v27 }
 0x67c   : > { %v1432_v22 = vsub.f32 %v1428_v16, %v2864_v0  ;;  %v1430_v25 = vadd.f32 %v1425_v11, %v1418_v23  ;;  %v2198_v23 = vld [vmem:[%s2794_s18 + $0x10] sm:$0xff] }
 0x67d   : > { %v1433_v26 = vsub.f32 %v1429_v21, %v2847_v57  ;;  %v1427_v32 = vadd.f32 %v1425_v11, %v1415_v29  ;;  %v1341_v24 = vunpack.c.h.bf16 %v2198_v23 }
 0x67e   : > { %v1434_v28 = vsub.f32 %v1430_v25, %v2857_v61 }
 0x67f   : > { %v1431_v33 = vsub.f32 %v1427_v32, %v2849_v59  ;;  %v2199_v32 = vld [vmem:[%s2794_s18 + $0x18] sm:$0xff]  ;;  %s1541_s18 = sand.u32 1, %s2580_s25   ;;  %s2489_s25 = smov [#allocation12]  }
 0x680   : > { %1441 = vrot.lane.b32.xlu1 %v1432_v22, %s2488_s28  ;;  %s2346_s13 = sshll.u32 %s2489_s25, 4  ;;  %s2347_s13 = int_to_ptr.vmem [resolvable:$false] %s2346_s13 }
 0x681   : > { %s2348_s0 = scalar_lea.vmem %s2347_s13, 1024  ;;  %p2349_p12 = scmp.lt.s32.totalorder %s3013_s29, %s2347_s13 }
 0x682   : > { %p2350_p1 = scmp.lt.s32.totalorder %s2348_s0, %s2342_s21 }
 0x684   : > { %1443 = vrot.lane.b32.xlu1 %v1433_v26, %s2488_s28  ;;  %p2351_p2 = por %p2350_p1, %p2349_p12 }
 0x686   : > { %p2352_p13 = pnand %p2351_p2, %p2345_p7 }
 0x688   : > { %1445 = vrot.lane.b32.xlu1 %v1434_v28, %s2488_s28 }
 0x68f   : > { %1439 = vrot.lane.b32.xlu0 %v1431_v33, %s2488_s28  ;;  %v1342_v33 = vunpack.c.l.bf16 %v2199_v32  ;;  %s3015_s28 = scalar_lea.sflag [#allocation13], %s1541_s18 }
 0x6fa   : > { %v1298_v0 = vpop.xlane.xlu0 %1297 }
 0x6fb   : > { %2180 = vrcp.f32 %v1298_v0 }
 0x6fc   : > { %2182 = vlog2.f32 %v1298_v0  ;;  %v1301_v34 = vpop.xlane.xlu1 %1300  ;;  %v1343_v0 = vunpack.c.h.bf16 %v2199_v32 }
 0x6fd   : > { %2184 = vrcp.f32 %v1301_v34 }
 0x6fe   : > { %2186 = vlog2.f32 %v1301_v34 }
 0x700   : > { %v1442_v57 = vpop.permute.xlu1 %1441 }
 0x701   : > { %v1454_v37 = vsel %vm1094_vm8, %v1442_v57, 0.0 }
 0x702   : > { %1455 = vadd.xlane.f32.xlu1 %v1454_v37  ;;  %v1304_v38 = vpop.xlane.xlu0 %1303 }
 0x703   : > { %2188 = vrcp.f32 %v1304_v38 }
 0x704   : > { %2190 = vlog2.f32 %v1304_v38 }
 0x705   : > { %v2181_v61 = vpop.eup %2180 }
 0x706   : > { %v2183_v39 = vpop.eup %2182  ;;  %v1312_v59 = vmul.f32 %v2181_v61, %v2936_v52  ;;  %v1313_v42 = vmul.f32 %v2181_v61, %v2938_v53  ;;  %v1307_v43 = vpop.xlane.xlu0 %1306 }
 0x707   : > { %v2185_v44 = vpop.eup %2184  ;;  %2192 = vrcp.f32 %v1307_v43  ;;  %v1321_v55 = vmul.f32 0.6931472, %v2183_v39  ;;  %v1444_v53 = vpop.permute.xlu1 %1443 }
 0x708   : > { %v2187_v48 = vpop.eup %2186  ;;  %v1859_v49 = vpack.c.bf16 %v1313_v42, %v1312_v59  ;;  %v1314_v50 = vmul.f32 %v2185_v44, %v2940_v54  ;;  %v1315_v51 = vmul.f32 %v2185_v44, %v2945_v58  ;;  %2194 = vlog2.f32 %v1307_v43 }
 0x709   : > { %v1323_v56 = vmul.f32 0.6931472, %v2187_v48  ;;  %v1328_v13 = vsub.f32 %v2911_v30, %v1321_v55  ;;  %v1329_v14 = vsub.f32 %v2913_v31, %v1321_v55  ;;  %v1457_v18 = vsel %vm1094_vm8, %v1444_v53, 0.0 }
 0x70a   : > { %1503 = vst [vmem:[%s2978_s19] sm:$0xff] %v1859_v49  ;;  %v1860_v52 = vpack.c.bf16 %v1315_v51, %v1314_v50  ;;  %v1440_v2 = vpop.permute.xlu0 %1439  ;;  %v1340_v31 = vunpack.c.l.bf16 %v2198_v23 }
 0x70b   : > { %v1451_v5 = vsel %vm1094_vm8, %v1440_v2, 0.0  ;;  %v1330_v54 = vsub.f32 %v2917_v35, %v1323_v56  ;;  %v1331_v58 = vsub.f32 %v2919_v36, %v1323_v56  ;;  %v1446_v20 = vpop.permute.xlu1 %1445  ;;  %v1344_v22 = vmul.f32 %v1336_v8, %v1328_v13 }
 0x70c   : > { %1504 = vst [vmem:[%s2978_s19 + $0x8] sm:$0xff] %v1860_v52  ;;  %1452 = vadd.xlane.f32.xlu0 %v1451_v5  ;;  %v1345_v30 = vmul.f32 %v1337_v9, %v1329_v14  ;;  %v1460_v29 = vsel %vm1094_vm8, %v1446_v20, 0.0 }
 0x70d   : > { %v2189_v10 = vpop.eup %2188  ;;  %v1346_v11 = vmul.f32 %v1338_v62, %v1330_v54  ;;  %v1347_v12 = vmul.f32 %v1339_v63, %v1331_v58 }
 0x70e   : > { %v2191_v15 = vpop.eup %2190  ;;  %v1316_v16 = vmul.f32 %v2189_v10, %v2950_v1  ;;  %v1317_v35 = vmul.f32 %v2189_v10, %v2952_v3 }
 0x70f   : > { %v1325_v36 = vmul.f32 0.6931472, %v2191_v15  ;;  %v1355_v17 = vadd.f32 %v1347_v12, %v1346_v11 }
 0x710   : > { %v1861_v19 = vpack.c.bf16 %v1317_v35, %v1316_v16  ;;  %1458 = vadd.xlane.f32.xlu0 %v1457_v18 }
 0x711   : > { %v2193_v21 = vpop.eup %2192  ;;  %1356 = vadd.xlane.f32.xlu1 %v1355_v17  ;;  %v1332_v26 = vsub.f32 %v2923_v40, %v1325_v36  ;;  %v1333_v27 = vsub.f32 %v2925_v41, %v1325_v36 }
 0x712   : > { %v2195_v1 = vpop.eup %2194  ;;  %1505 = vst [vmem:[%s2978_s19 + $0x10] sm:$0xff] %v1861_v19  ;;  %v1318_v3 = vmul.f32 %v2193_v21, %v2954_v4  ;;  %v1319_v25 = vmul.f32 %v2193_v21, %v2958_v7  ;;  %v1352_v7 = vadd.f32 %v1345_v30, %v1344_v22 }
 0x713   : > { %v1327_v28 = vmul.f32 0.6931472, %v2195_v1  ;;  %v1348_v40 = vmul.f32 %v1340_v31, %v1332_v26  ;;  %v1349_v37 = vmul.f32 %v1341_v24, %v1333_v27 }
 0x714   : > { %v1862_v34 = vpack.c.bf16 %v1319_v25, %v1318_v3  ;;  %1461 = vadd.xlane.f32.xlu0 %v1460_v29 }
 0x715   : > { %v1334_v57 = vsub.f32 %v2929_v45, %v1327_v28  ;;  %v1335_v4 = vsub.f32 %v2931_v46, %v1327_v28  ;;  %v1358_v39 = vadd.f32 %v1349_v37, %v1348_v40 }
 0x716   : > { %1506 = vst [vmem:[%s2978_s19 + $0x18] sm:$0xff] %v1862_v34 }
 0x717   : > { %v1350_v41 = vmul.f32 %v1342_v33, %v1334_v57  ;;  %v1351_v38 = vmul.f32 %v1343_v0, %v1335_v4 }
 0x718   : > { %1353 = vadd.xlane.f32.xlu0 %v1352_v7 }
 0x719   : > { %v1361_v61 = vadd.f32 %v1351_v38, %v1350_v41 }
 0x71b   : > { %1362 = vadd.xlane.f32.xlu1 %v1361_v61 }
 0x71c   : > { %1359 = vadd.xlane.f32.xlu0 %v1358_v39 }
 0x71d   : > { %2355 = shalt.err (!%p2352_p13)
}
 0x71e   : > { %s2356_s19 = scalar_lea.hbm %s3010_s27, 512  ;;  %s2360_s11 = scalar_lea.hbm %s3206_s26, 1024 }
 0x71f   : > { %p2357_p9 = scmp.ne.s32.totalorder %s3010_s27, %s2356_s19  ;;  %p2361_p4 = scmp.lt.u32.totalorder %s3010_s27, %s3206_s26 }
 0x720   : > { %p2362_p8 = scmp.lt.u32.totalorder %s2360_s11, %s2356_s19  ;;  %p2364_p10 = scmp.lt.u32.totalorder %s2356_s19, %s3010_s27 }
 0x721   : > { %p2358_p0 = pnand %p2357_p9, %p2735_p3 }
 0x722   : > { %p2363_p6 = por %p2362_p8, %p2361_p4 }
 0x723   : > { %p2359_p11 = pneg %p2358_p0 }
 0x724   : > { %p2365_p5 = por %p2364_p10, %p2363_p6 }
 0x726   : > { %p2366_p7 = pnand %p2365_p5, %p2359_p11 }
 0x728   : > { %2369 = shalt.err (!%p2366_p7)
}
 0x729   : > { %s2490_s0 = smov 128   ;;  %s2491_s21 = smov 8  }
 0x72a   : > { %1974 = dma.vmem_to_hbm [thread:$0]  (%p2735_p3), %s3013_s29, 512, %s3010_s27, %s3015_s28, %s2490_s0, %s2490_s0, %s2491_s21  }
 0x72b   : > { %s3207_s15 = sld [smem:[#allocation27_spill]]  ;;  %s1560_s25 = sshll.u32 %s2852_s10, 4  ;;  %s3049_s25 = int_to_ptr.vmem [resolvable:$true] %s1560_s25 }
 0x72c   : > { %s1537_s13 = scalar_lea.sflag [#allocation4], %s2787_s12  ;;  %s2370_s1 = scalar_lea.vmem %s3049_s25, 512 }
 0x72d   : > { %p2371_p12 = scmp.ne.s32.totalorder %s3049_s25, %s2370_s1  ;;  %s2492_s2 = smov [#allocation11]  }
 0x72e   : > { %s2374_s3 = sshll.u32 %s2492_s2, 4  ;;  %s2375_s3 = int_to_ptr.vmem [resolvable:$false] %s2374_s3 }
 0x72f   : > { %p2372_p1 = pnand %p2371_p12, %p2735_p3  ;;  %s2376_s27 = scalar_lea.vmem %s2375_s3, 1024 }
 0x730   : > { %p2377_p13 = scmp.lt.s32.totalorder %s3049_s25, %s2375_s3  ;;  %p2378_p9 = scmp.lt.s32.totalorder %s2376_s27, %s2370_s1 }
 0x731   : > { %s3046_s11 = scalar_lea.hbm %s3207_s15, %s3004_s30  ;;  %p2373_p2 = pneg %p2372_p1 }
 0x732   : > { %p2379_p0 = por %p2378_p9, %p2377_p13 }
 0x734   : > { %p2380_p11 = pnand %p2379_p0, %p2373_p2 }
 0x736   : > { %2383 = shalt.err (!%p2380_p11)
}
 0x737   : > { %s2384_s10 = scalar_lea.hbm %s3046_s11, 512  ;;  %s2388_s2 = scalar_lea.hbm %s3207_s15, 1024 }
 0x738   : > { %p2385_p4 = scmp.ne.s32.totalorder %s3046_s11, %s2384_s10  ;;  %p2389_p10 = scmp.lt.u32.totalorder %s3046_s11, %s3207_s15 }
 0x739   : > { %p2390_p5 = scmp.lt.u32.totalorder %s2388_s2, %s2384_s10  ;;  %p2392_p12 = scmp.lt.u32.totalorder %s2384_s10, %s3046_s11 }
 0x73a   : > { %p2386_p8 = pnand %p2385_p4, %p2735_p3 }
 0x73b   : > { %p2391_p7 = por %p2390_p5, %p2389_p10 }
 0x73c   : > { %p2387_p6 = pneg %p2386_p8 }
 0x73d   : > { %p2393_p1 = por %p2392_p12, %p2391_p7 }
 0x73f   : > { %p2394_p2 = pnand %p2393_p1, %p2387_p6 }
 0x741   : > { %2397 = shalt.err (!%p2394_p2)
}
 0x742   : > { %1973 = dma.vmem_to_hbm [thread:$0]  (%p2735_p3), %s3049_s25, 512, %s3046_s11, %s1537_s13, %s2490_s0, %s2490_s0, %s2491_s21   ;;  %v1508_v42 = vand.u32 127, %v1151_v47 }
 0x743   : > { %s3083_s1 = scalar_lea.vmem [#allocation14], %s2790_s17  ;;  %s3208_s25 = sld [smem:[#allocation29_spill]] }
 0x744   : > { %vm1514_vm9 = vcmp.eq.s32.totalorder %v1508_v42, 1  ;;  %vm1509_vm10 = vcmp.eq.s32.totalorder %v1508_v42, 0  ;;  %vm1523_vm11 = vcmp.eq.s32.totalorder %v1508_v42, 2  ;;  %s1593_s12 = sshll.u32 %s3083_s1, 4  ;;  %s2493_s10 = smov [#allocation14]   ;;  %s3097_s12 = int_to_ptr.vmem [resolvable:$true] %s1593_s12 }
 0x745   : > { %s2398_s27 = scalar_lea.vmem %s3097_s12, 512  ;;  %s2402_s29 = sshll.u32 %s2493_s10, 4  ;;  %s2403_s29 = int_to_ptr.vmem [resolvable:$false] %s2402_s29 }
 0x746   : > { %p2399_p13 = scmp.ne.s32.totalorder %s3097_s12, %s2398_s27  ;;  %s2404_s18 = scalar_lea.vmem %s2403_s29, 1024 }
 0x747   : > { %p2405_p11 = scmp.lt.s32.totalorder %s3097_s12, %s2403_s29  ;;  %p2406_p4 = scmp.lt.s32.totalorder %s2404_s18, %s2398_s27 }
 0x748   : > { %p2400_p9 = pnand %p2399_p13, %p2735_p3 }
 0x749   : > { %s3103_s13 = scalar_lea.hbm %s3208_s25, %s3004_s30  ;;  %p2407_p8 = por %p2406_p4, %p2405_p11 }
 0x74a   : > { %p2401_p0 = pneg %p2400_p9 }
 0x74c   : > { %p2408_p6 = pnand %p2407_p8, %p2401_p0 }
 0x78f   : > { %v1456_v45 = vpop.xlane.xlu1 %1455 }
 0x790   : > { %v1838_v46 = vadd.f32 -64.0, %v1456_v45 }
 0x792   : > { %v1468_v43 = vmul.f32 0.5, %v1838_v46 }
 0x794   : > { %v1516_v51 = vsel %vm1514_vm9, %v1468_v43, 0.0 }
 0x799   : > { %v1453_v59 = vpop.xlane.xlu0 %1452 }
 0x79a   : > { %v1837_v50 = vadd.f32 -64.0, %v1453_v59 }
 0x79c   : > { %v1467_v47 = vmul.f32 0.5, %v1837_v50 }
 0x79d   : > { %v1459_v44 = vpop.xlane.xlu0 %1458 }
 0x79e   : > { %v1357_v48 = vpop.xlane.xlu1 %1356  ;;  %v1839_v2 = vadd.f32 -64.0, %v1459_v44  ;;  %v1515_v6 = vsel %vm1514_vm9, %v1467_v47, 0.0 }
 0x79f   : > { %v1365_v49 = vsub.f32 0.0, %v1357_v48 }
 0x7a0   : > { %v1469_v8 = vmul.f32 0.5, %v1839_v2 }
 0x7a1   : > { %v1472_v55 = vadd.f32 %v1468_v43, %v1365_v49  ;;  %v1511_v56 = vsel %vm1509_vm10, %v1365_v49, 0.0  ;;  %v1462_v60 = vpop.xlane.xlu0 %1461 }
 0x7a2   : > { %v1520_v62 = vadd.f32 %v1516_v51, %v1511_v56  ;;  %v1840_v52 = vadd.f32 -64.0, %v1462_v60  ;;  %v1517_v19 = vsel %vm1514_vm9, %v1469_v8, 0.0 }
 0x7a3   : > { %v1525_v63 = vsel %vm1523_vm11, %v1472_v55, 0.0 }
 0x7a4   : > { %v1529_v53 = vadd.f32 %v1525_v63, %v1520_v62  ;;  %v1470_v58 = vmul.f32 0.5, %v1840_v52 }
 0x7a5   : > { %v1354_v5 = vpop.xlane.xlu0 %1353 }
 0x7a6   : > { %1533 = vst [vmem:[%s3083_s1 + $0x8] sm:$0xff] %v1529_v53  ;;  %v1364_v54 = vsub.f32 0.0, %v1354_v5  ;;  %v1518_v35 = vsel %vm1514_vm9, %v1470_v58, 0.0 }
 0x7a8   : > { %v1471_v9 = vadd.f32 %v1467_v47, %v1364_v54  ;;  %v1510_v10 = vsel %vm1509_vm10, %v1364_v54, 0.0  ;;  %v1363_v11 = vpop.xlane.xlu1 %1362 }
 0x7a9   : > { %v1519_v12 = vadd.f32 %v1515_v6, %v1510_v10  ;;  %v1367_v13 = vsub.f32 0.0, %v1363_v11  ;;  %v1360_v14 = vpop.xlane.xlu0 %1359 }
 0x7aa   : > { %v1524_v15 = vsel %vm1523_vm11, %v1471_v9, 0.0  ;;  %v1366_v16 = vsub.f32 0.0, %v1360_v14 }
 0x7ab   : > { %v1528_v36 = vadd.f32 %v1524_v15, %v1519_v12  ;;  %v1474_v17 = vadd.f32 %v1470_v58, %v1367_v13  ;;  %v1513_v18 = vsel %vm1509_vm10, %v1367_v13, 0.0 }
 0x7ac   : > { %v1522_v20 = vadd.f32 %v1518_v35, %v1513_v18  ;;  %v1473_v21 = vadd.f32 %v1469_v8, %v1366_v16  ;;  %v1512_v22 = vsel %vm1509_vm10, %v1366_v16, 0.0 }
 0x7ad   : > { %1532 = vst [vmem:[%s3083_s1] sm:$0xff] %v1528_v36  ;;  %v1527_v30 = vsel %vm1523_vm11, %v1474_v17, 0.0  ;;  %v1521_v23 = vadd.f32 %v1517_v19, %v1512_v22 }
 0x7ae   : > { %v1531_v31 = vadd.f32 %v1527_v30, %v1522_v20  ;;  %v1526_v24 = vsel %vm1523_vm11, %v1473_v21, 0.0 }
 0x7af   : > { %v1530_v1 = vadd.f32 %v1526_v24, %v1521_v23 }
 0x7b0   : > { %1535 = vst [vmem:[%s3083_s1 + $0x18] sm:$0xff] %v1531_v31 }
 0x7b1   : > { %1534 = vst [vmem:[%s3083_s1 + $0x10] sm:$0xff] %v1530_v1 }
 0x7b2   : > { %2411 = shalt.err (!%p2408_p6)
}
 0x7b3   : > { %s2412_s30 = scalar_lea.hbm %s3103_s13, 512  ;;  %s2416_s3 = scalar_lea.hbm %s3208_s25, 1024 }
 0x7b4   : > { %p2413_p10 = scmp.ne.s32.totalorder %s3103_s13, %s2412_s30  ;;  %p2417_p12 = scmp.lt.u32.totalorder %s3103_s13, %s3208_s25 }
 0x7b5   : > { %p2418_p1 = scmp.lt.u32.totalorder %s2416_s3, %s2412_s30  ;;  %p2420_p13 = scmp.lt.u32.totalorder %s2412_s30, %s3103_s13 }
 0x7b6   : > { %p2414_p5 = pnand %p2413_p10, %p2735_p3 }
 0x7b7   : > { %p2419_p2 = por %p2418_p1, %p2417_p12 }
 0x7b8   : > { %p2415_p7 = pneg %p2414_p5 }
 0x7b9   : > { %p2421_p9 = por %p2420_p13, %p2419_p2 }
 0x7bb   : > { %p2422_p0 = pnand %p2421_p9, %p2415_p7 }
 0x7bd   : > { %2425 = shalt.err (!%p2422_p0)
}
 0x7be   : > { %1975 = dma.vmem_to_hbm [thread:$0]  (%p2735_p3), %s3097_s12, 512, %s3103_s13, %s3015_s28, %s2490_s0, %s2490_s0, %s2491_s21  }
 0x7bf PF: > { %s3209_s11 = sld [smem:[#allocation20_spill]]  ;;  %s3210_s27 = sld [smem:[#allocation21_spill]] }
 0x7c0   : > { %p3212_p4 = scmp.ge.s32.totalorder %s2476_s24, 2 }
 0x7c5   : > { %s1608_s10 = sand.u32 1, %s3209_s11   ;;  %p3211_p11 = scmp.ne.s32.totalorder %s3210_s27, 0 }
 0x7c6   : > { %s1609_s29 = scalar_lea.sflag [#allocation4], %s1608_s10 }
 0x7c7   : > { %p1997_p8 = pnand %p3212_p4, %p3211_p11 }
 0x7c9   : > { %2455 = dma.done.wait (!%p1997_p8), %s1609_s29, 512  }
 0x7ca   : > { %2457 = vsyncadd (!%p1997_p8), %s1609_s29, 4294966784  ;;  %s3213_s14 = sadd.s32 4294967294, %s2476_s24  }
 0x7cb   : > { %s1617_s18 = sand.u32 1, %s3213_s14  }
 0x7cc   : > { %s1618_s30 = scalar_lea.sflag [#allocation13], %s1617_s18 }
 0x7cd   : > { %2459 = dma.done.wait (!%p1997_p8), %s1618_s30, 1024  }
 0x7ce   : > { %2461 = vsyncadd (!%p1997_p8), %s1618_s30, 4294966272  ;;  %p31_p3 = scmp.ge.s32.totalorder %s2722_s9, 4   ;;  %s3214_s21 = smov %s2468_s22 }
 0x7cf   : > { %s3215_s22 = smov %s2472_s23  ;;  %s3216_s23 = smov %s2731_s20 }
 0x7d0   : > { %s3217_s24 = smov %s2722_s9  ;;  %33 = sbr.rel (!%p31_p3) target bundleno = 18 (0x12), region = 153 }
 0x7d7   :  { %1632 = vsyncpa [#allocation3], 1 }
 0x7d8   :  { %1634 = vsyncpa [#allocation3 + $0x1], 1 }
 0x7d9   :  { %1635 = vsyncpa [#allocation6], 1 }
 0x7da   :  { %1636 = vsyncpa [#allocation9], 1 }
 0x7db   :  { %1637 = vsyncpa [#allocation4], 1 }
 0x7dc   :  { %1639 = vsyncpa [#allocation4 + $0x1], 1 }
 0x7dd   :  { %1640 = vsyncpa [#allocation13], 1 }
 0x7de   :  { %1642 = vsyncpa [#allocation13 + $0x1], 1 }

</bundles_post_ra>
